<compile_context>
chip_gen: v6e
topology: v6e:2x2x1
jax: 0.10.0
libtpu: 0.0.40
codegen_flags: <defaults>
</compile_context>

<pallas_src>
import functools

import numpy as np

import jax
import jax.numpy as jnp
from jax.experimental import pallas as pl
from jax.experimental.pallas import tpu as pltpu

# ----------------------------- GP hyperparameters ---------------------------
LENGTHSCALE = 1.0
OUTPUTSCALE = 1.0
NOISE = 0.1  # Gaussian likelihood noise variance

# --------------------------------- tiling -----------------------------------
BLOCK_M = 256   # test-point tile (lane dim of everything inside the kernel)


def _round_up(a, b):
    return ((a + b - 1) // b) * b


# ------------------------------- Pallas kernel ------------------------------
def _energy_kernel(x_t_ref, xt_ref, alpha_ref, kinv_hi_ref, kinv_lo_ref, o_ref,
                   ks_hi_ref, ks_lo_ref, mean_ref, quad_ref,
                   *, lengthscale, outputscale, noise, block_n):
    j = pl.program_id(1)
    inv_2l2 = -0.5 / (lengthscale * lengthscale)

    # ---- first K^{-1} block of this M-tile: build k_star^T once, fuse mean ---
    @pl.when(j == 0)
    def _():
        x_t = x_t_ref[...]                      # (D, TM)  test points, transposed
        xt = xt_ref[...]                        # (N, D)   train points

        # exact f32 cross term: D is tiny, so VPU outer products keep the
        # squared distances exact (no MXU precision dependence here).
        cross = jnp.zeros((xt.shape[0], x_t.shape[1]), jnp.float32)
        for dd in range(x_t.shape[0]):          # static unroll over features
            cross = cross + xt[:, dd:dd + 1] * x_t[dd:dd + 1, :]

        xt_sq = jnp.sum(xt * xt, axis=1, keepdims=True)          # (N, 1)
        x_sq = jnp.sum(x_t * x_t, axis=0, keepdims=True)         # (1, TM)
        sqdist = jnp.maximum(xt_sq + x_sq - 2.0 * cross, 0.0)    # (N, TM)
        k_star = outputscale * jnp.exp(inv_2l2 * sqdist)         # (N, TM) f32

        # bf16x2 (hi + lo) split of k_star so the MXU matmuls below recover
        # ~f32 accuracy while staying on the fast bf16 path.
        ks_hi = k_star.astype(jnp.bfloat16)
        ks_lo = (k_star - ks_hi.astype(jnp.float32)).astype(jnp.bfloat16)
        ks_hi_ref[...] = ks_hi
        ks_lo_ref[...] = ks_lo

        # predictive mean = alpha^T @ k_star via the same compensated split
        a = alpha_ref[...]                                        # (8, N), row 0
        a_hi = a.astype(jnp.bfloat16)
        a_lo = (a - a_hi.astype(jnp.float32)).astype(jnp.bfloat16)
        mean_full = (
            jnp.dot(a_hi, ks_hi, preferred_element_type=jnp.float32)
            + jnp.dot(a_hi, ks_lo, preferred_element_type=jnp.float32)
            + jnp.dot(a_lo, ks_hi, preferred_element_type=jnp.float32))
        mean_ref[...] = mean_full[0:1, :]                         # (1, TM)
        quad_ref[...] = jnp.zeros_like(quad_ref)

    # ---- every step: one (TN, N) row block of K^{-1} through the bf16 MXU ---
    hi = kinv_hi_ref[...]
    lo = kinv_lo_ref[...]
    ks_hi = ks_hi_ref[...]
    ks_lo = ks_lo_ref[...]
    v = (jnp.dot(hi, ks_hi, preferred_element_type=jnp.float32)
         + jnp.dot(hi, ks_lo, preferred_element_type=jnp.float32)
         + jnp.dot(lo, ks_hi, preferred_element_type=jnp.float32))   # (TN, TM)

    row0 = pl.multiple_of(j * block_n, block_n)
    ksb = (ks_hi_ref[pl.ds(row0, block_n), :].astype(jnp.float32)
           + ks_lo_ref[pl.ds(row0, block_n), :].astype(jnp.float32))
    quad_ref[...] += jnp.sum(v * ksb, axis=0, keepdims=True)          # (1, TM)

    # ---- last step: energy = mean - std, lane-dense write -------------------
    @pl.when(j == pl.num_programs(1) - 1)
    def _():
        var = jnp.maximum(outputscale + noise - quad_ref[...], 1e-12)
        o_ref[0] = mean_ref[...] - jnp.sqrt(var)                      # (1, TM)


# --------------------------------- wrapper ----------------------------------
def energy_function(x, x_train, alpha, k_inv, *,
                    lengthscale=LENGTHSCALE, outputscale=OUTPUTSCALE,
                    noise=NOISE, block_m=BLOCK_M, block_n=None):
    """x: (M, D) test points -> energy: (M,) = predictive mean - stddev.

    alpha = (K + noise I)^{-1} y   (N,)     precomputed on host
    k_inv = (K + noise I)^{-1}     (N, N)   precomputed on host
    """
    x = jnp.asarray(x, jnp.float32)
    x_train = jnp.asarray(x_train, jnp.float32)
    alpha = jnp.asarray(alpha, jnp.float32).reshape(-1)
    m, d = x.shape
    n = x_train.shape[0]

    try:
        phys_vmem = int(pltpu.get_tpu_info().vmem_capacity_bytes)
    except Exception:
        phys_vmem = 64 << 20      # conservative default (v7x: 64 MiB / TC)

    lane = 128
    d_lanes = _round_up(max(d, 1), lane)

    def vmem_need(n_pad, bn, bm):
        return (2 * 2 * bn * n_pad * 2        # K^{-1} hi/lo blocks, double-buffered
                + 2 * n_pad * bm * 2          # k_star hi/lo scratch (bf16)
                + 2 * n_pad * d_lanes * 4     # x_train (lane-padded), 2 buffers
                + 2 * 8 * n_pad * 4           # alpha rows (8, N) f32
                + 2 * 8 * bm * 4              # x^T tiles (sublane-padded)
                + 4 * 8 * bm * 4)             # mean/quad scratch + out block

    # ---- K^{-1} layout: fully VMEM-resident when it fits, else streamed -----
    if block_n is None:
        n_res = _round_up(n, lane)
        if vmem_need(n_res, n_res, block_m) <= int(0.55 * phys_vmem):
            block_n = n_res                    # resident: DMA'd from HBM once
        else:
            block_n = 512
            while block_n > 128 and vmem_need(_round_up(n, block_n), block_n,
                                              block_m) > int(0.55 * phys_vmem):
                block_n //= 2
    n_pad = _round_up(n, block_n)
    resident = block_n >= n_pad
    if resident:
        block_n = n_pad

    # ---- test-point tiling: lane-dense; when resident, prefer >=2 M tiles so
    #      the 'parallel' axis can occupy both v7x TensorCores (no extra K^{-1}
    #      traffic since it is not re-streamed).
    m_pad = _round_up(m, lane)
    block_m = min(block_m, m_pad)
    if resident and m_pad > lane and m_pad // block_m < 2:
        block_m = lane
    m_pad = _round_up(m, block_m)

    # ---- operand layout (lane-dense on the big axes) -------------------------
    x_t = jnp.zeros((d, m_pad), jnp.float32).at[:, :m].set(x.T)
    xt = jnp.zeros((n_pad, d), jnp.float32).at[:n].set(x_train)
    alpha_p = jnp.zeros((8, n_pad), jnp.float32).at[0, :n].set(alpha)
    kinv32 = jnp.zeros((n_pad, n_pad), jnp.float32).at[:n, :n].set(
        jnp.asarray(k_inv, jnp.float32))
    kinv_hi = kinv32.astype(jnp.bfloat16)
    kinv_lo = (kinv32 - kinv_hi.astype(jnp.float32)).astype(jnp.bfloat16)

    grid = (m_pad // block_m, n_pad // block_n)

    need = vmem_need(n_pad, block_n, block_m)
    vmem_limit = int(min(max(int(1.4 * need) + (4 << 20), 16 << 20),
                         int(0.85 * phys_vmem)))

    kern = functools.partial(_energy_kernel,
                             lengthscale=float(lengthscale),
                             outputscale=float(outputscale),
                             noise=float(noise),
                             block_n=block_n)

    out = pl.pallas_call(
        kern,
        out_shape=jax.ShapeDtypeStruct((m_pad // block_m, 1, block_m),
                                       jnp.float32),
        grid_spec=pltpu.PrefetchScalarGridSpec(
            num_scalar_prefetch=0,
            grid=grid,
            in_specs=[
                pl.BlockSpec((d, block_m), lambda i, j: (0, i)),       # x^T tile
                pl.BlockSpec((n_pad, d), lambda i, j: (0, 0)),         # x_train
                pl.BlockSpec((8, n_pad), lambda i, j: (0, 0)),         # alpha row
                pl.BlockSpec((block_n, n_pad), lambda i, j: (j, 0)),   # K^{-1} hi
                pl.BlockSpec((block_n, n_pad), lambda i, j: (j, 0)),   # K^{-1} lo
            ],
            out_specs=pl.BlockSpec((1, 1, block_m), lambda i, j: (i, 0, 0)),
            scratch_shapes=[
                pltpu.VMEM((n_pad, block_m), jnp.bfloat16),   # k_star^T hi
                pltpu.VMEM((n_pad, block_m), jnp.bfloat16),   # k_star^T lo
                pltpu.VMEM((1, block_m), jnp.float32),        # mean
                pltpu.VMEM((1, block_m), jnp.float32),        # quad accumulator
            ]),
        compiler_params=pltpu.CompilerParams(
            dimension_semantics=("parallel", "arbitrary"),
            vmem_limit_bytes=vmem_limit),
    )(x_t, xt, alpha_p, kinv_hi, kinv_lo)

    return out.reshape(-1)[:m]


# ------------------------- reference (float64 NumPy) -------------------------
def _energy_reference_np(x, x_train, alpha, k_inv, *,
                         lengthscale=LENGTHSCALE, outputscale=OUTPUTSCALE,
                         noise=NOISE):
    x = np.asarray(x, np.float64)
    xt = np.asarray(x_train, np.float64)
    a = np.asarray(alpha, np.float64).reshape(-1)
    ki = np.asarray(k_inv, np.float64)
    d2 = ((x * x).sum(-1)[:, None] + (xt * xt).sum(-1)[None, :]
          - 2.0 * x @ xt.T)
    ks = outputscale * np.exp(-0.5 * np.maximum(d2, 0.0) / (lengthscale ** 2))
    mean = ks @ a
    var = outputscale + noise - np.einsum('mn,nk,mk->m', ks, ki, ks)
    return mean - np.sqrt(np.maximum(var, 1e-12))


# ----------------------------------- main ------------------------------------
if __name__ == "__main__":
    key = jax.random.PRNGKey(0)
    k1, k2, k3 = jax.random.split(key, 3)

    M, N, D = 200, 384, 4   # test points, train points, input dim

    x_train = jax.random.normal(k1, (N, D), dtype=jnp.float32)
    y_train = jnp.sin(jnp.sum(x_train, axis=-1)) + \
        0.05 * jax.random.normal(k2, (N,), dtype=jnp.float32)
    x_test = jax.random.normal(k3, (M, D), dtype=jnp.float32)

    # Glue: one-time exact-GP training-set preprocessing in float64 on host,
    # then cast to the f32 operands the kernel consumes.
    xt64 = np.asarray(x_train, np.float64)
    y64 = np.asarray(y_train, np.float64)
    d2 = ((xt64 * xt64).sum(-1)[:, None] + (xt64 * xt64).sum(-1)[None, :]
          - 2.0 * xt64 @ xt64.T)
    K = OUTPUTSCALE * np.exp(-0.5 * np.maximum(d2, 0.0) / LENGTHSCALE ** 2) \
        + NOISE * np.eye(N)
    k_inv = np.linalg.solve(K, np.eye(N)).astype(np.float32)
    alpha = np.linalg.solve(K, y64).astype(np.float32)

    # default path: K^{-1} fully VMEM-resident, >=2 parallel M tiles
    energy = energy_function(x_test, x_train, alpha, k_inv)
    energy = jax.block_until_ready(energy)
    assert energy.shape == (M,)

    ref = _energy_reference_np(np.asarray(x_test), np.asarray(x_train),
                               alpha, k_inv)
    max_err = float(np.max(np.abs(np.asarray(energy, np.float64) - ref)))
    assert max_err < 1e-2, (max_err, np.asarray(energy)[:5], ref[:5])

    # also exercise the streamed-K^{-1} path (multiple row blocks per M tile)
    energy_s = energy_function(x_test, x_train, alpha, k_inv, block_n=128)
    energy_s = jax.block_until_ready(energy_s)
    max_err_s = float(np.max(np.abs(np.asarray(energy_s, np.float64) - ref)))
    assert max_err_s < 1e-2, (max_err_s,)

    print("KERNEL_OK")
</pallas_src>

<mosaic_0001>
module attributes {stable_mosaic.version = 11 : i64} {
  func.func @_energy_kernel(%arg0: i32, %arg1: i32, %arg2: memref<4x128xf32, #tpu.memory_space<vmem>>, %arg3: memref<384x4xf32, #tpu.memory_space<vmem>>, %arg4: memref<8x384xf32, #tpu.memory_space<vmem>>, %arg5: memref<384x384xbf16, #tpu.memory_space<vmem>>, %arg6: memref<384x384xbf16, #tpu.memory_space<vmem>>, %arg7: memref<1x1x128xf32, #tpu.memory_space<vmem>>, %arg8: memref<384x128xbf16, #tpu.memory_space<vmem>>, %arg9: memref<384x128xbf16, #tpu.memory_space<vmem>>, %arg10: memref<1x128xf32, #tpu.memory_space<vmem>>, %arg11: memref<1x128xf32, #tpu.memory_space<vmem>>) attributes {dimension_semantics = [#tpu.dimension_semantics<parallel>, #tpu.dimension_semantics<arbitrary>], iteration_bounds = array<i64: 2, 1>, scalar_prefetch = 0 : i64, scratch_operands = 4 : i64, tpu.core_type = #tpu.core_type<tc>, window_params = [{transform_indices = @transform_0, window_bounds = array<i64: 4, 128>}, {pipeline_mode = #tpu.pipeline_mode<synchronous>, transform_indices = @transform_1, window_bounds = array<i64: 384, 4>}, {pipeline_mode = #tpu.pipeline_mode<synchronous>, transform_indices = @transform_2, window_bounds = array<i64: 8, 384>}, {transform_indices = @transform_3, window_bounds = array<i64: 384, 384>}, {transform_indices = @transform_4, window_bounds = array<i64: 384, 384>}, {transform_indices = @transform_5, window_bounds = array<i64: 1, 1, 128>}]} {
    %c0_i32 = arith.constant 0 : i32
    %0 = arith.cmpi eq, %arg1, %c0_i32 : i32
    %1 = arith.extui %0 : i1 to i32
    %c0_i32_0 = arith.constant 0 : i32
    %2 = arith.cmpi ne, %1, %c0_i32_0 : i32
    scf.if %2 {
      %c0_19 = arith.constant 0 : index
      %c0_20 = arith.constant 0 : index
      %30 = vector.load %arg2[%c0_19, %c0_20] : memref<4x128xf32, #tpu.memory_space<vmem>>, vector<4x128xf32>
      %c0_21 = arith.constant 0 : index
      %c0_22 = arith.constant 0 : index
      %31 = vector.load %arg3[%c0_21, %c0_22] : memref<384x4xf32, #tpu.memory_space<vmem>>, vector<384x4xf32>
      %cst_23 = arith.constant 0.000000e+00 : f32
      %32 = vector.broadcast %cst_23 : f32 to vector<384x128xf32>
      %33 = vector.extract_strided_slice %31 {offsets = [0, 0], sizes = [384, 1], strides = [1, 1]} : vector<384x4xf32> to vector<384x1xf32>
      %34 = vector.extract_strided_slice %30 {offsets = [0, 0], sizes = [1, 128], strides = [1, 1]} : vector<4x128xf32> to vector<1x128xf32>
      %35 = vector.broadcast %33 : vector<384x1xf32> to vector<384x128xf32>
      %36 = vector.broadcast %34 : vector<1x128xf32> to vector<384x128xf32>
      %37 = arith.mulf %35, %36 : vector<384x128xf32>
      %38 = arith.addf %32, %37 : vector<384x128xf32>
      %39 = vector.extract_strided_slice %31 {offsets = [0, 1], sizes = [384, 1], strides = [1, 1]} : vector<384x4xf32> to vector<384x1xf32>
      %40 = vector.extract_strided_slice %30 {offsets = [1, 0], sizes = [1, 128], strides = [1, 1]} : vector<4x128xf32> to vector<1x128xf32>
      %41 = vector.broadcast %39 : vector<384x1xf32> to vector<384x128xf32>
      %42 = vector.broadcast %40 : vector<1x128xf32> to vector<384x128xf32>
      %43 = arith.mulf %41, %42 : vector<384x128xf32>
      %44 = arith.addf %38, %43 : vector<384x128xf32>
      %45 = vector.extract_strided_slice %31 {offsets = [0, 2], sizes = [384, 1], strides = [1, 1]} : vector<384x4xf32> to vector<384x1xf32>
      %46 = vector.extract_strided_slice %30 {offsets = [2, 0], sizes = [1, 128], strides = [1, 1]} : vector<4x128xf32> to vector<1x128xf32>
      %47 = vector.broadcast %45 : vector<384x1xf32> to vector<384x128xf32>
      %48 = vector.broadcast %46 : vector<1x128xf32> to vector<384x128xf32>
      %49 = arith.mulf %47, %48 : vector<384x128xf32>
      %50 = arith.addf %44, %49 : vector<384x128xf32>
      %51 = vector.extract_strided_slice %31 {offsets = [0, 3], sizes = [384, 1], strides = [1, 1]} : vector<384x4xf32> to vector<384x1xf32>
      %52 = vector.extract_strided_slice %30 {offsets = [3, 0], sizes = [1, 128], strides = [1, 1]} : vector<4x128xf32> to vector<1x128xf32>
      %53 = vector.broadcast %51 : vector<384x1xf32> to vector<384x128xf32>
      %54 = vector.broadcast %52 : vector<1x128xf32> to vector<384x128xf32>
      %55 = arith.mulf %53, %54 : vector<384x128xf32>
      %56 = arith.addf %50, %55 : vector<384x128xf32>
      %57 = arith.mulf %31, %31 : vector<384x4xf32>
      %cst_24 = arith.constant dense<0.000000e+00> : vector<384xf32>
      %58 = vector.multi_reduction <add>, %57, %cst_24 [1] : vector<384x4xf32> to vector<384xf32>
      %59 = vector.shape_cast %58 : vector<384xf32> to vector<384x1xf32>
      %60 = arith.mulf %30, %30 : vector<4x128xf32>
      %cst_25 = arith.constant dense<0.000000e+00> : vector<128xf32>
      %61 = vector.multi_reduction <add>, %60, %cst_25 [0] : vector<4x128xf32> to vector<128xf32>
      %62 = vector.shape_cast %61 : vector<128xf32> to vector<1x128xf32>
      %63 = vector.broadcast %59 : vector<384x1xf32> to vector<384x128xf32>
      %64 = vector.broadcast %62 : vector<1x128xf32> to vector<384x128xf32>
      %65 = arith.addf %63, %64 : vector<384x128xf32>
      %cst_26 = arith.constant 2.000000e+00 : f32
      %66 = vector.broadcast %cst_26 : f32 to vector<384x128xf32>
      %67 = arith.mulf %66, %56 : vector<384x128xf32>
      %68 = arith.subf %65, %67 : vector<384x128xf32>
      %cst_27 = arith.constant 0.000000e+00 : f32
      %69 = vector.broadcast %cst_27 : f32 to vector<384x128xf32>
      %70 = arith.maximumf %68, %69 : vector<384x128xf32>
      %cst_28 = arith.constant -5.000000e-01 : f32
      %71 = vector.broadcast %cst_28 : f32 to vector<384x128xf32>
      %72 = arith.mulf %71, %70 : vector<384x128xf32>
      %73 = math.exp %72 : vector<384x128xf32>
      %cst_29 = arith.constant 1.000000e+00 : f32
      %74 = vector.broadcast %cst_29 : f32 to vector<384x128xf32>
      %75 = arith.mulf %74, %73 : vector<384x128xf32>
      %76 = arith.truncf %75 : vector<384x128xf32> to vector<384x128xbf16>
      %77 = arith.extf %76 : vector<384x128xbf16> to vector<384x128xf32>
      %78 = arith.subf %75, %77 : vector<384x128xf32>
      %79 = arith.truncf %78 : vector<384x128xf32> to vector<384x128xbf16>
      %c0_30 = arith.constant 0 : index
      %c0_31 = arith.constant 0 : index
      %80 = vector.load %arg8[%c0_30, %c0_31] : memref<384x128xbf16, #tpu.memory_space<vmem>>, vector<384x128xbf16>
      tpu.vector_store %arg8[%c0_30, %c0_31], %76 {strides = array<i32>} : memref<384x128xbf16, #tpu.memory_space<vmem>>, vector<384x128xbf16>,
      %c0_32 = arith.constant 0 : index
      %c0_33 = arith.constant 0 : index
      %81 = vector.load %arg9[%c0_32, %c0_33] : memref<384x128xbf16, #tpu.memory_space<vmem>>, vector<384x128xbf16>
      tpu.vector_store %arg9[%c0_32, %c0_33], %79 {strides = array<i32>} : memref<384x128xbf16, #tpu.memory_space<vmem>>, vector<384x128xbf16>,
      %c0_34 = arith.constant 0 : index
      %c0_35 = arith.constant 0 : index
      %82 = vector.load %arg4[%c0_34, %c0_35] : memref<8x384xf32, #tpu.memory_space<vmem>>, vector<8x384xf32>
      %83 = arith.truncf %82 : vector<8x384xf32> to vector<8x384xbf16>
      %84 = arith.extf %83 : vector<8x384xbf16> to vector<8x384xf32>
      %85 = arith.subf %82, %84 : vector<8x384xf32>
      %86 = arith.truncf %85 : vector<8x384xf32> to vector<8x384xbf16>
      %cst_36 = arith.constant dense<0.000000e+00> : vector<8x128xf32>
      %87 = tpu.matmul %83, %76, %cst_36 {dimension_numbers = #tpu.dot_dimension_numbers<[1], [0], [0], [1], [0, 0, 1, 1], [], []>} : vector<8x384xbf16>, vector<384x128xbf16>, vector<8x128xf32> -> vector<8x128xf32>
      %cst_37 = arith.constant dense<0.000000e+00> : vector<8x128xf32>
      %88 = tpu.matmul %83, %79, %cst_37 {dimension_numbers = #tpu.dot_dimension_numbers<[1], [0], [0], [1], [0, 0, 1, 1], [], []>} : vector<8x384xbf16>, vector<384x128xbf16>, vector<8x128xf32> -> vector<8x128xf32>
      %89 = arith.addf %87, %88 : vector<8x128xf32>
      %cst_38 = arith.constant dense<0.000000e+00> : vector<8x128xf32>
      %90 = tpu.matmul %86, %76, %cst_38 {dimension_numbers = #tpu.dot_dimension_numbers<[1], [0], [0], [1], [0, 0, 1, 1], [], []>} : vector<8x384xbf16>, vector<384x128xbf16>, vector<8x128xf32> -> vector<8x128xf32>
      %91 = arith.addf %89, %90 : vector<8x128xf32>
      %92 = vector.extract_strided_slice %91 {offsets = [0, 0], sizes = [1, 128], strides = [1, 1]} : vector<8x128xf32> to vector<1x128xf32>
      %c0_39 = arith.constant 0 : index
      %c0_40 = arith.constant 0 : index
      %93 = vector.load %arg10[%c0_39, %c0_40] : memref<1x128xf32, #tpu.memory_space<vmem>>, vector<1x128xf32>
      tpu.vector_store %arg10[%c0_39, %c0_40], %92 {strides = array<i32>} : memref<1x128xf32, #tpu.memory_space<vmem>>, vector<1x128xf32>,
      %cst_41 = arith.constant 0.000000e+00 : f32
      %94 = vector.broadcast %cst_41 : f32 to vector<1x128xf32>
      %c0_42 = arith.constant 0 : index
      %c0_43 = arith.constant 0 : index
      %95 = vector.load %arg11[%c0_42, %c0_43] : memref<1x128xf32, #tpu.memory_space<vmem>>, vector<1x128xf32>
      tpu.vector_store %arg11[%c0_42, %c0_43], %94 {strides = array<i32>} : memref<1x128xf32, #tpu.memory_space<vmem>>, vector<1x128xf32>,
    } else {
    }
    %c0 = arith.constant 0 : index
    %c0_1 = arith.constant 0 : index
    %3 = vector.load %arg5[%c0, %c0_1] : memref<384x384xbf16, #tpu.memory_space<vmem>>, vector<384x384xbf16>
    %c0_2 = arith.constant 0 : index
    %c0_3 = arith.constant 0 : index
    %4 = vector.load %arg6[%c0_2, %c0_3] : memref<384x384xbf16, #tpu.memory_space<vmem>>, vector<384x384xbf16>
    %c0_4 = arith.constant 0 : index
    %c0_5 = arith.constant 0 : index
    %5 = vector.load %arg8[%c0_4, %c0_5] : memref<384x128xbf16, #tpu.memory_space<vmem>>, vector<384x128xbf16>
    %c0_6 = arith.constant 0 : index
    %c0_7 = arith.constant 0 : index
    %6 = vector.load %arg9[%c0_6, %c0_7] : memref<384x128xbf16, #tpu.memory_space<vmem>>, vector<384x128xbf16>
    %cst = arith.constant dense<0.000000e+00> : vector<384x128xf32>
    %7 = tpu.matmul %3, %5, %cst {dimension_numbers = #tpu.dot_dimension_numbers<[1], [0], [0], [1], [0, 0, 1, 1], [], []>} : vector<384x384xbf16>, vector<384x128xbf16>, vector<384x128xf32> -> vector<384x128xf32>
    %cst_8 = arith.constant dense<0.000000e+00> : vector<384x128xf32>
    %8 = tpu.matmul %3, %6, %cst_8 {dimension_numbers = #tpu.dot_dimension_numbers<[1], [0], [0], [1], [0, 0, 1, 1], [], []>} : vector<384x384xbf16>, vector<384x128xbf16>, vector<384x128xf32> -> vector<384x128xf32>
    %9 = arith.addf %7, %8 : vector<384x128xf32>
    %cst_9 = arith.constant dense<0.000000e+00> : vector<384x128xf32>
    %10 = tpu.matmul %4, %5, %cst_9 {dimension_numbers = #tpu.dot_dimension_numbers<[1], [0], [0], [1], [0, 0, 1, 1], [], []>} : vector<384x384xbf16>, vector<384x128xbf16>, vector<384x128xf32> -> vector<384x128xf32>
    %11 = arith.addf %9, %10 : vector<384x128xf32>
    %c384_i32 = arith.constant 384 : i32
    %12 = arith.muli %arg1, %c384_i32 : i32
    %13 = tpu.assume_multiple %12, 384 : i32
    %14 = arith.index_cast %13 : i32 to index
    %c0_10 = arith.constant 0 : index
    %15 = vector.load %arg8[%14, %c0_10] : memref<384x128xbf16, #tpu.memory_space<vmem>>, vector<384x128xbf16>
    %16 = arith.extf %15 : vector<384x128xbf16> to vector<384x128xf32>
    %17 = arith.index_cast %13 : i32 to index
    %c0_11 = arith.constant 0 : index
    %18 = vector.load %arg9[%17, %c0_11] : memref<384x128xbf16, #tpu.memory_space<vmem>>, vector<384x128xbf16>
    %19 = arith.extf %18 : vector<384x128xbf16> to vector<384x128xf32>
    %20 = arith.addf %16, %19 : vector<384x128xf32>
    %c0_12 = arith.constant 0 : index
    %c0_13 = arith.constant 0 : index
    %21 = vector.load %arg11[%c0_12, %c0_13] : memref<1x128xf32, #tpu.memory_space<vmem>>, vector<1x128xf32>
    %22 = arith.mulf %11, %20 : vector<384x128xf32>
    %cst_14 = arith.constant dense<0.000000e+00> : vector<128xf32>
    %23 = vector.multi_reduction <add>, %22, %cst_14 [0] : vector<384x128xf32> to vector<128xf32>
    %24 = vector.shape_cast %23 : vector<128xf32> to vector<1x128xf32>
    %25 = arith.addf %21, %24 : vector<1x128xf32>
    %c0_15 = arith.constant 0 : index
    %c0_16 = arith.constant 0 : index
    %26 = vector.load %arg11[%c0_15, %c0_16] : memref<1x128xf32, #tpu.memory_space<vmem>>, vector<1x128xf32>
    tpu.vector_store %arg11[%c0_15, %c0_16], %25 {strides = array<i32>} : memref<1x128xf32, #tpu.memory_space<vmem>>, vector<1x128xf32>,
    %c0_i32_17 = arith.constant 0 : i32
    %27 = arith.cmpi eq, %arg1, %c0_i32_17 : i32
    %28 = arith.extui %27 : i1 to i32
    %c0_i32_18 = arith.constant 0 : i32
    %29 = arith.cmpi ne, %28, %c0_i32_18 : i32
    scf.if %29 {
      %c0_19 = arith.constant 0 : index
      %c0_20 = arith.constant 0 : index
      %30 = vector.load %arg11[%c0_19, %c0_20] : memref<1x128xf32, #tpu.memory_space<vmem>>, vector<1x128xf32>
      %cst_21 = arith.constant 1.100000e+00 : f32
      %31 = vector.broadcast %cst_21 : f32 to vector<1x128xf32>
      %32 = arith.subf %31, %30 : vector<1x128xf32>
      %cst_22 = arith.constant 9.99999996E-13 : f32
      %33 = vector.broadcast %cst_22 : f32 to vector<1x128xf32>
      %34 = arith.maximumf %32, %33 : vector<1x128xf32>
      %c0_23 = arith.constant 0 : index
      %c0_24 = arith.constant 0 : index
      %35 = vector.load %arg10[%c0_23, %c0_24] : memref<1x128xf32, #tpu.memory_space<vmem>>, vector<1x128xf32>
      %36 = math.sqrt %34 : vector<1x128xf32>
      %37 = arith.subf %35, %36 : vector<1x128xf32>
      %c0_25 = arith.constant 0 : index
      %c0_26 = arith.constant 0 : index
      %c0_27 = arith.constant 0 : index
      %38 = vector.load %arg7[%c0_25, %c0_26, %c0_27] : memref<1x1x128xf32, #tpu.memory_space<vmem>>, vector<1x1x128xf32>
      %39 = vector.shape_cast %38 : vector<1x1x128xf32> to vector<1x128xf32>
      %40 = vector.shape_cast %37 : vector<1x128xf32> to vector<1x1x128xf32>
      tpu.vector_store %arg7[%c0_25, %c0_26, %c0_27], %40 {strides = array<i32>} : memref<1x1x128xf32, #tpu.memory_space<vmem>>, vector<1x1x128xf32>,
    } else {
    }
    return
  }
  func.func @transform_0(%arg0: i32, %arg1: i32) -> (i32, i32) {
    %c0_i32 = arith.constant 0 : i32
    %c0_i32_0 = arith.constant 0 : i32
    return %c0_i32, %arg0 : i32, i32
  }
  func.func @transform_1(%arg0: i32, %arg1: i32) -> (i32, i32) {
    %c0_i32 = arith.constant 0 : i32
    %c0_i32_0 = arith.constant 0 : i32
    %c0_i32_1 = arith.constant 0 : i32
    return %c0_i32, %c0_i32_0 : i32, i32
  }
  func.func @transform_2(%arg0: i32, %arg1: i32) -> (i32, i32) {
    %c0_i32 = arith.constant 0 : i32
    %c0_i32_0 = arith.constant 0 : i32
    %c0_i32_1 = arith.constant 0 : i32
    return %c0_i32, %c0_i32_0 : i32, i32
  }
  func.func @transform_3(%arg0: i32, %arg1: i32) -> (i32, i32) {
    %c0_i32 = arith.constant 0 : i32
    %c0_i32_0 = arith.constant 0 : i32
    return %arg1, %c0_i32 : i32, i32
  }
  func.func @transform_4(%arg0: i32, %arg1: i32) -> (i32, i32) {
    %c0_i32 = arith.constant 0 : i32
    %c0_i32_0 = arith.constant 0 : i32
    return %arg1, %c0_i32 : i32, i32
  }
  func.func @transform_5(%arg0: i32, %arg1: i32) -> (i32, i32, i32) {
    %c0_i32 = arith.constant 0 : i32
    %c0_i32_0 = arith.constant 0 : i32
    %c0_i32_1 = arith.constant 0 : i32
    return %arg0, %c0_i32, %c0_i32_0 : i32, i32, i32
  }
}

</mosaic_0001>

<bundles_post_ra>
// kernel: tpu_custom_call.1
= control target key start
LH: loop header
LB: loop body
LE: loop exit
PB: predicated region body
PF: predicated region fallthrough
CT: control target
= control target key end

     0   :  { %10 = vsyncpa [#allocation7], 0  ;;  %s11393_s0 = inlined_call_operand.vmem [shape: f32[4,256], index: 0, kind: input, shape index: {}]   ;;  %s11394_s1 = inlined_call_operand.vmem [shape: f32[384,4], index: 1, kind: input, shape index: {}]   ;;  %s11395_s2 = inlined_call_operand.vmem [shape: f32[8,384], index: 2, kind: input, shape index: {}]   ;;  %s11396_s3 = inlined_call_operand.hbm [shape: bf16[384,384], index: 3, kind: input, shape index: {}]   ;;  %s11397_s4 = inlined_call_operand.hbm [shape: bf16[384,384], index: 4, kind: input, shape index: {}]   ;;  %s11398_s5 = inlined_call_operand.hbm [shape: f32[2,1,128], index: 5, kind: output, shape index: {}]  }
   0x1   :  { %11 = vsyncpa [#allocation10], 0 }
   0x2   :  { %12 = vsyncpa [#allocation8], 0 }
   0x3   :  { %14 = vsyncpa [#allocation8 + $0x1], 0  ;;  %s8163_s18 = smov 0   ;;  %s8165_s19 = smov 0  }
   0x4   :  { %s8167_s20 = smov 0   ;;  %s8169_s21 = smov 0  }
   0x5   :  { %s8171_s22 = smov 0   ;;  %s8173_s23 = smov 0  }
   0x6 LB: > { %s6138_s24 = sadd.s32 4294967295, %s8120_s23   ;;  %s6139_s25 = sadd.s32 4294967294, %s8120_s23   ;;  %s8120_s23 = sphi %s8173_s23, %s20_s23   ;;  %s8116_s22 = sphi %s8171_s22, %s12015_s22   ;;  %s8112_s21 = sphi %s8169_s21, %s12014_s21   ;;  %s8108_s20 = sphi %s8167_s20, %s12013_s20   ;;  %s8104_s19 = sphi %s8165_s19, %s12012_s19   ;;  %s8100_s18 = sphi %s8163_s18, %s12011_s18  }
   0x7   : > { %s32_s26 = sadd.s32 1, %s8116_s22  ;;  %s159_s27 = sadd.s32 1, %s8108_s20 }
   0x8   : > { %p34_p0 = scmp.ge.s32.totalorder %s32_s26, 2  ;;  %p169_p1 = scmp.ne.s32.totalorder %s8108_s20, %s8104_s19 }
   0x9   : > { %p170_p2 = scmp.eq.s32.totalorder %s6138_s24, 1  ;;  %p175_p3 = scmp.ne.s32.totalorder %s8104_s19, %s8100_s18 }
   0xa   : > { %s12017_s26 = smov (%p34_p0, %s32_s26), 0  ;;  %p176_p5 = scmp.eq.s32.totalorder %s6139_s25, 1 }
   0xb   : > { %p8203_p4 = por %p170_p2, %p169_p1  ;;  %s156_s29 = ssub.s32 %s8116_s22, %s12017_s26 }
   0xc   : > { %p6140_p6 = scmp.ge.s32.totalorder %s8120_s23, 1  ;;  %p157_p7 = scmp.eq.s32.totalorder %s156_s29, 0 }
   0xd   : > { %s11418_s28 = scalar_select %p8203_p4, 1, 0 }
   0xe   : > { %p8210_p8 = por %p176_p5, %p175_p3  ;;  %p183_p9 = scmp.lt.s32.totalorder %s8120_s23, 3 }
   0xf   : > { %s8216_s6 = scalar_select %p157_p7, %s8108_s20, %s159_s27  }
  0x10   : > { %s11419_s30 = scalar_select %p8210_p8, 1, 0 }
  0x11   : > { %p8218_p10 = pnand %p6140_p6, %p183_p9  ;;  %p8222_p11 = scmp.eq.s32.totalorder %s6138_s24, 0 }
  0x12   : > { %s8122_s9 = smov [#allocation6]   ;;  %s8123_s12 = smov [#allocation9]  }
  0x13   : > { %p7510_p12 = pneg %p8218_p10  ;;  %s205_s10 = sshll.u32 %s8122_s9, 4  ;;  %s206_s10 = int_to_ptr.vmem [resolvable:$true] %s205_s10 }
  0x14   : > { %s222_s13 = sshll.u32 %s8123_s12, 4  ;;  %s7995_s14 = scalar_lea.vmem %s206_s10, 9216  ;;  %s223_s13 = int_to_ptr.vmem [resolvable:$true] %s222_s13 }
  0x15   : > { %p8230_p13 = pnand %p8222_p11, %p7510_p12  ;;  %p7996_p1 = scmp.ne.s32.totalorder %s206_s10, %s7995_s14 }
  0x16   : > { %p8003_p5 = scmp.lt.s32.totalorder %s206_s10, %s206_s10  ;;  %p8004_p6 = scmp.lt.s32.totalorder %s7995_s14, %s7995_s14 }
  0x17   : > { %p7986_p0 = pneg %p8230_p13 }
  0x18   : > { %p8005_p7 = por %p8004_p6, %p8003_p5 }
  0x19   : > { %p7998_p2 = pnand %p7996_p1, %p7986_p0 }
  0x1b   : > { %p7999_p3 = pneg %p7998_p2 }
  0x1d   : > { %p8006_p9 = pnand %p8005_p7, %p7999_p3 }
  0x1f   : > { %8009 = shalt.err (!%p8006_p9)
}
  0x20   : > { %s8124_s15 = smov 192   ;;  %s8125_s16 = smov 12  }
  0x21   : > { %7513 = dma.hbm_to_vmem [thread:$0]  (!%p8230_p13), %s11396_s3, 9216, %s206_s10, [#allocation7], %s8124_s15, %s8124_s15, %s8125_s16  }
  0x22   : > { %s8021_s25 = scalar_lea.vmem %s223_s13, 9216  ;;  %p8029_p8 = scmp.lt.s32.totalorder %s223_s13, %s223_s13 }
  0x23   : > { %p8022_p12 = scmp.ne.s32.totalorder %s223_s13, %s8021_s25  ;;  %p8030_p4 = scmp.lt.s32.totalorder %s8021_s25, %s8021_s25 }
  0x25   : > { %p8024_p1 = pnand %p8022_p12, %p7986_p0  ;;  %p8031_p5 = por %p8030_p4, %p8029_p8 }
  0x27   : > { %p8025_p2 = pneg %p8024_p1 }
  0x29   : > { %p8032_p3 = pnand %p8031_p5, %p8025_p2 }
  0x2b   : > { %8035 = shalt.err (!%p8032_p3)
}
  0x2c   : > { %7516 = dma.hbm_to_vmem [thread:$0]  (!%p8230_p13), %s11397_s4, 9216, %s223_s13, [#allocation10], %s8124_s15, %s8124_s15, %s8125_s16  }
  0x2d   : > { %245 = sbr.rel (%p8218_p10) target bundleno = 1826 (0x722), region = 40 }
  0x32   : > { %8087 = dma.done.wait (%p8222_p11), [#allocation7], 9216  }
  0x33   : > { %8089 = vsyncadd (%p8222_p11), [#allocation7], 4294958080 }
  0x34   : > { %8091 = dma.done.wait (%p8222_p11), [#allocation10], 9216  }
  0x35   : > { %8093 = vsyncadd (%p8222_p11), [#allocation10], 4294958080  ;;  %v11402_v0 = vmov 3   ;;  %v8267_v1 = vld [vmem:[%s11394_s1 + $0xf8] sm:$0xff]  ;;  %vm1599_vm0 = vcmask 31744   ;;  %v8272_v2 = vld [vmem:[%s11394_s1 + $0xf0] sm:$0xff] }
  0x36   : > { %7584 = vset.pattern.permute.xlu0 %v11402_v0  ;;  %7585 = vset.pattern.permute.xlu1 %v11402_v0  ;;  %v8277_v3 = vld [vmem:[%s11394_s1 + $0x78] sm:$0xff]  ;;  %v1582_v4 = vmul.f32 %v8267_v1, %v8267_v1  ;;  %v1581_v5 = vmul.f32 %v8272_v2, %v8272_v2  ;;  %v8288_v7 = vld [vmem:[%s11394_s1 + $0x70] sm:$0xff]  ;;  %v8295_v9 = vld [vmem:[%s11394_s1 + $0xe0] sm:$0xff]  ;;  %p275_p4 = scmp.lt.s32.totalorder %s8112_s21, 1  ;;  %vm1745_vm1 = vcmask 1043456   ;;  %vm8131_vm2 = vmmov 0  }
  0x37   : > { %v1566_v6 = vmul.f32 %v8277_v3, %v8277_v3  ;;  %v1565_v8 = vmul.f32 %v8288_v7, %v8288_v7  ;;  %v8300_v10 = vld [vmem:[%s11394_s1 + $0xe8] sm:$0xff]  ;;  %v1579_v15 = vmul.f32 %v8295_v9, %v8295_v9  ;;  %v8318_v18 = vld [vmem:[%s11394_s1 + $0x60] sm:$0xff]  ;;  %v8329_v23 = vld [vmem:[%s11394_s1 + $0xd0] sm:$0xff]  ;;  %s273_s16 = sand.u32 1, %s8104_s19   ;;  %s6436_s17 = sshll.u32 %s8112_s21, 4 }
  0x38   : > { %v1693_v11 = vsel %vm1599_vm0, %v1582_v4, 0.0  ;;  %v1690_v12 = vsel %vm1599_vm0, %v1581_v5, 0.0  ;;  %v1580_v16 = vmul.f32 %v8300_v10, %v8300_v10  ;;  %v8313_v17 = vld [vmem:[%s11394_s1 + $0x68] sm:$0xff]  ;;  %v1563_v22 = vmul.f32 %v8318_v18, %v8318_v18  ;;  %v8334_v24 = vld [vmem:[%s11394_s1 + $0xd8] sm:$0xff]  ;;  %v8350_v30 = vld [vmem:[%s11394_s1 + $0x50] sm:$0xff]  ;;  %s276_s29 = scalar_select %p275_p4, %s8112_s21, 1 }
  0x39   : > { %1694 = vadd.xlane.f32.xlu0 %v1693_v11  ;;  %1691 = vadd.xlane.f32.xlu1 %v1690_v12  ;;  %v1645_v13 = vsel %vm1599_vm0, %v1566_v6, 0.0  ;;  %v1642_v14 = vsel %vm1599_vm0, %v1565_v8, 0.0  ;;  %v1684_v19 = vsel %vm1599_vm0, %v1579_v15, 0.0  ;;  %v1564_v21 = vmul.f32 %v8313_v17, %v8313_v17  ;;  %v8345_v29 = vld [vmem:[%s11394_s1 + $0x58] sm:$0xff]  ;;  %v8355_v31 = vld [vmem:[%s11394_s1 + $0xc8] sm:$0xff]  ;;  %v8360_v32 = vld [vmem:[%s11394_s1 + $0xc0] sm:$0xff]  ;;  %s6043_s9 = scalar_lea.hbm %s11398_s5, %s6436_s17 }
  0x3a   : > { %v1687_v20 = vsel %vm1599_vm0, %v1580_v16, 0.0  ;;  %v1577_v25 = vmul.f32 %v8329_v23, %v8329_v23  ;;  %v1636_v27 = vsel %vm1599_vm0, %v1563_v22, 0.0  ;;  %v1578_v28 = vmul.f32 %v8334_v24, %v8334_v24  ;;  %v8365_v33 = vld [vmem:[%s11394_s1 + $0x48] sm:$0xff]  ;;  %v8373_v36 = vld [vmem:[%s11394_s1 + $0x40] sm:$0xff]  ;;  %v8390_v44 = vld [vmem:[%s11394_s1 + $0xb8] sm:$0xff]  ;;  %s6147_s10 = sshll.u32 %s276_s29, 2 }
  0x3b   : > { %v1639_v26 = vsel %vm1599_vm0, %v1564_v21, 0.0  ;;  %v1562_v35 = vmul.f32 %v8345_v29, %v8345_v29  ;;  %v1561_v38 = vmul.f32 %v8350_v30, %v8350_v30  ;;  %v1576_v39 = vmul.f32 %v8355_v31, %v8355_v31  ;;  %v8399_v49 = vld [vmem:[%s11394_s1 + $0x170] sm:$0xff]  ;;  %v8410_v54 = vld [vmem:[%s11394_s1 + $0x178] sm:$0xff]  ;;  %v8426_v58 = vld [vmem:[%s11394_s1 + $0xa8] sm:$0xff]  ;;  %s278_s14 = scalar_lea.vmem %s11393_s0, %s6147_s10  ;;  %s274_s24 = scalar_lea.vmem [#allocation11], %s273_s16 }
  0x3c   : > { %v1678_v34 = vsel %vm1599_vm0, %v1577_v25, 0.0  ;;  %v1681_v37 = vsel %vm1599_vm0, %v1578_v28, 0.0  ;;  %v1575_v40 = vmul.f32 %v8360_v32, %v8360_v32  ;;  %v1560_v41 = vmul.f32 %v8365_v33, %v8365_v33  ;;  %v8415_v55 = vld [vmem:[%s11394_s1 + $0x38] sm:$0xff]  ;;  %v8421_v57 = vld [vmem:[%s11394_s1 + $0xb0] sm:$0xff]  ;;  %v8446_v6 = vld [vmem:[%s11394_s1 + $0x28] sm:$0xff]  ;;  %s6045_s25 = sshll.u32 %s274_s24, 4  ;;  %s6046_s25 = int_to_ptr.vmem [resolvable:$true] %s6045_s25 }
  0x3d   : > { %1646 = vadd.xlane.f32.xlu0 %v1645_v13  ;;  %1643 = vadd.xlane.f32.xlu1 %v1642_v14  ;;  %v1633_v42 = vsel %vm1599_vm0, %v1562_v35, 0.0  ;;  %v1559_v43 = vmul.f32 %v8373_v36, %v8373_v36  ;;  %v1630_v45 = vsel %vm1599_vm0, %v1561_v38, 0.0  ;;  %v1675_v46 = vsel %vm1599_vm0, %v1576_v39, 0.0  ;;  %v8435_v61 = vld [vmem:[%s11394_s1 + $0x30] sm:$0xff]  ;;  %v8451_v8 = vld [vmem:[%s11394_s1 + $0x160] sm:$0xff]  ;;  %v8462_v15 = vld [vmem:[%s11394_s1 + $0x98] sm:$0xff] }
  0x3e   : > { %v1672_v47 = vsel %vm1599_vm0, %v1575_v40, 0.0  ;;  %v1627_v48 = vsel %vm1599_vm0, %v1560_v41, 0.0  ;;  %v1574_v51 = vmul.f32 %v8390_v44, %v8390_v44  ;;  %v1597_v53 = vmul.f32 %v8399_v49, %v8399_v49  ;;  %v8467_v16 = vld [vmem:[%s11394_s1 + $0x168] sm:$0xff]  ;;  %v8499_v38 = vld [vmem:[%s11394_s1 + $0x20] sm:$0xff]  ;;  %s6033_s7 = scalar_lea.sflag [#allocation8], %s273_s16  ;;  %s8036_s10 = scalar_lea.vmem %s6046_s25, 16 }
  0x3f   : > { %v1624_v50 = vsel %vm1599_vm0, %v1559_v43, 0.0  ;;  %v1598_v59 = vmul.f32 %v8410_v54, %v8410_v54  ;;  %v1558_v60 = vmul.f32 %v8415_v55, %v8415_v55  ;;  %v1573_v4 = vmul.f32 %v8421_v57, %v8421_v57  ;;  %v8506_v40 = vld [vmem:[%s11394_s1 + $0x8] sm:$0xff]  ;;  %p8037_p8 = scmp.ne.s32.totalorder %s6046_s25, %s8036_s10  ;;  %p12009_p10 = scmp.ne.s32.totalorder %s11418_s28, 0 }
  0x40   : > { %v1669_v52 = vsel %vm1599_vm0, %v1574_v51, 0.0  ;;  %v1738_v56 = vsel %vm1599_vm0, %v1597_v53, 0.0  ;;  %v1572_v5 = vmul.f32 %v8426_v58, %v8426_v58  ;;  %v1557_v13 = vmul.f32 %v8435_v61, %v8435_v61  ;;  %s8132_s21 = smov [#allocation11]  }
  0x41   : > { %1685 = vadd.xlane.f32.xlu0 %v1684_v19  ;;  %1688 = vadd.xlane.f32.xlu1 %v1687_v20  ;;  %v1741_v62 = vsel %vm1599_vm0, %v1598_v59, 0.0  ;;  %v1621_v63 = vsel %vm1599_vm0, %v1558_v60, 0.0  ;;  %v1666_v11 = vsel %vm1599_vm0, %v1573_v4, 0.0  ;;  %v1556_v14 = vmul.f32 %v8446_v6, %v8446_v6  ;;  %v8472_v19 = vld [vmem:[%s11394_s1 + $0x18] sm:$0xff]  ;;  %v8535_v59 = vld [vmem:[%s11394_s1 + $0x90] sm:$0xff]  ;;  %p8038_p11 = pnand %p8037_p8, %p12009_p10  ;;  %s8040_s11 = sshll.u32 %s8132_s21, 4  ;;  %s8041_s11 = int_to_ptr.vmem [resolvable:$false] %s8040_s11 }
  0x42   : > { %v1663_v12 = vsel %vm1599_vm0, %v1572_v5, 0.0  ;;  %v1618_v20 = vsel %vm1599_vm0, %v1557_v13, 0.0  ;;  %v1595_v22 = vmul.f32 %v8451_v8, %v8451_v8  ;;  %v1570_v25 = vmul.f32 %v8462_v15, %v8462_v15  ;;  %s8042_s12 = scalar_lea.vmem %s8041_s11, 32  ;;  %p8043_p0 = scmp.lt.s32.totalorder %s6046_s25, %s8041_s11 }
  0x43   : > { %v1615_v21 = vsel %vm1599_vm0, %v1556_v14, 0.0  ;;  %v1596_v35 = vmul.f32 %v8467_v16, %v8467_v16  ;;  %v1569_v5 = vmul.f32 %v8535_v59, %v8535_v59  ;;  %v8559_v14 = vld [vmem:[%s11394_s1 + $0x148] sm:$0xff]  ;;  %p8039_p13 = pneg %p8038_p11  ;;  %p8044_p6 = scmp.lt.s32.totalorder %s8042_s12, %s8036_s10 }
  0x44   : > { %v1732_v28 = vsel %vm1599_vm0, %v1595_v22, 0.0 }
  0x45   : > { %1640 = vadd.xlane.f32.xlu0 %v1639_v26  ;;  %1637 = vadd.xlane.f32.xlu1 %v1636_v27  ;;  %v8483_v26 = vld [vmem:[%s11394_s1 + $0xa0] sm:$0xff]  ;;  %v8488_v27 = vld [vmem:[%s11394_s1 + $0x88] sm:$0xff]  ;;  %v1735_v41 = vsel %vm1599_vm0, %v1596_v35, 0.0  ;;  %p8045_p7 = por %p8044_p6, %p8043_p0 }
  0x46   : > { %v1571_v39 = vmul.f32 %v8483_v26, %v8483_v26  ;;  %v1568_v43 = vmul.f32 %v8488_v27, %v8488_v27 }
  0x47   : > { %p8046_p9 = pnand %p8045_p7, %p8039_p13 }
  0x49   : > { %1679 = vadd.xlane.f32.xlu0 %v1678_v34  ;;  %1682 = vadd.xlane.f32.xlu1 %v1681_v37  ;;  %v1657_v34 = vsel %vm1599_vm0, %v1570_v25, 0.0  ;;  %v1554_v37 = vmul.f32 %v8472_v19, %v8472_v19  ;;  %v1592_v25 = vmul.f32 %v8559_v14, %v8559_v14 }
  0x4d   : > { %1634 = vadd.xlane.f32.xlu0 %v1633_v42  ;;  %1631 = vadd.xlane.f32.xlu1 %v1630_v45  ;;  %v1609_v42 = vsel %vm1599_vm0, %v1554_v37, 0.0  ;;  %v1660_v45 = vsel %vm1599_vm0, %v1571_v39, 0.0  ;;  %v8579_v37 = vld [vmem:[%s11394_s1] sm:$0xff] }
  0x51   : > { %1676 = vadd.xlane.f32.xlu0 %v1675_v46  ;;  %1673 = vadd.xlane.f32.xlu1 %v1672_v47  ;;  %v1555_v46 = vmul.f32 %v8499_v38, %v8499_v38  ;;  %v8518_v47 = vld [vmem:[%s11394_s1 + $0x150] sm:$0xff] }
  0x53   : > { %v1612_v51 = vsel %vm1599_vm0, %v1555_v46, 0.0  ;;  %v8597_v46 = vld [vmem:[%s11394_s1 + $0x138] sm:$0xff] }
  0x55   : > { %1628 = vadd.xlane.f32.xlu0 %v1627_v48  ;;  %1625 = vadd.xlane.f32.xlu1 %v1624_v50  ;;  %v1651_v48 = vsel %vm1599_vm0, %v1568_v43, 0.0  ;;  %v1552_v50 = vmul.f32 %v8506_v40, %v8506_v40 }
  0x57   : > { %v1603_v53 = vsel %vm1599_vm0, %v1552_v50, 0.0  ;;  %v1590_v50 = vmul.f32 %v8597_v46, %v8597_v46 }
  0x59   : > { %1670 = vadd.xlane.f32.xlu0 %v1669_v52  ;;  %1739 = vadd.xlane.f32.xlu1 %v1738_v56  ;;  %v8527_v52 = vld [vmem:[%s11394_s1 + $0x158] sm:$0xff]  ;;  %v1593_v56 = vmul.f32 %v8518_v47, %v8518_v47 }
  0x5b   : > { %v1726_v60 = vsel %vm1599_vm0, %v1593_v56, 0.0  ;;  %v11400_v56 = vmov 0  }
  0x5d   : > { %1742 = vadd.xlane.f32.xlu1 %v1741_v62  ;;  %1622 = vadd.xlane.f32.xlu0 %v1621_v63  ;;  %v1594_v62 = vmul.f32 %v8527_v52, %v8527_v52  ;;  %v8543_v63 = vld [vmem:[%s11394_s1 + $0x10] sm:$0xff] }
  0x5e   : > { %v1553_v13 = vmul.f32 %v8543_v63, %v8543_v63 }
  0x5f   : > { %v1729_v4 = vsel %vm1599_vm0, %v1594_v62, 0.0 }
  0x61   : > { %1667 = vadd.xlane.f32.xlu1 %v1666_v11  ;;  %1664 = vadd.xlane.f32.xlu0 %v1663_v12  ;;  %v8551_v11 = vld [vmem:[%s11394_s1 + $0x140] sm:$0xff]  ;;  %v1654_v12 = vsel %vm1599_vm0, %v1569_v5, 0.0 }
  0x65   : > { %1619 = vadd.xlane.f32.xlu1 %v1618_v20  ;;  %1616 = vadd.xlane.f32.xlu0 %v1615_v21  ;;  %v1606_v20 = vsel %vm1599_vm0, %v1553_v13, 0.0  ;;  %v1591_v21 = vmul.f32 %v8551_v11, %v8551_v11 }
  0x67   : > { %v1720_v22 = vsel %vm1599_vm0, %v1591_v21, 0.0  ;;  %v8648_v21 = vld [vmem:[%s11394_s1 + $0x110] sm:$0xff] }
  0x69   : > { %1733 = vadd.xlane.f32.xlu1 %v1732_v28  ;;  %1658 = vadd.xlane.f32.xlu0 %v1657_v34  ;;  %v8570_v28 = vld [vmem:[%s11394_s1 + $0x80] sm:$0xff]  ;;  %v1723_v34 = vsel %vm1599_vm0, %v1592_v25, 0.0 }
  0x6a   : > { %v1567_v35 = vmul.f32 %v8570_v28, %v8570_v28 }
  0x6c   : > { %v1648_v39 = vsel %vm1599_vm0, %v1567_v35, 0.0 }
  0x6d   : > { %1736 = vadd.xlane.f32.xlu1 %v1735_v41  ;;  %1610 = vadd.xlane.f32.xlu0 %v1609_v42  ;;  %v1551_v41 = vmul.f32 %v8579_v37, %v8579_v37  ;;  %v8588_v42 = vld [vmem:[%s11394_s1 + $0x130] sm:$0xff] }
  0x6f   : > { %v1600_v43 = vsel %vm1599_vm0, %v1551_v41, 0.0 }
  0x71   : > { %1661 = vadd.xlane.f32.xlu1 %v1660_v45  ;;  %1652 = vadd.xlane.f32.xlu0 %v1651_v48  ;;  %v1589_v45 = vmul.f32 %v8588_v42, %v8588_v42 }
  0x73   : > { %v1714_v48 = vsel %vm1599_vm0, %v1589_v45, 0.0 }
  0x75   : > { %1613 = vadd.xlane.f32.xlu1 %v1612_v51  ;;  %1604 = vadd.xlane.f32.xlu0 %v1603_v53  ;;  %v1717_v51 = vsel %vm1599_vm0, %v1590_v50, 0.0 }
  0x79   : > { %1727 = vadd.xlane.f32.xlu1 %v1726_v60 }
  0x7d   : > { %1730 = vadd.xlane.f32.xlu1 %v1729_v4 }
  0x81   : > { %1655 = vadd.xlane.f32.xlu1 %v1654_v12  ;;  %v8638_v12 = vld [vmem:[%s11394_s1 + $0x128] sm:$0xff] }
  0x85   : > { %1607 = vadd.xlane.f32.xlu1 %v1606_v20  ;;  %v1588_v20 = vmul.f32 %v8638_v12, %v8638_v12 }
  0x87   : > { %v1711_v25 = vsel %vm1599_vm0, %v1588_v20, 0.0 }
  0x89   : > { %1721 = vadd.xlane.f32.xlu1 %v1720_v22 }
  0x8b   : > { %1368 = vperm.xlu0 %7584, %v8334_v24  }
  0x8d   : > { %1724 = vadd.xlane.f32.xlu1 %v1723_v34  ;;  %v1585_v34 = vmul.f32 %v8648_v21, %v8648_v21 }
  0x8f   : > { %1300 = vperm.xlu0 %7584, %v8350_v30  }
  0x91   : > { %1649 = vadd.xlane.f32.xlu1 %v1648_v39  ;;  %v1702_v39 = vsel %vm1599_vm0, %v1585_v34, 0.0 }
  0x93   : > { %1292 = vperm.xlu0 %7584, %v8373_v36  }
  0x95   : > { %1601 = vadd.xlane.f32.xlu1 %v1600_v43 }
  0x97   : > { %1448 = vperm.xlu0 %7584, %v8410_v54  }
  0x99   : > { %1715 = vadd.xlane.f32.xlu1 %v1714_v48 }
  0x9b   : > { %1352 = vperm.xlu0 %7584, %v8390_v44  }
  0x9d   : > { %1718 = vadd.xlane.f32.xlu1 %v1717_v51 }
  0x9f   : > { %1284 = vperm.xlu0 %7584, %v8435_v61  }
  0xa3   : > { %1440 = vperm.xlu0 %7584, %v8467_v16  }
  0xa7   : > { %1276 = vperm.xlu0 %7584, %v8499_v38  }
  0xab   : > { %1432 = vperm.xlu0 %7584, %v8527_v52  }
  0xae   : > { %1380 = vperm.xlu1 %7585, %v8272_v2  }
  0xaf   : > { %1336 = vperm.xlu0 %7584, %v8462_v15  }
  0xb2   : > { %1384 = vperm.xlu1 %7585, %v8267_v1  }
  0xb3   : > { %1268 = vperm.xlu0 %7584, %v8543_v63  }
  0xb6   : > { %1316 = vperm.xlu1 %7585, %v8288_v7  }
  0xb7   : > { %1424 = vperm.xlu0 %7584, %v8559_v14  }
  0xba   : > { %1320 = vperm.xlu1 %7585, %v8277_v3  }
  0xbb   : > { %1260 = vperm.xlu0 %7584, %v8579_v37  }
  0xbe   : > { %1372 = vperm.xlu1 %7585, %v8295_v9  }
  0xbf   : > { %1416 = vperm.xlu0 %7584, %v8597_v46  }
  0xc2   : > { %v8619_v53 = vpop.xlane.xlu1 %1691  ;;  %1376 = vperm.xlu1 %7585, %v8300_v10  }
  0xc3   : > { %7588 = vset.pattern.permute.xlu0 %v11400_v56 }
  0xc6   : > { %v8623_v60 = vpop.xlane.xlu1 %1643  ;;  %1308 = vperm.xlu1 %7585, %v8318_v18  }
  0xca   : > { %v8626_v62 = vpop.xlane.xlu1 %1688  ;;  %1312 = vperm.xlu1 %7585, %v8313_v17  }
  0xce   : > { %v8629_v4 = vpop.xlane.xlu1 %1637  ;;  %1364 = vperm.xlu1 %7585, %v8329_v23  }
  0xd2   : > { %v8632_v5 = vpop.xlane.xlu1 %1682  ;;  %1304 = vperm.xlu1 %7585, %v8345_v29  }
  0xd6   : > { %v8640_v13 = vpop.xlane.xlu1 %1631  ;;  %1356 = vperm.xlu1 %7585, %v8360_v32  }
  0xda   : > { %v8650_v22 = vpop.xlane.xlu1 %1673  ;;  %1360 = vperm.xlu1 %7585, %v8355_v31  }
  0xde   : > { %v8656_v35 = vpop.xlane.xlu1 %1625  ;;  %1712 = vadd.xlane.f32.xlu0 %v1711_v25  ;;  %1296 = vperm.xlu1 %7585, %v8365_v33  }
  0xe2   : > { %v8660_v41 = vpop.xlane.xlu1 %1739  ;;  %1703 = vadd.xlane.f32.xlu0 %v1702_v39  ;;  %1444 = vperm.xlu1 %7585, %v8399_v49  }
  0xe3   : > { %11423 = vst [vmem:[#allocation15_spill] sm:$0xff] %v8660_v41 }
  0xe6   : > { %v8663_v43 = vpop.xlane.xlu1 %1742  ;;  %1348 = vperm.xlu1 %7585, %v8421_v57  }
  0xe7   : > { %11424 = vst [vmem:[#allocation16_spill] sm:$0xff] %v8663_v43 }
  0xea   : > { %v8666_v45 = vpop.xlane.xlu1 %1667  ;;  %1288 = vperm.xlu1 %7585, %v8415_v55  }
  0xeb   : > { %11425 = vst [vmem:[#allocation17_spill] sm:$0xff] %v8666_v45 }
  0xee   : > { %v8669_v48 = vpop.xlane.xlu1 %1619  ;;  %1436 = vperm.xlu1 %7585, %v8451_v8  }
  0xef   : > { %11426 = vst [vmem:[#allocation18_spill] sm:$0xff] %v8669_v48 }
  0xf2   : > { %v8672_v50 = vpop.xlane.xlu1 %1733  ;;  %1340 = vperm.xlu1 %7585, %v8483_v26  }
  0xf3   : > { %11427 = vst [vmem:[#allocation19_spill] sm:$0xff] %v8672_v50  ;;  %v8746_v50 = vld [vmem:[%s11394_s1 + $0x120] sm:$0xff] }
  0xf6   : > { %v8675_v51 = vpop.xlane.xlu1 %1736  ;;  %1344 = vperm.xlu1 %7585, %v8426_v58  }
  0xf7   : > { %11428 = vst [vmem:[#allocation20_spill] sm:$0xff] %v8675_v51 }
  0xf8   : > { %487 = vperm.xlu0 %7588, %v8272_v2  }
  0xfa   : > { %v8679_v20 = vpop.xlane.xlu1 %1661  ;;  %1280 = vperm.xlu1 %7585, %v8446_v6  }
  0xfb   : > { %11429 = vst [vmem:[#allocation21_spill] sm:$0xff] %v8679_v20 }
  0xfc   : > { %492 = vperm.xlu0 %7588, %v8267_v1  }
  0xfe   : > { %v8683_v25 = vpop.xlane.xlu1 %1613  ;;  %1428 = vperm.xlu1 %7585, %v8518_v47  }
  0xff   : > { %11430 = vst [vmem:[#allocation22_spill] sm:$0xff] %v8683_v25  ;;  %v11404_v25 = vmov 1  }
 0x100   : > { %407 = vperm.xlu0 %7588, %v8288_v7  }
 0x102   : > { %v8687_v34 = vpop.xlane.xlu1 %1727  ;;  %1332 = vperm.xlu1 %7585, %v8535_v59  }
 0x103   : > { %11431 = vst [vmem:[#allocation23_spill] sm:$0xff] %v8687_v34 }
 0x104   : > { %477 = vperm.xlu0 %7588, %v8295_v9  }
 0x106   : > { %v8691_v39 = vpop.xlane.xlu1 %1730  ;;  %1272 = vperm.xlu1 %7585, %v8472_v19  }
 0x107   : > { %11432 = vst [vmem:[#allocation24_spill] sm:$0xff] %v8691_v39 }
 0x108   : > { %387 = vperm.xlu0 %7588, %v8350_v30  }
 0x10a   : > { %v8695_v56 = vpop.xlane.xlu1 %1655  ;;  %1420 = vperm.xlu1 %7585, %v8551_v11  }
 0x10b   : > { %11433 = vst [vmem:[#allocation25_spill] sm:$0xff] %v8695_v56 }
 0x10c   : > { %567 = vperm.xlu0 %7588, %v8399_v49  }
 0x10e   : > { %v8699_v0 = vpop.xlane.xlu1 %1607  ;;  %1324 = vperm.xlu1 %7585, %v8570_v28  }
 0x10f   : > { %11434 = vst [vmem:[#allocation26_spill] sm:$0xff] %v8699_v0 }
 0x110   : > { %367 = vperm.xlu0 %7588, %v8435_v61  }
 0x112   : > { %v8703_v34 = vpop.xlane.xlu1 %1721  ;;  %1328 = vperm.xlu1 %7585, %v8488_v27  }
 0x113   : > { %11435 = vst [vmem:[#allocation27_spill] sm:$0xff] %v8703_v34 }
 0x114   : > { %562 = vperm.xlu0 %7588, %v8467_v16  }
 0x116   : > { %v8707_v39 = vpop.xlane.xlu1 %1724  ;;  %1264 = vperm.xlu1 %7585, %v8506_v40  }
 0x117   : > { %11436 = vst [vmem:[#allocation28_spill] sm:$0xff] %v8707_v39 }
 0x118   : > { %547 = vperm.xlu0 %7588, %v8518_v47  }
 0x11a   : > { %v8711_v56 = vpop.xlane.xlu1 %1649  ;;  %1412 = vperm.xlu1 %7585, %v8588_v42  }
 0x11b   : > { %11437 = vst [vmem:[#allocation29_spill] sm:$0xff] %v8711_v56  ;;  %v8728_v56 = vld [vmem:[%s11394_s1 + $0x100] sm:$0xff] }
 0x11c   : > { %347 = vperm.xlu0 %7588, %v8543_v63  }
 0x11e   : > { %v8715_v0 = vpop.xlane.xlu1 %1601  ;;  %7586 = vset.pattern.permute.xlu1 %v11404_v25  ;;  %v8733_v25 = vpop.xlane.xlu0 %1694 }
 0x11f   : > { %11438 = vst [vmem:[#allocation30_spill] sm:$0xff] %v8715_v0 }
 0x120   : > { %542 = vperm.xlu0 %7588, %v8559_v14  }
 0x122   : > { %v8719_v34 = vpop.xlane.xlu1 %1715  ;;  %v8741_v51 = vpop.xlane.xlu0 %1646 }
 0x123   : > { %11439 = vst [vmem:[#allocation31_spill] sm:$0xff] %v8719_v34  ;;  %v11443_v34 = vmov 1  }
 0x124   : > { %527 = vperm.xlu0 %7588, %v8588_v42  }
 0x126   : > { %v8722_v39 = vpop.xlane.xlu1 %1718  ;;  %v8753_v48 = vpop.xlane.xlu0 %1685 }
 0x127   : > { %11440 = vst [vmem:[#allocation32_spill] sm:$0xff] %v8722_v39 }
 0x128   : > { %522 = vperm.xlu0 %7588, %v8638_v12  }
 0x12a   : > { %v8730_v20 = vpop.permute.xlu1 %1380  ;;  %v8760_v45 = vpop.xlane.xlu0 %1640 }
 0x12b   : > { %11441 = vst [vmem:[#allocation33_spill] sm:$0xff] %v8730_v20 }
 0x12c   : > { %497 = vperm.xlu0 %7588, %v8728_v56  }
 0x12e   : > { %v8735_v0 = vpop.permute.xlu1 %1384 }
 0x12f   : > { %11442 = vst [vmem:[#allocation34_spill] sm:$0xff] %v8735_v0  ;;  %v1587_v0 = vmul.f32 %v8746_v50, %v8746_v50 }
 0x130   : > { %7590 = vset.pattern.permute.xlu0 %v11443_v34 }
 0x131   : > { %732 = vperm.xlu0 %7590, %v8288_v7  }
 0x132   : > { %v8739_v39 = vpop.permute.xlu1 %1316 }
 0x133   : > { %11444 = vst [vmem:[#allocation35_spill] sm:$0xff] %v8739_v39  ;;  %v1708_v39 = vsel %vm1599_vm0, %v1587_v0, 0.0 }
 0x135   : > { %720 = vperm.xlu0 %7590, %v8345_v29  }
 0x136   : > { %v8749_v20 = vpop.permute.xlu1 %1320 }
 0x137   : > { %11445 = vst [vmem:[#allocation36_spill] sm:$0xff] %v8749_v20  ;;  %v8765_v20 = vpop.xlane.xlu0 %1679 }
 0x139   : > { %712 = vperm.xlu0 %7590, %v8365_v33  }
 0x13a   : > { %v8756_v7 = vpop.permute.xlu1 %1372 }
 0x13b   : > { %11446 = vst [vmem:[#allocation37_spill] sm:$0xff] %v8756_v7  ;;  %v8771_v7 = vpop.xlane.xlu0 %1634 }
 0x13d   : > { %768 = vperm.xlu0 %7590, %v8390_v44  }
 0x13e   : > { %1709 = vadd.xlane.f32.xlu1 %v1708_v39  ;;  %v8762_v43 = vpop.permute.xlu1 %1376 }
 0x13f   : > { %11447 = vst [vmem:[#allocation38_spill] sm:$0xff] %v8762_v43  ;;  %v8777_v44 = vpop.xlane.xlu0 %1676 }
 0x141   : > { %704 = vperm.xlu0 %7590, %v8415_v55  }
 0x142   : > { %v8767_v41 = vpop.permute.xlu1 %1308 }
 0x143   : > { %11448 = vst [vmem:[#allocation39_spill] sm:$0xff] %v8767_v41  ;;  %v8784_v41 = vpop.xlane.xlu0 %1628 }
 0x145   : > { %756 = vperm.xlu0 %7590, %v8483_v26  }
 0x146   : > { %v8773_v0 = vpop.permute.xlu1 %1312 }
 0x147   : > { %11449 = vst [vmem:[#allocation40_spill] sm:$0xff] %v8773_v0 }
 0x149   : > { %696 = vperm.xlu0 %7590, %v8446_v6  }
 0x14a   : > { %v8779_v39 = vpop.permute.xlu1 %1364 }
 0x14b   : > { %11450 = vst [vmem:[#allocation41_spill] sm:$0xff] %v8779_v39  ;;  %v8796_v39 = vpop.xlane.xlu0 %1670 }
 0x14d   : > { %752 = vperm.xlu0 %7590, %v8462_v15  }
 0x14e   : > { %v8786_v43 = vpop.permute.xlu1 %1304 }
 0x14f   : > { %796 = vperm.xlu1 %7586, %v8272_v2   ;;  %11451 = vst [vmem:[#allocation42_spill] sm:$0xff] %v8786_v43  ;;  %v8793_v2 = vld [vmem:[%s11394_s1 + $0x108] sm:$0xff]  ;;  %v11406_v43 = vmov 2  }
 0x151   : > { %688 = vperm.xlu0 %7590, %v8472_v19  }
 0x153   : > { %800 = vperm.xlu1 %7586, %v8267_v1   ;;  %v8798_v1 = vpop.permute.xlu1 %1356 }
 0x154   : > { %11452 = vst [vmem:[#allocation43_spill] sm:$0xff] %v8798_v1 }
 0x155   : > { %740 = vperm.xlu0 %7590, %v8570_v28  }
 0x157   : > { %736 = vperm.xlu1 %7586, %v8277_v3   ;;  %v8803_v3 = vpop.permute.xlu1 %1360 }
 0x158   : > { %11453 = vst [vmem:[#allocation44_spill] sm:$0xff] %v8803_v3 }
 0x159   : > { %680 = vperm.xlu0 %7590, %v8506_v40  }
 0x15b   : > { %788 = vperm.xlu1 %7586, %v8295_v9   ;;  %v8807_v0 = vpop.permute.xlu1 %1296  ;;  %v8809_v9 = vpop.xlane.xlu0 %1622 }
 0x15c   : > { %11454 = vst [vmem:[#allocation45_spill] sm:$0xff] %v8807_v0 }
 0x15d   : > { %808 = vperm.xlu0 %7590, %v8793_v2  }
 0x15f   : > { %792 = vperm.xlu1 %7586, %v8300_v10   ;;  %v8812_v1 = vpop.permute.xlu1 %1444  ;;  %v8815_v10 = vpop.xlane.xlu0 %1664 }
 0x160   : > { %11455 = vst [vmem:[#allocation46_spill] sm:$0xff] %v8812_v1 }
 0x161   : > { %7593 = vset.pattern.permute.xlu0 %v11406_v43 }
 0x163   : > { %724 = vperm.xlu1 %7586, %v8318_v18   ;;  %v8818_v43 = vpop.permute.xlu1 %1348  ;;  %v1583_v18 = vmul.f32 %v8728_v56, %v8728_v56 }
 0x164   : > { %11456 = vst [vmem:[#allocation47_spill] sm:$0xff] %v8818_v43 }
 0x165   : > { %v1696_v0 = vsel %vm1599_vm0, %v1583_v18, 0.0 }
 0x167   : > { %728 = vperm.xlu1 %7586, %v8313_v17   ;;  %v8822_v17 = vpop.xlane.xlu0 %1616 }
 0x16b   : > { %780 = vperm.xlu1 %7586, %v8329_v23   ;;  %v8826_v23 = vpop.permute.xlu1 %1288 }
 0x16c   : > { %11457 = vst [vmem:[#allocation48_spill] sm:$0xff] %v8826_v23 }
 0x16f   : > { %784 = vperm.xlu1 %7586, %v8334_v24   ;;  %v8829_v24 = vpop.xlane.xlu0 %1658 }
 0x173   : > { %716 = vperm.xlu1 %7586, %v8350_v30   ;;  %v8832_v30 = vpop.permute.xlu1 %1436  ;;  %v8834_v43 = vpop.xlane.xlu0 %1610 }
 0x174   : > { %11458 = vst [vmem:[#allocation49_spill] sm:$0xff] %v8832_v30 }
 0x177   : > { %772 = vperm.xlu1 %7586, %v8360_v32   ;;  %v8837_v1 = vpop.permute.xlu1 %1340  ;;  %v8840_v18 = vpop.xlane.xlu0 %1652 }
 0x178   : > { %11459 = vst [vmem:[#allocation50_spill] sm:$0xff] %v8837_v1 }
 0x17b   : > { %776 = vperm.xlu1 %7586, %v8355_v31   ;;  %v8843_v31 = vpop.permute.xlu1 %1344  ;;  %v8845_v23 = vpop.xlane.xlu0 %1604 }
 0x17c   : > { %1697 = vadd.xlane.f32.xlu0 %v1696_v0  ;;  %11460 = vst [vmem:[#allocation51_spill] sm:$0xff] %v8843_v31  ;;  %v7936_v0 = vld [vmem:[%s11394_s1 + $0xe0] sm:$0xff] }
 0x17f   : > { %708 = vperm.xlu1 %7586, %v8373_v36   ;;  %v7935_v36 = vld [vmem:[%s11394_s1 + $0xf0] sm:$0xff] }
 0x183   : > { %860 = vperm.xlu1 %7586, %v8399_v49   ;;  %v8851_v49 = vpop.permute.xlu1 %1280 }
 0x184   : > { %11461 = vst [vmem:[#allocation52_spill] sm:$0xff] %v8851_v49  ;;  %v8874_v49 = vld [vmem:[%s11394_s1 + $0xd0] sm:$0xff] }
 0x187   : > { %864 = vperm.xlu1 %7586, %v8410_v54   ;;  %v8854_v54 = vpop.permute.xlu0 %1368  ;;  %v8860_v31 = vpop.permute.xlu1 %1428 }
 0x188   : > { %11462 = vst [vmem:[#allocation53_spill] sm:$0xff] %v8860_v31 }
 0x18b   : > { %764 = vperm.xlu1 %7586, %v8421_v57  }
 0x18f   : > { %700 = vperm.xlu1 %7586, %v8435_v61   ;;  %v8862_v61 = vpop.permute.xlu0 %1300 }
 0x192   : > { %1088 = vperm.xlu0 %7593, %v7935_v36   ;;  %v8867_v36 = vld [vmem:[%s11394_s1 + $0x68] sm:$0xff] }
 0x193   : > { %852 = vperm.xlu1 %7586, %v8451_v8  }
 0x196   : > { %1080 = vperm.xlu0 %7593, %v7936_v0   ;;  %v8880_v0 = vpop.permute.xlu0 %1292 }
 0x197   : > { %856 = vperm.xlu1 %7586, %v8467_v16   ;;  %v8877_v16 = vpop.permute.xlu1 %1332  ;;  %11464 = vst [vmem:[#allocation55_spill] sm:$0xff] %v8880_v0 }
 0x198   : > { %11463 = vst [vmem:[#allocation54_spill] sm:$0xff] %v8877_v16 }
 0x19a   : > { %1020 = vperm.xlu0 %7593, %v8867_v36  }
 0x19b   : > { %760 = vperm.xlu1 %7586, %v8426_v58   ;;  %v8884_v31 = vpop.permute.xlu1 %1272  ;;  %v8886_v58 = vpop.permute.xlu0 %1448 }
 0x19c   : > { %11465 = vst [vmem:[#allocation56_spill] sm:$0xff] %v8884_v31  ;;  %11466 = vst [vmem:[#allocation57_spill] sm:$0xff] %v8886_v58  ;;  %v11485_v31 = vmov 3  }
 0x19e   : > { %1072 = vperm.xlu0 %7593, %v8874_v49  }
 0x19f   : > { %692 = vperm.xlu1 %7586, %v8499_v38   ;;  %v8891_v1 = vpop.permute.xlu1 %1420  ;;  %v8894_v16 = vpop.permute.xlu0 %1352 }
 0x1a0   : > { %11467 = vst [vmem:[#allocation58_spill] sm:$0xff] %v8891_v1  ;;  %11468 = vst [vmem:[#allocation59_spill] sm:$0xff] %v8894_v16  ;;  %v9071_v16 = vld [vmem:[%s11394_s1 + $0x178] sm:$0xff] }
 0x1a2   : > { %1012 = vperm.xlu0 %7593, %v8345_v29  }
 0x1a3   : > { %844 = vperm.xlu1 %7586, %v8518_v47   ;;  %v8898_v29 = vpop.permute.xlu1 %1324  ;;  %v8900_v47 = vpop.permute.xlu0 %1284 }
 0x1a4   : > { %11469 = vst [vmem:[#allocation60_spill] sm:$0xff] %v8898_v29  ;;  %11470 = vst [vmem:[#allocation61_spill] sm:$0xff] %v8900_v47  ;;  %v8947_v29 = vld [vmem:[%s11394_s1 + $0x118] sm:$0xff] }
 0x1a5   : > { %11482 = vst [vmem:[#allocation73_spill] sm:$0xff] %v8947_v29 }
 0x1a6   : > { %1064 = vperm.xlu0 %7593, %v8360_v32  }
 0x1a7   : > { %848 = vperm.xlu1 %7586, %v8527_v52   ;;  %v8905_v32 = vpop.permute.xlu1 %1328 }
 0x1a8   : > { %11471 = vst [vmem:[#allocation62_spill] sm:$0xff] %v8905_v32 }
 0x1aa   : > { %1004 = vperm.xlu0 %7593, %v8365_v33   ;;  %v8908_v33 = vpop.permute.xlu0 %1440 }
 0x1ab   : > { %748 = vperm.xlu1 %7586, %v8535_v59   ;;  %11472 = vst [vmem:[#allocation63_spill] sm:$0xff] %v8908_v33 }
 0x1ae   : > { %1056 = vperm.xlu0 %7593, %v8421_v57   ;;  %v8912_v57 = vpop.permute.xlu1 %1264 }
 0x1af   : > { %684 = vperm.xlu1 %7586, %v8543_v63   ;;  %11473 = vst [vmem:[#allocation64_spill] sm:$0xff] %v8912_v57  ;;  %v8914_v63 = vpop.permute.xlu0 %1276 }
 0x1b0   : > { %11474 = vst [vmem:[#allocation65_spill] sm:$0xff] %v8914_v63 }
 0x1b2   : > { %996 = vperm.xlu0 %7593, %v8415_v55   ;;  %v8919_v55 = vpop.permute.xlu1 %1412 }
 0x1b3   : > { %836 = vperm.xlu1 %7586, %v8551_v11   ;;  %11475 = vst [vmem:[#allocation66_spill] sm:$0xff] %v8919_v55 }
 0x1b6   : > { %1048 = vperm.xlu0 %7593, %v8483_v26  }
 0x1b7   : > { %840 = vperm.xlu1 %7586, %v8559_v14   ;;  %v8922_v14 = vpop.permute.xlu0 %1432 }
 0x1b8   : > { %11476 = vst [vmem:[#allocation67_spill] sm:$0xff] %v8922_v14 }
 0x1ba   : > { %988 = vperm.xlu0 %7593, %v8446_v6  }
 0x1bb   : > { %744 = vperm.xlu1 %7586, %v8488_v27   ;;  %v8928_v57 = vpop.permute.xlu0 %1336 }
 0x1bc   : > { %11478 = vst [vmem:[#allocation69_spill] sm:$0xff] %v8928_v57 }
 0x1be   : > { %1040 = vperm.xlu0 %7593, %v8535_v59  }
 0x1bf   : > { %676 = vperm.xlu1 %7586, %v8579_v37   ;;  %v8938_v55 = vpop.permute.xlu0 %1268 }
 0x1c0   : > { %11480 = vst [vmem:[#allocation71_spill] sm:$0xff] %v8938_v55 }
 0x1c2   : > { %980 = vperm.xlu0 %7593, %v8472_v19  }
 0x1c3   : > { %828 = vperm.xlu1 %7586, %v8588_v42   ;;  %v8949_v1 = vpop.permute.xlu0 %1424 }
 0x1c4   : > { %11483 = vst [vmem:[#allocation74_spill] sm:$0xff] %v8949_v1  ;;  %v11489_v1 = vmov 0  }
 0x1c6   : > { %1032 = vperm.xlu0 %7593, %v8570_v28  }
 0x1c7   : > { %832 = vperm.xlu1 %7586, %v8597_v46   ;;  %v8926_v6 = vpop.xlane.xlu1 %1709 }
 0x1c8   : > { %11477 = vst [vmem:[#allocation68_spill] sm:$0xff] %v8926_v6 }
 0x1ca   : > { %972 = vperm.xlu0 %7593, %v8506_v40  }
 0x1cb   : > { %820 = vperm.xlu1 %7586, %v8746_v50   ;;  %v8932_v32 = vpop.permute.xlu1 %796 }
 0x1ce   : > { %1112 = vperm.xlu0 %7593, %v8746_v50  }
 0x1cf   : > { %824 = vperm.xlu1 %7586, %v8638_v12   ;;  %v8936_v42 = vpop.permute.xlu1 %800 }
 0x1d0   : > { %11479 = vst [vmem:[#allocation70_spill] sm:$0xff] %v8936_v42 }
 0x1d2   : > { %1104 = vperm.xlu0 %7593, %v8648_v21  }
 0x1d3   : > { %812 = vperm.xlu1 %7586, %v8648_v21   ;;  %v8942_v6 = vpop.permute.xlu1 %736 }
 0x1d4   : > { %11481 = vst [vmem:[#allocation72_spill] sm:$0xff] %v8942_v6 }
 0x1d6   : > { %1096 = vperm.xlu0 %7593, %v8728_v56  }
 0x1d7   : > { %816 = vperm.xlu1 %7586, %v8947_v29   ;;  %v8953_v42 = vpop.permute.xlu1 %788 }
 0x1d8   : > { %11484 = vst [vmem:[#allocation75_spill] sm:$0xff] %v8953_v42 }
 0x1da   : > { %7596 = vset.pattern.permute.xlu0 %v11485_v31 }
 0x1db   : > { %7587 = vset.pattern.permute.xlu1 %v11485_v31  ;;  %v8957_v30 = vpop.permute.xlu1 %792 }
 0x1dc   : > { %11486 = vst [vmem:[#allocation76_spill] sm:$0xff] %v8957_v30  ;;  %1404 = vperm.xlu1 %7587, %v8746_v50  }
 0x1df   : > { %v8960_v6 = vpop.permute.xlu1 %724 }
 0x1e0   : > { %11487 = vst [vmem:[#allocation77_spill] sm:$0xff] %v8960_v6  ;;  %1408 = vperm.xlu1 %7587, %v8638_v12   ;;  %v1586_v6 = vmul.f32 %v8947_v29, %v8947_v29 }
 0x1e3   : > { %v8963_v3 = vpop.permute.xlu1 %728 }
 0x1e4   : > { %11488 = vst [vmem:[#allocation78_spill] sm:$0xff] %v8963_v3  ;;  %7589 = vset.pattern.permute.xlu1 %v11489_v1  ;;  %v1705_v3 = vsel %vm1599_vm0, %v1586_v6, 0.0 }
 0x1e7   : > { %v8966_v55 = vpop.permute.xlu1 %780 }
 0x1e8   : > { %11490 = vst [vmem:[#allocation79_spill] sm:$0xff] %v8966_v55 }
 0x1eb   : > { %v8968_v57 = vpop.permute.xlu1 %784 }
 0x1ec   : > { %11491 = vst [vmem:[#allocation80_spill] sm:$0xff] %v8968_v57 }
 0x1ef   : > { %v8970_v14 = vpop.permute.xlu1 %716 }
 0x1f0   : > { %11492 = vst [vmem:[#allocation81_spill] sm:$0xff] %v8970_v14 }
 0x1f3   : > { %v8972_v63 = vpop.permute.xlu1 %772 }
 0x1f4   : > { %11493 = vst [vmem:[#allocation82_spill] sm:$0xff] %v8972_v63 }
 0x1f7   : > { %v8974_v33 = vpop.permute.xlu1 %776 }
 0x1f8   : > { %11494 = vst [vmem:[#allocation83_spill] sm:$0xff] %v8974_v33  ;;  %v8992_v33 = vld [vmem:[%s11394_s1 + $0x78] sm:$0xff] }
 0x1fb   : > { %v8976_v30 = vpop.permute.xlu1 %708 }
 0x1fc   : > { %11495 = vst [vmem:[#allocation84_spill] sm:$0xff] %v8976_v30  ;;  %v8995_v30 = vpop.permute.xlu0 %1260 }
 0x1fd   : > { %11500 = vst [vmem:[#allocation89_spill] sm:$0xff] %v8995_v30  ;;  %v9048_v30 = vld [vmem:[%s11394_s1 + $0xc8] sm:$0xff] }
 0x1ff   : > { %v8980_v12 = vpop.permute.xlu1 %860 }
 0x200   : > { %11496 = vst [vmem:[#allocation85_spill] sm:$0xff] %v8980_v12  ;;  %v9005_v6 = vpop.permute.xlu0 %1416 }
 0x201   : > { %11502 = vst [vmem:[#allocation91_spill] sm:$0xff] %v9005_v6 }
 0x203   : > { %v8983_v1 = vpop.permute.xlu1 %864 }
 0x204   : > { %1706 = vadd.xlane.f32.xlu1 %v1705_v3  ;;  %11497 = vst [vmem:[#allocation86_spill] sm:$0xff] %v8983_v1  ;;  %v9002_v3 = vld [vmem:[%s11394_s1 + $0xe8] sm:$0xff]  ;;  %v9012_v1 = vld [vmem:[%s11394_s1 + $0x60] sm:$0xff] }
 0x207   : > { %v8985_v55 = vpop.permute.xlu1 %764 }
 0x208   : > { %11498 = vst [vmem:[#allocation87_spill] sm:$0xff] %v8985_v55 }
 0x20b   : > { %v8987_v57 = vpop.permute.xlu1 %700 }
 0x20c   : > { %11499 = vst [vmem:[#allocation88_spill] sm:$0xff] %v8987_v57 }
 0x20f   : > { %v8997_v63 = vpop.permute.xlu1 %852 }
 0x210   : > { %11501 = vst [vmem:[#allocation90_spill] sm:$0xff] %v8997_v63  ;;  %v9016_v63 = vpop.xlane.xlu0 %1712 }
 0x211   : > { %11504 = vst [vmem:[#allocation93_spill] sm:$0xff] %v9016_v63 }
 0x213   : > { %v9007_v55 = vpop.permute.xlu1 %856 }
 0x214   : > { %11503 = vst [vmem:[#allocation92_spill] sm:$0xff] %v9007_v55  ;;  %v9021_v12 = vpop.xlane.xlu0 %1703  ;;  %v9028_v55 = vld [vmem:[%s11394_s1 + $0xd8] sm:$0xff] }
 0x215   : > { %412 = vperm.xlu1 %7589, %v8992_v33  }
 0x217   : > { %v9018_v57 = vpop.permute.xlu1 %760 }
 0x218   : > { %11505 = vst [vmem:[#allocation94_spill] sm:$0xff] %v9018_v57  ;;  %v9034_v63 = vpop.permute.xlu0 %487 }
 0x219   : > { %482 = vperm.xlu1 %7589, %v9002_v3  }
 0x21b   : > { %v9023_v14 = vpop.permute.xlu1 %692 }
 0x21c   : > { %11506 = vst [vmem:[#allocation95_spill] sm:$0xff] %v9023_v14  ;;  %v9041_v14 = vpop.permute.xlu0 %492 }
 0x21d   : > { %397 = vperm.xlu1 %7589, %v9012_v1   ;;  %11508 = vst [vmem:[#allocation97_spill] sm:$0xff] %v9041_v14 }
 0x21f   : > { %v9036_v57 = vpop.permute.xlu1 %844 }
 0x220   : > { %11507 = vst [vmem:[#allocation96_spill] sm:$0xff] %v9036_v57  ;;  %v9057_v57 = vpop.permute.xlu0 %407 }
 0x221   : > { %402 = vperm.xlu1 %7589, %v8867_v36   ;;  %v7943_v36 = vld [vmem:[%s11394_s1 + $0x58] sm:$0xff]  ;;  %11510 = vst [vmem:[#allocation99_spill] sm:$0xff] %v9057_v57 }
 0x223   : > { %v9043_v6 = vpop.permute.xlu1 %848 }
 0x224   : > { %11509 = vst [vmem:[#allocation98_spill] sm:$0xff] %v9043_v6  ;;  %v7947_v6 = vld [vmem:[%s11394_s1 + $0x48] sm:$0xff]  ;;  %v9064_v14 = vpop.permute.xlu0 %477 }
 0x225   : > { %467 = vperm.xlu1 %7589, %v8874_v49   ;;  %v7944_v49 = vld [vmem:[%s11394_s1 + $0xc0] sm:$0xff]  ;;  %11512 = vst [vmem:[#allocation101_spill] sm:$0xff] %v9064_v14  ;;  %v7951_v14 = vld [vmem:[%s11394_s1 + $0x38] sm:$0xff] }
 0x228   : > { %v9077_v57 = vpop.permute.xlu0 %387 }
 0x229   : > { %472 = vperm.xlu1 %7589, %v9028_v55   ;;  %11514 = vst [vmem:[#allocation103_spill] sm:$0xff] %v9077_v57 }
 0x22d   : > { %392 = vperm.xlu1 %7589, %v7943_v36   ;;  %v9054_v36 = vld [vmem:[%s11394_s1 + $0x40] sm:$0xff] }
 0x231   : > { %457 = vperm.xlu1 %7589, %v7944_v49   ;;  %v9059_v49 = vpop.permute.xlu1 %748 }
 0x232   : > { %11511 = vst [vmem:[#allocation100_spill] sm:$0xff] %v9059_v49  ;;  %v7949_v49 = vld [vmem:[%s11394_s1 + $0xb0] sm:$0xff] }
 0x235   : > { %462 = vperm.xlu1 %7589, %v9048_v30   ;;  %v9066_v47 = vpop.permute.xlu1 %684 }
 0x236   : > { %11513 = vst [vmem:[#allocation102_spill] sm:$0xff] %v9066_v47  ;;  %v9087_v47 = vpop.permute.xlu0 %567 }
 0x239   : > { %377 = vperm.xlu1 %7589, %v9054_v36   ;;  %v9079_v58 = vpop.permute.xlu1 %836 }
 0x23a   : > { %11515 = vst [vmem:[#allocation104_spill] sm:$0xff] %v9079_v58 }
 0x23d   : > { %382 = vperm.xlu1 %7589, %v7947_v6   ;;  %v9084_v6 = vld [vmem:[%s11394_s1 + $0xb8] sm:$0xff]  ;;  %v9089_v42 = vpop.permute.xlu1 %840 }
 0x23e   : > { %11516 = vst [vmem:[#allocation105_spill] sm:$0xff] %v9089_v42  ;;  %v9107_v42 = vld [vmem:[%s11394_s1 + $0xa8] sm:$0xff] }
 0x241   : > { %572 = vperm.xlu1 %7589, %v9071_v16   ;;  %v9097_v58 = vpop.permute.xlu1 %744 }
 0x242   : > { %11517 = vst [vmem:[#allocation106_spill] sm:$0xff] %v9097_v58 }
 0x245   : > { %447 = vperm.xlu1 %7589, %v7949_v49   ;;  %v9095_v49 = vpop.permute.xlu0 %367  ;;  %v9102_v0 = vpop.permute.xlu1 %676 }
 0x246   : > { %11519 = vst [vmem:[#allocation108_spill] sm:$0xff] %v9102_v0 }
 0x249   : > { %452 = vperm.xlu1 %7589, %v9084_v6   ;;  %v9100_v57 = vpop.permute.xlu0 %562 }
 0x24a   : > { %11518 = vst [vmem:[#allocation107_spill] sm:$0xff] %v9100_v57 }
 0x24d   : > { %372 = vperm.xlu1 %7589, %v7951_v14   ;;  %v9113_v14 = vpop.permute.xlu1 %828 }
 0x24e   : > { %11521 = vst [vmem:[#allocation110_spill] sm:$0xff] %v9113_v14 }
 0x251   : > { %557 = vperm.xlu1 %7589, %v8451_v8   ;;  %v9111_v8 = vpop.permute.xlu0 %547  ;;  %v9120_v0 = vpop.permute.xlu1 %832 }
 0x252   : > { %11520 = vst [vmem:[#allocation109_spill] sm:$0xff] %v9111_v8  ;;  %11522 = vst [vmem:[#allocation111_spill] sm:$0xff] %v9120_v0 }
 0x255   : > { %437 = vperm.xlu1 %7589, %v8483_v26   ;;  %v7953_v26 = vld [vmem:[%s11394_s1 + $0x28] sm:$0xff]  ;;  %v9118_v58 = vpop.permute.xlu0 %347 }
 0x259   : > { %442 = vperm.xlu1 %7589, %v9107_v42   ;;  %v9124_v57 = vpop.permute.xlu0 %542 }
 0x25a   : > { %11523 = vst [vmem:[#allocation112_spill] sm:$0xff] %v9124_v57 }
 0x25d   : > { %357 = vperm.xlu1 %7589, %v8499_v38   ;;  %v9126_v38 = vpop.permute.xlu1 %820  ;;  %v9129_v14 = vpop.permute.xlu0 %527 }
 0x25e   : > { %11524 = vst [vmem:[#allocation113_spill] sm:$0xff] %v9126_v38  ;;  %11525 = vst [vmem:[#allocation114_spill] sm:$0xff] %v9129_v14 }
 0x261   : > { %362 = vperm.xlu1 %7589, %v7953_v26   ;;  %v9131_v8 = vpop.permute.xlu1 %824  ;;  %v9135_v26 = vpop.permute.xlu0 %522 }
 0x262   : > { %11526 = vst [vmem:[#allocation115_spill] sm:$0xff] %v9131_v8  ;;  %11527 = vst [vmem:[#allocation116_spill] sm:$0xff] %v9135_v26 }
 0x265   : > { %552 = vperm.xlu1 %7589, %v8527_v52   ;;  %v9137_v0 = vpop.permute.xlu1 %812  ;;  %v9140_v52 = vpop.permute.xlu0 %497 }
 0x269   : > { %427 = vperm.xlu1 %7589, %v8535_v59   ;;  %v9142_v59 = vpop.permute.xlu1 %816 }
 0x26a   : > { %11528 = vst [vmem:[#allocation117_spill] sm:$0xff] %v9142_v59 }
 0x26d   : > { %432 = vperm.xlu1 %7589, %v8462_v15   ;;  %v9146_v15 = vpop.permute.xlu0 %732  ;;  %v9148_v38 = vpop.permute.xlu1 %1404 }
 0x26e   : > { %11529 = vst [vmem:[#allocation118_spill] sm:$0xff] %v9148_v38 }
 0x271   : > { %352 = vperm.xlu1 %7589, %v8472_v19   ;;  %v9151_v19 = vpop.permute.xlu0 %720 }
 0x272   : > { %11530 = vst [vmem:[#allocation119_spill] sm:$0xff] %v9151_v19 }
 0x275   : > { %537 = vperm.xlu1 %7589, %v8551_v11   ;;  %v9153_v11 = vpop.permute.xlu1 %1408  ;;  %v9159_v59 = vpop.permute.xlu0 %712 }
 0x276   : > { %11531 = vst [vmem:[#allocation120_spill] sm:$0xff] %v9153_v11  ;;  %11533 = vst [vmem:[#allocation122_spill] sm:$0xff] %v9159_v59 }
 0x279   : > { %417 = vperm.xlu1 %7589, %v8570_v28  }
 0x27d   : > { %422 = vperm.xlu1 %7589, %v8488_v27  }
 0x281   : > { %337 = vperm.xlu1 %7589, %v8579_v37   ;;  %v9164_v37 = vpop.permute.xlu0 %768 }
 0x282   : > { %11535 = vst [vmem:[#allocation124_spill] sm:$0xff] %v9164_v37 }
 0x285   : > { %342 = vperm.xlu1 %7589, %v8506_v40  }
 0x289   : > { %532 = vperm.xlu1 %7589, %v8597_v46   ;;  %v9172_v46 = vpop.permute.xlu0 %704 }
 0x28a   : > { %11538 = vst [vmem:[#allocation127_spill] sm:$0xff] %v9172_v46 }
 0x28d   : > { %517 = vperm.xlu1 %7589, %v8746_v50   ;;  %v9157_v28 = vpop.xlane.xlu1 %1706 }
 0x28e   : > { %11532 = vst [vmem:[#allocation121_spill] sm:$0xff] %v9157_v28  ;;  %v9178_v28 = vpop.permute.xlu0 %756 }
 0x28f   : > { %11540 = vst [vmem:[#allocation129_spill] sm:$0xff] %v9178_v28 }
 0x291   : > { %507 = vperm.xlu1 %7589, %v8648_v21   ;;  %v9162_v27 = vpop.permute.xlu1 %412 }
 0x292   : > { %11534 = vst [vmem:[#allocation123_spill] sm:$0xff] %v9162_v27  ;;  %v9186_v38 = vpop.permute.xlu0 %696 }
 0x293   : > { %11543 = vst [vmem:[#allocation132_spill] sm:$0xff] %v9186_v38 }
 0x295   : > { %512 = vperm.xlu1 %7589, %v8947_v29   ;;  %v9167_v40 = vpop.permute.xlu1 %482 }
 0x296   : > { %11536 = vst [vmem:[#allocation125_spill] sm:$0xff] %v9167_v40  ;;  %v753_v8 = vpop.permute.xlu0 %752 }
 0x299   : > { %502 = vperm.xlu1 %7589, %v8793_v2   ;;  %v9170_v11 = vpop.permute.xlu1 %397 }
 0x29a   : > { %11537 = vst [vmem:[#allocation126_spill] sm:$0xff] %v9170_v11  ;;  %v689_v46 = vpop.permute.xlu0 %688 }
 0x29d   : > { %7591 = vset.pattern.permute.xlu1 %v11443_v34  ;;  %v9175_v50 = vpop.permute.xlu1 %402  ;;  %v11545_v34 = vmov 2  }
 0x29e   : > { %11539 = vst [vmem:[#allocation128_spill] sm:$0xff] %v9175_v50  ;;  %804 = vperm.xlu1 %7591, %v8728_v56  }
 0x2a1   : > { %v9180_v27 = vpop.permute.xlu1 %467 }
 0x2a2   : > { %11541 = vst [vmem:[#allocation130_spill] sm:$0xff] %v9180_v27  ;;  %7592 = vset.pattern.permute.xlu1 %v11485_v31  ;;  %v741_v31 = vpop.permute.xlu0 %740 }
 0x2a3   : > { %1396 = vperm.xlu1 %7592, %v8648_v21  }
 0x2a5   : > { %v9184_v40 = vpop.permute.xlu1 %472 }
 0x2a6   : > { %11542 = vst [vmem:[#allocation131_spill] sm:$0xff] %v9184_v40  ;;  %v9202_v38 = vpop.permute.xlu0 %680 }
 0x2a7   : > { %1400 = vperm.xlu1 %7592, %v8947_v29  }
 0x2a9   : > { %v9189_v11 = vpop.permute.xlu1 %392 }
 0x2aa   : > { %11544 = vst [vmem:[#allocation133_spill] sm:$0xff] %v9189_v11 }
 0x2ab   : > { %7594 = vset.pattern.permute.xlu1 %v11545_v34  ;;  %v9206_v34 = vpop.permute.xlu0 %808 }
 0x2ad   : > { %v9192_v56 = vpop.permute.xlu1 %457 }
 0x2ae   : > { %11546 = vst [vmem:[#allocation134_spill] sm:$0xff] %v9192_v56  ;;  %v1584_v56 = vmul.f32 %v8793_v2, %v8793_v2 }
 0x2b1   : > { %v9194_v28 = vpop.permute.xlu1 %462 }
 0x2b2   : > { %11547 = vst [vmem:[#allocation135_spill] sm:$0xff] %v9194_v28 }
 0x2b5   : > { %v9196_v37 = vpop.permute.xlu1 %377 }
 0x2b6   : > { %11548 = vst [vmem:[#allocation136_spill] sm:$0xff] %v9196_v37  ;;  %v1699_v37 = vsel %vm1599_vm0, %v1584_v56, 0.0  ;;  %v575_v56 = vlaneseq }
 0x2b9   : > { %v9198_v21 = vpop.permute.xlu1 %382 }
 0x2ba   : > { %11549 = vst [vmem:[#allocation137_spill] sm:$0xff] %v9198_v21  ;;  %v9215_v21 = vpop.xlane.xlu0 %1697 }
 0x2bb   : > { %11554 = vst [vmem:[#allocation142_spill] sm:$0xff] %v9215_v21 }
 0x2bd   : > { %v9200_v40 = vpop.permute.xlu1 %572 }
 0x2be   : > { %11550 = vst [vmem:[#allocation138_spill] sm:$0xff] %v9200_v40  ;;  %v9219_v59 = vpop.permute.xlu0 %1088 }
 0x2c1   : > { %v9204_v29 = vpop.permute.xlu1 %447 }
 0x2c2   : > { %11551 = vst [vmem:[#allocation139_spill] sm:$0xff] %v9204_v29  ;;  %v9225_v27 = vpop.permute.xlu0 %1080 }
 0x2c5   : > { %v9210_v28 = vpop.permute.xlu1 %452 }
 0x2c6   : > { %11552 = vst [vmem:[#allocation140_spill] sm:$0xff] %v9210_v28  ;;  %v9230_v28 = vpop.permute.xlu0 %1020 }
 0x2c7   : > { %11559 = vst [vmem:[#allocation147_spill] sm:$0xff] %v9230_v28 }
 0x2c9   : > { %v9213_v11 = vpop.permute.xlu1 %372 }
 0x2ca   : > { %11553 = vst [vmem:[#allocation141_spill] sm:$0xff] %v9213_v11 }
 0x2cb   : > { %1700 = vadd.xlane.f32.xlu1 %v1699_v37  ;;  %v7954_v37 = vld [vmem:[%s11394_s1 + $0xf8] sm:$0xff] }
 0x2cd   : > { %v9217_v40 = vpop.permute.xlu1 %557 }
 0x2ce   : > { %11555 = vst [vmem:[#allocation143_spill] sm:$0xff] %v9217_v40  ;;  %v9238_v40 = vshrl.u32 %v575_v56, 7  ;;  %v9255_v56 = vld [vmem:[%s278_s14] sm:$0xf] }
 0x2d1   : > { %v9221_v29 = vpop.permute.xlu1 %437 }
 0x2d2   : > { %11556 = vst [vmem:[#allocation144_spill] sm:$0xff] %v9221_v29 }
 0x2d5   : > { %v9223_v19 = vpop.permute.xlu1 %442 }
 0x2d6   : > { %11557 = vst [vmem:[#allocation145_spill] sm:$0xff] %v9223_v19  ;;  %v9240_v19 = vpop.permute.xlu0 %1072 }
 0x2d7   : > { %11561 = vst [vmem:[#allocation149_spill] sm:$0xff] %v9240_v19 }
 0x2d9   : > { %v9228_v2 = vpop.permute.xlu1 %357 }
 0x2da   : > { %11558 = vst [vmem:[#allocation146_spill] sm:$0xff] %v9228_v2  ;;  %v7955_v2 = vld [vmem:[%s11394_s1 + $0x70] sm:$0xff]  ;;  %v9252_v11 = vpop.permute.xlu0 %1012 }
 0x2db   : > { %11563 = vst [vmem:[#allocation151_spill] sm:$0xff] %v9252_v11 }
 0x2dc   : > { %1092 = vperm.xlu1 %7594, %v7954_v37   ;;  %v869_v37 = vsub.s32 1, %v9238_v40 }
 0x2dd   : > { %v9236_v21 = vpop.permute.xlu1 %362 }
 0x2de   : > { %11560 = vst [vmem:[#allocation148_spill] sm:$0xff] %v9236_v21  ;;  %v577_v21 = vsub.s32 0, %v9238_v40  ;;  %v9267_v50 = vpop.permute.xlu0 %1064 }
 0x2e0   : > { %1024 = vperm.xlu1 %7594, %v7955_v2   ;;  %v9260_v2 = vrot.slane %v9255_v56, %v869_v37 }
 0x2e1   : > { %v9245_v29 = vpop.permute.xlu1 %552 }
 0x2e2   : > { %11562 = vst [vmem:[#allocation150_spill] sm:$0xff] %v9245_v29  ;;  %v9263_v29 = vrot.slane %v9255_v56, %v577_v21  ;;  %v890_v28 = vmul.f32 %v9260_v2, %v753_v8 }
 0x2e4   : > { %1028 = vperm.xlu1 %7594, %v8992_v33   ;;  %v874_v33 = vmul.f32 %v9260_v2, %v689_v46 }
 0x2e5   : > { %v9257_v19 = vpop.permute.xlu1 %427 }
 0x2e6   : > { %11564 = vst [vmem:[#allocation152_spill] sm:$0xff] %v9257_v19  ;;  %v9274_v19 = vpop.permute.xlu0 %1004 }
 0x2e8   : > { %1084 = vperm.xlu1 %7594, %v9002_v3  }
 0x2e9   : > { %v433_v26 = vpop.permute.xlu1 %432 }
 0x2ea   : > { %v598_v11 = vmul.f32 %v9263_v29, %v433_v26  ;;  %v9282_v8 = vpop.permute.xlu0 %1056  ;;  %v887_v26 = vmul.f32 %v9260_v2, %v741_v31  ;;  %v1744_v31 = vmul.f32 %v9255_v56, %v9255_v56 }
 0x2ec   : > { %v9271_v14 = vadd.f32 %v890_v28, %v598_v11  ;;  %1016 = vperm.xlu1 %7594, %v9012_v1   ;;  %v7956_v11 = vld [vmem:[%s11394_s1 + $0x50] sm:$0xff] }
 0x2ed   : > { %v353_v37 = vpop.permute.xlu1 %352 }
 0x2ee   : > { %11565 = vst [vmem:[#allocation153_spill] sm:$0xff] %v9271_v14  ;;  %v582_v21 = vmul.f32 %v9263_v29, %v353_v37  ;;  %v9288_v28 = vpop.permute.xlu0 %996  ;;  %v1746_v14 = vsel %vm1745_vm1, %v1744_v31, 0.0 }
 0x2f0   : > { %v9277_v57 = vadd.f32 %v874_v33, %v582_v21  ;;  %1076 = vperm.xlu1 %7594, %v9028_v55  }
 0x2f1   : > { %v9280_v3 = vpop.permute.xlu1 %537 }
 0x2f2   : > { %11566 = vst [vmem:[#allocation154_spill] sm:$0xff] %v9277_v57  ;;  %11567 = vst [vmem:[#allocation155_spill] sm:$0xff] %v9280_v3  ;;  %v9296_v37 = vpop.permute.xlu0 %1048 }
 0x2f4   : > { %1008 = vperm.xlu1 %7594, %v7956_v11  }
 0x2f5   : > { %v418_v1 = vpop.permute.xlu1 %417 }
 0x2f6   : > { %v595_v46 = vmul.f32 %v9263_v29, %v418_v1  ;;  %v9303_v11 = vpop.permute.xlu0 %988 }
 0x2f8   : > { %v9291_v33 = vadd.f32 %v887_v26, %v595_v46  ;;  %1068 = vperm.xlu1 %7594, %v9048_v30   ;;  %v872_v26 = vmul.f32 %v9260_v2, %v9202_v38  ;;  %v7957_v30 = vld [vmem:[%s11394_s1 + $0x170] sm:$0xff]  ;;  %v1747_v46 = vrot.slane %v1746_v14, 4 }
 0x2f9   : > { %v9294_v55 = vpop.permute.xlu1 %422 }
 0x2fa   : > { %11568 = vst [vmem:[#allocation156_spill] sm:$0xff] %v9291_v33  ;;  %11569 = vst [vmem:[#allocation157_spill] sm:$0xff] %v9294_v55  ;;  %v9310_v55 = vpop.permute.xlu0 %1040  ;;  %v1748_v31 = vadd.f32 %v1747_v46, %v1746_v14  ;;  %v7959_v14 = vld [vmem:[%s11394_s1 + $0x160] sm:$0xff] }
 0x2fc   : > { %1000 = vperm.xlu1 %7594, %v9054_v36  }
 0x2fd   : > { %v9301_v21 = vpop.permute.xlu1 %337 }
 0x2fe   : > { %11570 = vst [vmem:[#allocation158_spill] sm:$0xff] %v9301_v21  ;;  %v9318_v33 = vpop.permute.xlu0 %980 }
 0x300   : > { %1152 = vperm.xlu1 %7594, %v7957_v30   ;;  %v1749_v30 = vrot.slane %v1748_v31, 2 }
 0x301   : > { %v343_v1 = vpop.permute.xlu1 %342 }
 0x302   : > { %v580_v3 = vmul.f32 %v9263_v29, %v343_v1  ;;  %v9323_v57 = vpop.permute.xlu0 %1032  ;;  %v7958_v1 = vld [vmem:[%s11394_s1 + $0x30] sm:$0xff] }
 0x303   : > { %11574 = vst [vmem:[#allocation162_spill] sm:$0xff] %v9323_v57 }
 0x304   : > { %v9313_v36 = vadd.f32 %v872_v26, %v580_v3  ;;  %1156 = vperm.xlu1 %7594, %v9071_v16   ;;  %v1750_v26 = vadd.f32 %v1749_v30, %v1748_v31  ;;  %v1453_v31 = vsub.s32 3, %v9238_v40  ;;  %v1161_v30 = vsub.s32 2, %v9238_v40 }
 0x305   : > { %v9316_v21 = vpop.permute.xlu1 %532  ;;  %v905_v40 = vmul.f32 %v9260_v2, %v9137_v0 }
 0x306   : > { %11571 = vst [vmem:[#allocation159_spill] sm:$0xff] %v9313_v36  ;;  %11572 = vst [vmem:[#allocation160_spill] sm:$0xff] %v9316_v21  ;;  %v9328_v16 = vpop.permute.xlu0 %972  ;;  %v1751_v46 = vrot.slane %v1750_v26, 1 }
 0x307   : > { %11575 = vst [vmem:[#allocation163_spill] sm:$0xff] %v9328_v16 }
 0x308   : > { %1060 = vperm.xlu1 %7594, %v9084_v6   ;;  %v9344_v16 = vadd.f32 %v1751_v46, %v1750_v26 }
 0x309   : > { %v9321_v38 = vpop.permute.xlu1 %517 }
 0x30a   : > { %11573 = vst [vmem:[#allocation161_spill] sm:$0xff] %v9321_v38  ;;  %v9335_v21 = vpop.permute.xlu0 %1112  ;;  %v904_v38 = vmul.f32 %v9260_v2, %v9206_v34  ;;  %11578 = vst [vmem:[#allocation166_spill] sm:$0xff] %v9344_v16  ;;  %v9352_v34 = vrot.slane %v9255_v56, %v1453_v31  ;;  %v9376_v0 = vadd.f32 %v9344_v16, %v8741_v51  ;;  %v7961_v51 = vld [vmem:[%s11394_s1 + $0x20] sm:$0xff] }
 0x30b   : > { %11577 = vst [vmem:[#allocation165_spill] sm:$0xff] %v9335_v21  ;;  %v9389_v31 = vadd.f32 %v9344_v16, %v8753_v48  ;;  %v9410_v48 = vadd.f32 %v9344_v16, %v8765_v20 }
 0x30c   : > { %992 = vperm.xlu1 %7594, %v7958_v1   ;;  %v7960_v1 = vld [vmem:[%s11394_s1 + $0x168] sm:$0xff]  ;;  %11580 = vst [vmem:[#allocation168_spill] sm:$0xff] %v9352_v34  ;;  %11583 = vst [vmem:[#allocation171_spill] sm:$0xff] %v9376_v0  ;;  %v11728_v0 = vld [vmem:[#allocation78_spill] sm:$0xff] }
 0x30d   : > { %v508_v3 = vpop.permute.xlu1 %507 }
 0x30e   : > { %v1105_v21 = vpop.permute.xlu0 %1104 }
 0x310   : > { %1144 = vperm.xlu1 %7594, %v7959_v14  }
 0x311   : > { %v9333_v6 = vpop.permute.xlu1 %512 }
 0x312   : > { %11576 = vst [vmem:[#allocation164_spill] sm:$0xff] %v9333_v6  ;;  %v613_v6 = vmul.f32 %v9263_v29, %v508_v3 }
 0x314   : > { %1148 = vperm.xlu1 %7594, %v7960_v1   ;;  %v9355_v1 = vrot.slane %v9255_v56, %v1161_v30  ;;  %v9372_v56 = vadd.f32 %v9344_v16, %v8623_v60  ;;  %v953_v46 = vadd.f32 %v905_v40, %v613_v6  ;;  %v9414_v6 = vadd.f32 %v9344_v16, %v8650_v22 }
 0x315   : > { %v503_v36 = vpop.permute.xlu1 %502  ;;  %v9434_v22 = vadd.f32 %v9344_v16, %v8784_v41  ;;  %v7962_v41 = vld [vmem:[%s11394_s1 + $0x150] sm:$0xff] }
 0x316   : > { %v612_v14 = vmul.f32 %v9263_v29, %v503_v36  ;;  %v9361_v36 = vadd.f32 %v9344_v16, %v8619_v53  ;;  %11582 = vst [vmem:[#allocation170_spill] sm:$0xff] %v9372_v56  ;;  %v1197_v53 = vmul.f32 %v9355_v1, %v1105_v21  ;;  %v9398_v21 = vadd.f32 %v9344_v16, %v8632_v5 }
 0x317   : > { %v9418_v5 = vadd.f32 %v9344_v16, %v8656_v35 }
 0x318   : > { %v9348_v57 = vadd.f32 %v904_v38, %v612_v14  ;;  %1052 = vperm.xlu1 %7594, %v9107_v42   ;;  %v9365_v38 = vadd.f32 %v9344_v16, %v8733_v25  ;;  %v611_v42 = vmul.f32 %v9263_v29, %v9140_v52  ;;  %v9381_v25 = vadd.f32 %v9344_v16, %v8626_v62  ;;  %v11591_v14 = vld [vmem:[#allocation15_spill] sm:$0xff] }
 0x319   : > { %v805_v26 = vpop.permute.xlu1 %804  ;;  %v9385_v52 = vadd.f32 %v9344_v16, %v8629_v4  ;;  %11587 = vst [vmem:[#allocation175_spill] sm:$0xff] %v9398_v21  ;;  %v9402_v62 = vadd.f32 %v9344_v16, %v8640_v13  ;;  %v9406_v4 = vadd.f32 %v9344_v16, %v8760_v45  ;;  %11589 = vst [vmem:[#allocation177_spill] sm:$0xff] %v9418_v5 }
 0x31a   : > { %11579 = vst [vmem:[#allocation167_spill] sm:$0xff] %v9348_v57  ;;  %11581 = vst [vmem:[#allocation169_spill] sm:$0xff] %v9365_v38  ;;  %v903_v3 = vmul.f32 %v9260_v2, %v805_v26  ;;  %v9422_v13 = vadd.f32 %v9344_v16, %v8771_v7  ;;  %v9426_v45 = vadd.f32 %v9344_v16, %v8777_v44  ;;  %v11593_v26 = vld [vmem:[#allocation16_spill] sm:$0xff] }
 0x31b   : > { %11584 = vst [vmem:[#allocation172_spill] sm:$0xff] %v9381_v25  ;;  %11585 = vst [vmem:[#allocation173_spill] sm:$0xff] %v9385_v52  ;;  %v9430_v20 = vadd.f32 %v9344_v16, %v11591_v14  ;;  %v1245_v40 = vadd.f32 %v1197_v53, %v953_v46  ;;  %v9439_v7 = vadd.f32 %v9344_v16, %v11593_v26  ;;  %v11599_v53 = vld [vmem:[#allocation18_spill] sm:$0xff]  ;;  %v11602_v14 = vld [vmem:[#allocation19_spill] sm:$0xff] }
 0x31c   : > { %v9391_v60 = vadd.f32 %v903_v3, %v611_v42  ;;  %984 = vperm.xlu1 %7594, %v7961_v51   ;;  %11588 = vst [vmem:[#allocation176_spill] sm:$0xff] %v9402_v62  ;;  %11590 = vst [vmem:[#allocation178_spill] sm:$0xff] %v9426_v45  ;;  %v9443_v44 = vadd.f32 %v9344_v16, %v8796_v39  ;;  %v9447_v42 = vadd.f32 %v9344_v16, %v8809_v9  ;;  %v11597_v3 = vld [vmem:[#allocation17_spill] sm:$0xff]  ;;  %v11409_v9 = vmov 0.0  }
 0x31d   : > { %11592 = vst [vmem:[#allocation15_spill] sm:$0xff] %v9430_v20  ;;  %11594 = vst [vmem:[#allocation16_spill] sm:$0xff] %v9439_v7  ;;  %v9454_v46 = vadd.f32 %v9344_v16, %v11597_v3  ;;  %v9458_v51 = vadd.f32 %v9344_v16, %v11599_v53  ;;  %v9462_v39 = vadd.f32 %v9344_v16, %v8815_v10  ;;  %7268 = vmatprep.subr.bf16.mxu1 %v11409_v9  ;;  %v11656_v7 = vld [vmem:[#allocation34_spill] sm:$0xff]  ;;  %v11688_v45 = vld [vmem:[#allocation49_spill] sm:$0xff] }
 0x31e   : > { %11586 = vst [vmem:[#allocation174_spill] sm:$0xff] %v9391_v60  ;;  %v1397_v30 = vpop.permute.xlu1 %1396  ;;  %11595 = vst [vmem:[#allocation179_spill] sm:$0xff] %v9443_v44  ;;  %v9468_v26 = vadd.f32 %v9344_v16, %v11602_v14  ;;  %v9476_v53 = vadd.f32 %v9344_v16, %v8822_v17  ;;  %v9480_v10 = vadd.f32 %v9344_v16, %v8829_v24  ;;  %v11613_v17 = vld [vmem:[#allocation22_spill] sm:$0xff]  ;;  %v11615_v24 = vld [vmem:[#allocation23_spill] sm:$0xff] }
 0x31f   : > { %v1489_v35 = vmul.f32 %v9352_v34, %v1397_v30  ;;  %11596 = vst [vmem:[#allocation180_spill] sm:$0xff] %v9447_v42  ;;  %11598 = vst [vmem:[#allocation17_spill] sm:$0xff] %v9454_v46  ;;  %v9488_v14 = vadd.f32 %v9344_v16, %v8834_v43  ;;  %v9498_v57 = vadd.f32 %v9344_v16, %v11613_v17  ;;  %v11738_v42 = vld [vmem:[#allocation149_spill] sm:$0xff]  ;;  %v11754_v46 = vld [vmem:[#allocation84_spill] sm:$0xff] }
 0x320   : > { %1136 = vperm.xlu1 %7594, %v7962_v41   ;;  %11600 = vst [vmem:[#allocation18_spill] sm:$0xff] %v9458_v51  ;;  %11601 = vst [vmem:[#allocation181_spill] sm:$0xff] %v9462_v39  ;;  %v11604_v41 = vld [vmem:[#allocation20_spill] sm:$0xff]  ;;  %v9502_v60 = vadd.f32 %v9344_v16, %v11615_v24  ;;  %v9510_v43 = vadd.f32 %v9344_v16, %v8845_v23  ;;  %v11643_v39 = vld [vmem:[#allocation61_spill] sm:$0xff] }
 0x321   : > { %v1537_v30 = vadd.f32 %v1489_v35, %v1245_v40  ;;  %2922 = vst [vmem:[#allocation5] sm:$0x1] %v11409_v9  ;;  %11603 = vst [vmem:[#allocation19_spill] sm:$0xff] %v9468_v26  ;;  %v9472_v3 = vadd.f32 %v9344_v16, %v11604_v41  ;;  %v11608_v40 = vld [vmem:[#allocation21_spill] sm:$0xff]  ;;  %v9492_v41 = vadd.f32 %v9344_v16, %v9021_v12 }
 0x322   : > { %11606 = vst [vmem:[#allocation182_spill] sm:$0xff] %v9476_v53  ;;  %11607 = vst [vmem:[#allocation183_spill] sm:$0xff] %v9480_v10  ;;  %v9484_v35 = vadd.f32 %v9344_v16, %v11608_v40  ;;  %v9506_v40 = vadd.f32 %v9344_v16, %v8840_v18  ;;  %v7963_v12 = vld [vmem:[%s11394_s1 + $0x158] sm:$0xff]  ;;  %v9525_v18 = vmul.f32 %v9352_v34, %v8854_v54 }
 0x323   : > { %11605 = vst [vmem:[#allocation20_spill] sm:$0xff] %v9472_v3  ;;  %11610 = vst [vmem:[#allocation184_spill] sm:$0xff] %v9488_v14  ;;  %v9494_v9 = vmul.f32 2.0, %v1537_v30  ;;  %v11619_v30 = vld [vmem:[#allocation24_spill] sm:$0xff]  ;;  %v11621_v10 = vld [vmem:[#allocation25_spill] sm:$0xff] }
 0x324   : > { %11609 = vst [vmem:[#allocation21_spill] sm:$0xff] %v9484_v35  ;;  %11611 = vst [vmem:[#allocation185_spill] sm:$0xff] %v9492_v41  ;;  %1140 = vperm.xlu1 %7594, %v7963_v12   ;;  %v9517_v17 = vadd.f32 %v9344_v16, %v11619_v30  ;;  %v9521_v24 = vadd.f32 %v9344_v16, %v11621_v10  ;;  %v9535_v12 = vmul.f32 %v9352_v34, %v8862_v61  ;;  %v11632_v41 = vld [vmem:[#allocation75_spill] sm:$0xff] }
 0x325   : > { %11612 = vst [vmem:[#allocation186_spill] sm:$0xff] %v9494_v9  ;;  %11614 = vst [vmem:[#allocation22_spill] sm:$0xff] %v9498_v57  ;;  %v609_v30 = vmul.f32 %v9263_v29, %v9034_v63  ;;  %v901_v10 = vmul.f32 %v9260_v2, %v8932_v32  ;;  %v899_v61 = vmul.f32 %v9260_v2, %v11632_v41  ;;  %v11635_v57 = vld [vmem:[#allocation57_spill] sm:$0xff]  ;;  %v11645_v3 = vld [vmem:[#allocation31_spill] sm:$0xff] }
 0x326   : > { %11616 = vst [vmem:[#allocation23_spill] sm:$0xff] %v9502_v60  ;;  %11617 = vst [vmem:[#allocation187_spill] sm:$0xff] %v9506_v40  ;;  %v11624_v40 = vld [vmem:[#allocation26_spill] sm:$0xff]  ;;  %v9559_v32 = vmul.f32 %v9352_v34, %v11635_v57  ;;  %v11639_v41 = vld [vmem:[#allocation29_spill] sm:$0xff]  ;;  %v9586_v26 = vadd.f32 %v9344_v16, %v11645_v3 }
 0x327   : > { %11618 = vst [vmem:[#allocation188_spill] sm:$0xff] %v9510_v43  ;;  %11620 = vst [vmem:[#allocation24_spill] sm:$0xff] %v9517_v17  ;;  %v9531_v60 = vadd.f32 %v9344_v16, %v11624_v40  ;;  %v11627_v17 = vld [vmem:[#allocation27_spill] sm:$0xff]  ;;  %v11631_v40 = vld [vmem:[#allocation101_spill] sm:$0xff] }
 0x328   : > { %11622 = vst [vmem:[#allocation25_spill] sm:$0xff] %v9521_v24  ;;  %11623 = vst [vmem:[#allocation189_spill] sm:$0xff] %v9525_v18  ;;  %v9543_v54 = vadd.f32 %v9344_v16, %v11627_v17  ;;  %v11629_v43 = vld [vmem:[#allocation55_spill] sm:$0xff]  ;;  %v607_v9 = vmul.f32 %v9263_v29, %v11631_v40  ;;  %v7964_v40 = vld [vmem:[%s11394_s1 + $0x98] sm:$0xff] }
 0x329   : > { %11625 = vst [vmem:[#allocation26_spill] sm:$0xff] %v9531_v60  ;;  %11626 = vst [vmem:[#allocation190_spill] sm:$0xff] %v9535_v12  ;;  %v9547_v23 = vmul.f32 %v9352_v34, %v11629_v43  ;;  %v11633_v60 = vld [vmem:[#allocation28_spill] sm:$0xff]  ;;  %v11637_v17 = vld [vmem:[#allocation59_spill] sm:$0xff]  ;;  %v1193_v43 = vmul.f32 %v9355_v1, %v9219_v59  ;;  %1044 = vperm.xlu1 %7594, %v7964_v40   ;;  %v1191_v59 = vmul.f32 %v9355_v1, %v9225_v27 }
 0x32a   : > { %11628 = vst [vmem:[#allocation27_spill] sm:$0xff] %v9543_v54  ;;  %v9555_v63 = vadd.f32 %v9344_v16, %v11633_v60  ;;  %11636 = vst [vmem:[#allocation75_spill] sm:$0xff] %v9559_v32  ;;  %v9563_v54 = vmul.f32 %v9352_v34, %v11637_v17  ;;  %v9572_v60 = vadd.f32 %v9344_v16, %v11639_v41  ;;  %v11647_v40 = vld [vmem:[#allocation63_spill] sm:$0xff]  ;;  %v11649_v41 = vld [vmem:[#allocation65_spill] sm:$0xff] }
 0x32b   : > { %11630 = vst [vmem:[#allocation55_spill] sm:$0xff] %v9547_v23  ;;  %v9580_v17 = vmul.f32 %v9352_v34, %v11643_v39  ;;  %v9590_v51 = vmul.f32 %v9352_v34, %v11647_v40  ;;  %v9594_v44 = vmul.f32 %v9352_v34, %v11649_v41  ;;  %v9608_v40 = vmul.f32 %v9352_v34, %v11656_v7  ;;  %v11664_v7 = vld [vmem:[#allocation36_spill] sm:$0xff]  ;;  %v11692_v14 = vld [vmem:[#allocation51_spill] sm:$0xff]  ;;  %v11720_v18 = vld [vmem:[#allocation114_spill] sm:$0xff] }
 0x32c   : > { %11634 = vst [vmem:[#allocation101_spill] sm:$0xff] %v9555_v63  ;;  %11638 = vst [vmem:[#allocation28_spill] sm:$0xff] %v9563_v54  ;;  %v11641_v63 = vld [vmem:[#allocation30_spill] sm:$0xff]  ;;  %v11654_v54 = vld [vmem:[#allocation67_spill] sm:$0xff] }
 0x32d   : > { %11640 = vst [vmem:[#allocation57_spill] sm:$0xff] %v9572_v60  ;;  %v9576_v57 = vadd.f32 %v9344_v16, %v11641_v63  ;;  %11644 = vst [vmem:[#allocation29_spill] sm:$0xff] %v9580_v17  ;;  %v949_v63 = vadd.f32 %v901_v10, %v609_v30  ;;  %v11653_v17 = vld [vmem:[#allocation33_spill] sm:$0xff]  ;;  %v9604_v3 = vmul.f32 %v9352_v34, %v11654_v54  ;;  %v11660_v30 = vld [vmem:[#allocation71_spill] sm:$0xff] }
 0x32e   : > { %11646 = vst [vmem:[#allocation30_spill] sm:$0xff] %v9586_v26  ;;  %11648 = vst [vmem:[#allocation61_spill] sm:$0xff] %v9590_v51  ;;  %v1485_v27 = vmul.f32 %v9352_v34, %v11653_v17  ;;  %v947_v26 = vadd.f32 %v899_v61, %v607_v9  ;;  %v11658_v51 = vld [vmem:[#allocation69_spill] sm:$0xff]  ;;  %v9616_v10 = vmul.f32 %v9352_v34, %v11660_v30  ;;  %v11662_v54 = vld [vmem:[#allocation35_spill] sm:$0xff] }
 0x32f   : > { %11642 = vst [vmem:[#allocation59_spill] sm:$0xff] %v9576_v57  ;;  %11650 = vst [vmem:[#allocation31_spill] sm:$0xff] %v9594_v44  ;;  %v11651_v57 = vld [vmem:[#allocation32_spill] sm:$0xff]  ;;  %v9612_v41 = vmul.f32 %v9352_v34, %v11658_v51  ;;  %v9623_v9 = vmul.f32 %v9352_v34, %v11662_v54  ;;  %v9627_v61 = vmul.f32 %v9352_v34, %v11664_v7  ;;  %v11666_v51 = vld [vmem:[#allocation74_spill] sm:$0xff] }
 0x330   : > { %v9598_v39 = vadd.f32 %v9344_v16, %v11651_v57  ;;  %11655 = vst [vmem:[#allocation65_spill] sm:$0xff] %v9604_v3  ;;  %11657 = vst [vmem:[#allocation32_spill] sm:$0xff] %v9608_v40  ;;  %v1241_v57 = vadd.f32 %v1193_v43, %v949_v63  ;;  %v7965_v17 = vld [vmem:[%s11394_s1 + $0x10] sm:$0xff]  ;;  %v1239_v30 = vadd.f32 %v1191_v59, %v947_v26  ;;  %v11669_v63 = vld [vmem:[#allocation38_spill] sm:$0xff] }
 0x331   : > { %11659 = vst [vmem:[#allocation33_spill] sm:$0xff] %v9612_v41  ;;  %11661 = vst [vmem:[#allocation67_spill] sm:$0xff] %v9616_v10  ;;  %976 = vperm.xlu1 %7594, %v7965_v17   ;;  %v11668_v10 = vld [vmem:[#allocation37_spill] sm:$0xff]  ;;  %v9637_v41 = vmul.f32 %v9352_v34, %v11669_v63  ;;  %v11673_v3 = vld [vmem:[#allocation91_spill] sm:$0xff] }
 0x332   : > { %11652 = vst [vmem:[#allocation63_spill] sm:$0xff] %v9598_v39  ;;  %11663 = vst [vmem:[#allocation34_spill] sm:$0xff] %v9623_v9  ;;  %v9631_v39 = vmul.f32 %v9352_v34, %v11666_v51  ;;  %v1483_v43 = vmul.f32 %v9352_v34, %v11668_v10  ;;  %v11671_v17 = vld [vmem:[#allocation89_spill] sm:$0xff]  ;;  %v9645_v7 = vmul.f32 %v9352_v34, %v11673_v3  ;;  %v11675_v44 = vld [vmem:[#allocation39_spill] sm:$0xff] }
 0x333   : > { %11665 = vst [vmem:[#allocation69_spill] sm:$0xff] %v9627_v61  ;;  %11670 = vst [vmem:[#allocation35_spill] sm:$0xff] %v9637_v41  ;;  %v9641_v54 = vmul.f32 %v9352_v34, %v11671_v17  ;;  %v9649_v51 = vmul.f32 %v9352_v34, %v11675_v44  ;;  %v11677_v26 = vld [vmem:[#allocation40_spill] sm:$0xff]  ;;  %v11678_v10 = vld [vmem:[#allocation41_spill] sm:$0xff]  ;;  %v1533_v20 = vadd.f32 %v1485_v27, %v1241_v57 }
 0x334   : > { %11667 = vst [vmem:[#allocation71_spill] sm:$0xff] %v9631_v39  ;;  %11674 = vst [vmem:[#allocation74_spill] sm:$0xff] %v9645_v7  ;;  %v9653_v59 = vmul.f32 %v9352_v34, %v11677_v26  ;;  %v9657_v63 = vmul.f32 %v9352_v34, %v11678_v10  ;;  %v11679_v39 = vld [vmem:[#allocation42_spill] sm:$0xff]  ;;  %v11681_v7 = vld [vmem:[#allocation44_spill] sm:$0xff]  ;;  %v9692_v27 = vmul.f32 %v9352_v34, %v11688_v45 }
 0x335   : > { %11672 = vst [vmem:[#allocation36_spill] sm:$0xff] %v9641_v54  ;;  %11676 = vst [vmem:[#allocation37_spill] sm:$0xff] %v9649_v51  ;;  %v9661_v17 = vmul.f32 %v9352_v34, %v11679_v39  ;;  %v11680_v54 = vld [vmem:[#allocation43_spill] sm:$0xff]  ;;  %v9669_v44 = vmul.f32 %v9352_v34, %v11681_v7  ;;  %v11683_v60 = vld [vmem:[#allocation45_spill] sm:$0xff]  ;;  %v1831_v21 = vmul.f32 2.0, %v1533_v20 }
 0x336   : > { %v9665_v3 = vmul.f32 %v9352_v34, %v11680_v54  ;;  %v9673_v26 = vmul.f32 %v9352_v34, %v11683_v60  ;;  %v7966_v10 = vld [vmem:[%s11394_s1 + $0x140] sm:$0xff]  ;;  %v11687_v7 = vld [vmem:[#allocation48_spill] sm:$0xff]  ;;  %v1531_v60 = vadd.f32 %v1483_v43, %v1239_v30  ;;  %11689 = vst [vmem:[#allocation91_spill] sm:$0xff] %v9692_v27  ;;  %v11698_v30 = vld [vmem:[#allocation53_spill] sm:$0xff] }
 0x337   : > { %11682 = vst [vmem:[#allocation38_spill] sm:$0xff] %v9669_v44  ;;  %1128 = vperm.xlu1 %7594, %v7966_v10   ;;  %v11684_v39 = vld [vmem:[#allocation46_spill] sm:$0xff]  ;;  %v11686_v54 = vld [vmem:[#allocation47_spill] sm:$0xff]  ;;  %v9688_v23 = vmul.f32 %v9352_v34, %v11687_v7  ;;  %v11696_v44 = vld [vmem:[#allocation52_spill] sm:$0xff]  ;;  %v9712_v45 = vmul.f32 %v9352_v34, %v11698_v30 }
 0x338   : > { %v9680_v32 = vmul.f32 %v9352_v34, %v11684_v39  ;;  %v9684_v5 = vmul.f32 %v9352_v34, %v11686_v54  ;;  %v11690_v57 = vld [vmem:[#allocation50_spill] sm:$0xff]  ;;  %v9700_v39 = vmul.f32 %v9352_v34, %v11692_v14  ;;  %v9708_v7 = vmul.f32 %v9352_v34, %v11696_v44  ;;  %v11700_v43 = vld [vmem:[#allocation97_spill] sm:$0xff]  ;;  %v11701_v27 = vld [vmem:[#allocation99_spill] sm:$0xff] }
 0x339   : > { %v9696_v10 = vmul.f32 %v9352_v34, %v11690_v57  ;;  %11699 = vst [vmem:[#allocation43_spill] sm:$0xff] %v9712_v45  ;;  %v610_v57 = vmul.f32 %v9263_v29, %v11700_v43  ;;  %v593_v62 = vmul.f32 %v9263_v29, %v11701_v27  ;;  %v11702_v14 = vld [vmem:[#allocation54_spill] sm:$0xff]  ;;  %v11706_v44 = vld [vmem:[#allocation103_spill] sm:$0xff]  ;;  %v1829_v45 = vmul.f32 2.0, %v1531_v60  ;;  %v11735_v61 = vld [vmem:[#allocation133_spill] sm:$0xff] }
 0x33a   : > { %11685 = vst [vmem:[#allocation89_spill] sm:$0xff] %v9680_v32  ;;  %11693 = vst [vmem:[#allocation40_spill] sm:$0xff] %v9700_v39  ;;  %v11694_v32 = vld [vmem:[#allocation93_spill] sm:$0xff]  ;;  %v9720_v39 = vmul.f32 %v9352_v34, %v11702_v14  ;;  %v589_v12 = vmul.f32 %v9263_v29, %v11706_v44  ;;  %v7967_v30 = vld [vmem:[%s11394_s1 + $0x148] sm:$0xff]  ;;  %v625_v14 = vmul.f32 %v9263_v29, %v9087_v47 }
 0x33b   : > { %11691 = vst [vmem:[#allocation39_spill] sm:$0xff] %v9696_v10  ;;  %v9704_v54 = vadd.f32 %v9344_v16, %v11694_v32  ;;  %11697 = vst [vmem:[#allocation42_spill] sm:$0xff] %v9708_v7  ;;  %v11704_v32 = vld [vmem:[#allocation56_spill] sm:$0xff]  ;;  %1132 = vperm.xlu1 %7594, %v7967_v30   ;;  %v11707_v43 = vld [vmem:[#allocation58_spill] sm:$0xff]  ;;  %v9749_v30 = vmul.f32 %v9263_v29, %v9095_v49  ;;  %v9769_v49 = vmul.f32 %v9263_v29, %v9118_v58 }
 0x33c   : > { %11703 = vst [vmem:[#allocation44_spill] sm:$0xff] %v9720_v39  ;;  %v9733_v27 = vmul.f32 %v9352_v34, %v11707_v43  ;;  %v11711_v20 = vld [vmem:[#allocation62_spill] sm:$0xff]  ;;  %v11713_v43 = vld [vmem:[#allocation107_spill] sm:$0xff]  ;;  %v11714_v47 = vld [vmem:[#allocation64_spill] sm:$0xff]  ;;  %v1877_v53 = vsub.f32 %v9389_v31, %v1829_v45 }
 0x33d   : > { %11695 = vst [vmem:[#allocation41_spill] sm:$0xff] %v9704_v54  ;;  %v9724_v54 = vmul.f32 %v9352_v34, %v11704_v32  ;;  %v885_v32 = vmul.f32 %v9260_v2, %v9146_v15  ;;  %v9745_v52 = vmul.f32 %v9352_v34, %v11711_v20  ;;  %v9757_v15 = vmul.f32 %v9352_v34, %v11714_v47  ;;  %v11716_v60 = vld [vmem:[#allocation66_spill] sm:$0xff]  ;;  %v11722_v58 = vld [vmem:[#allocation116_spill] sm:$0xff]  ;;  %v11731_v31 = vld [vmem:[#allocation79_spill] sm:$0xff] }
 0x33e   : > { %11708 = vst [vmem:[#allocation46_spill] sm:$0xff] %v9733_v27  ;;  %v9753_v27 = vmul.f32 %v9263_v29, %v11713_v43  ;;  %v9777_v47 = vmul.f32 %v9263_v29, %v11720_v18  ;;  %v9787_v24 = vmul.f32 %v9263_v29, %v11722_v58  ;;  %v11724_v18 = vld [vmem:[#allocation130_spill] sm:$0xff]  ;;  %v884_v58 = vmul.f32 %v9260_v2, %v11728_v0  ;;  %v11733_v39 = vld [vmem:[#allocation129_spill] sm:$0xff]  ;;  %v11734_v35 = vld [vmem:[#allocation147_spill] sm:$0xff] }
 0x33f   : > { %11705 = vst [vmem:[#allocation45_spill] sm:$0xff] %v9724_v54  ;;  %v11709_v54 = vld [vmem:[#allocation60_spill] sm:$0xff]  ;;  %11712 = vst [vmem:[#allocation48_spill] sm:$0xff] %v9745_v52  ;;  %v605_v51 = vmul.f32 %v9263_v29, %v11724_v18  ;;  %v11727_v41 = vld [vmem:[#allocation122_spill] sm:$0xff]  ;;  %v897_v45 = vmul.f32 %v9260_v2, %v11731_v31  ;;  %v1176_v0 = vmul.f32 %v9355_v1, %v11734_v35  ;;  %v1925_v56 = vmax.f32 %v1877_v53, 0.0 }
 0x340   : > { %v9741_v44 = vmul.f32 %v9352_v34, %v11709_v54  ;;  %11715 = vst [vmem:[#allocation49_spill] sm:$0xff] %v9757_v15  ;;  %v9761_v54 = vmul.f32 %v9352_v34, %v11716_v60  ;;  %v11719_v52 = vld [vmem:[#allocation112_spill] sm:$0xff]  ;;  %v1879_v15 = vsub.f32 %v9361_v36, %v1831_v21  ;;  %v11725_v36 = vld [vmem:[#allocation70_spill] sm:$0xff]  ;;  %v11732_v18 = vld [vmem:[#allocation127_spill] sm:$0xff] }
 0x341   : > { %v9773_v43 = vmul.f32 %v9263_v29, %v11719_v52  ;;  %v11721_v60 = vld [vmem:[#allocation128_spill] sm:$0xff]  ;;  %v9789_v52 = vadd.f32 %v885_v32, %v593_v62  ;;  %v902_v21 = vmul.f32 %v9260_v2, %v11725_v36  ;;  %v9812_v36 = vmul.f32 %v9260_v2, %v11732_v18  ;;  %v7969_v31 = vld [vmem:[%s11394_s1] sm:$0xff] }
 0x342   : > { %11710 = vst [vmem:[#allocation47_spill] sm:$0xff] %v9741_v44  ;;  %11717 = vst [vmem:[#allocation50_spill] sm:$0xff] %v9761_v54  ;;  %v11718_v44 = vld [vmem:[#allocation109_spill] sm:$0xff]  ;;  %v592_v54 = vmul.f32 %v9263_v29, %v11721_v60  ;;  %v11726_v60 = vld [vmem:[#allocation119_spill] sm:$0xff]  ;;  %v1973_v40 = vmul.f32 -0.5, %v1925_v56 }
 0x343   : > { %v9765_v20 = vmul.f32 %v9263_v29, %v11718_v44  ;;  %v7968_v44 = vld [vmem:[%s11394_s1 + $0x88] sm:$0xff]  ;;  %11723 = vst [vmem:[#allocation51_spill] sm:$0xff] %v9789_v52  ;;  %v882_v25 = vmul.f32 %v9260_v2, %v11726_v60  ;;  %v9816_v60 = vmul.f32 %v9260_v2, %v11733_v39  ;;  %v945_v39 = vadd.f32 %v897_v45, %v605_v51  ;;  %v11745_v51 = vld [vmem:[#allocation77_spill] sm:$0xff]  ;;  %v11750_v10 = vld [vmem:[#allocation82_spill] sm:$0xff] }
 0x344   : > { %1036 = vperm.xlu1 %7594, %v7968_v44   ;;  %v9800_v44 = vmul.f32 %v9260_v2, %v11727_v41  ;;  %v11729_v62 = vld [vmem:[#allocation124_spill] sm:$0xff]  ;;  %v1927_v41 = vmax.f32 %v1879_v15, 0.0  ;;  %v932_v7 = vadd.f32 %v884_v58, %v592_v54  ;;  %v1189_v15 = vmul.f32 %v9355_v1, %v11738_v42  ;;  %v11746_v45 = vld [vmem:[#allocation85_spill] sm:$0xff]  ;;  %v11748_v52 = vld [vmem:[#allocation151_spill] sm:$0xff] }
 0x345   : > { %v9806_v32 = vmul.f32 %v9260_v2, %v11729_v62  ;;  %v590_v62 = vmul.f32 %v9263_v29, %v11735_v61  ;;  %v11739_v54 = vld [vmem:[#allocation68_spill] sm:$0xff]  ;;  %v9835_v58 = vadd.f32 %v902_v21, %v610_v57  ;;  %v9849_v42 = vmul.f32 %v9260_v2, %v11745_v51  ;;  %v11747_v57 = vld [vmem:[#allocation134_spill] sm:$0xff] }
 0x346   : > { %v9833_v35 = vadd.f32 %v9344_v16, %v11739_v54  ;;  %v11742_v61 = vld [vmem:[#allocation72_spill] sm:$0xff]  ;;  %v917_v54 = vmul.f32 %v9260_v2, %v11746_v45  ;;  %v603_v21 = vmul.f32 %v9263_v29, %v11747_v57  ;;  %v1975_v16 = vmul.f32 -0.5, %v1927_v41 }
 0x347   : > { %11730 = vst [vmem:[#allocation93_spill] sm:$0xff] %v9806_v32  ;;  %v11736_v32 = vld [vmem:[#allocation132_spill] sm:$0xff]  ;;  %11741 = vst [vmem:[#allocation97_spill] sm:$0xff] %v9835_v58  ;;  %v9839_v9 = vmul.f32 %v9260_v2, %v11742_v61  ;;  %v1224_v61 = vadd.f32 %v1176_v0, %v932_v7  ;;  %v895_v45 = vmul.f32 %v9260_v2, %v11750_v10 }
 0x348   : > { %968 = vperm.xlu1 %7594, %v7969_v31   ;;  %v9827_v18 = vmul.f32 %v9260_v2, %v11736_v32  ;;  %11740 = vst [vmem:[#allocation53_spill] sm:$0xff] %v9833_v35  ;;  %v11743_v31 = vld [vmem:[#allocation81_spill] sm:$0xff]  ;;  %v11744_v32 = vld [vmem:[#allocation76_spill] sm:$0xff]  ;;  %v930_v35 = vadd.f32 %v882_v25, %v590_v62  ;;  %v1237_v57 = vadd.f32 %v1189_v15, %v945_v39  ;;  %v11751_v25 = vld [vmem:[#allocation83_spill] sm:$0xff]  ;;  %v2053_v39 = vmul.f32 1.442695, %v1975_v16 }
 0x349   : > { %v881_v38 = vmul.f32 %v9260_v2, %v11743_v31  ;;  %v9845_v53 = vmul.f32 %v9260_v2, %v11744_v32  ;;  %v1174_v31 = vmul.f32 %v9355_v1, %v11748_v52  ;;  %v7970_v32 = vld [vmem:[%s11394_s1 + $0x130] sm:$0xff]  ;;  %v9870_v7 = vmul.f32 %v9260_v2, %v11751_v25  ;;  %v11758_v16 = vld [vmem:[#allocation90_spill] sm:$0xff] }
 0x34a   : > { %11737 = vst [vmem:[#allocation52_spill] sm:$0xff] %v9827_v18  ;;  %v11749_v18 = vld [vmem:[#allocation80_spill] sm:$0xff]  ;;  %v9880_v58 = vadd.f32 %v917_v54, %v625_v14  ;;  %v943_v56 = vadd.f32 %v895_v45, %v603_v21  ;;  %v1516_v15 = vadd.f32 %v9653_v59, %v1224_v61  ;;  %v2049_v54 = vmul.f32 1.442695, %v1973_v40  ;;  %v11759_v61 = vld [vmem:[#allocation137_spill] sm:$0xff] }
 0x34b   : > { %v9862_v51 = vmul.f32 %v9260_v2, %v11749_v18  ;;  %v9866_v41 = vadd.f32 %v881_v38, %v589_v12  ;;  %v11752_v52 = vld [vmem:[#allocation88_spill] sm:$0xff]  ;;  %v9878_v18 = vmul.f32 %v9260_v2, %v11754_v46  ;;  %v1187_v38 = vmul.f32 %v9355_v1, %v9267_v50  ;;  %v11755_v12 = vld [vmem:[#allocation86_spill] sm:$0xff]  ;;  %v11756_v46 = vld [vmem:[#allocation87_spill] sm:$0xff] }
 0x34c   : > { %1120 = vperm.xlu1 %7594, %v7970_v32   ;;  %v877_v0 = vmul.f32 %v9260_v2, %v11752_v52  ;;  %v11753_v62 = vld [vmem:[#allocation92_spill] sm:$0xff]  ;;  %v9886_v10 = vmul.f32 %v9260_v2, %v11755_v12  ;;  %v1222_v25 = vadd.f32 %v1174_v31, %v930_v35  ;;  %v7971_v52 = vld [vmem:[%s11394_s1 + $0x138] sm:$0xff]  ;;  %v893_v14 = vmul.f32 %v9260_v2, %v11756_v46 }
 0x34d   : > { %v916_v32 = vmul.f32 %v9260_v2, %v11753_v62  ;;  %v11757_v21 = vld [vmem:[#allocation96_spill] sm:$0xff]  ;;  %v1529_v45 = vadd.f32 %v9657_v63, %v1237_v57  ;;  %v9902_v59 = vmul.f32 %v9260_v2, %v11758_v16  ;;  %v588_v31 = vmul.f32 %v9263_v29, %v11759_v61  ;;  %v11760_v12 = vld [vmem:[#allocation94_spill] sm:$0xff] }
 0x34e   : > { %v913_v50 = vmul.f32 %v9260_v2, %v11757_v21  ;;  %v9898_v62 = vadd.f32 %v877_v0, %v9749_v30  ;;  %v9911_v40 = vmul.f32 %v9260_v2, %v11760_v12  ;;  %v11762_v30 = vld [vmem:[#allocation102_spill] sm:$0xff]  ;;  %v1235_v0 = vadd.f32 %v1187_v38, %v943_v56  ;;  %v7972_v16 = vld [vmem:[%s11394_s1 + $0x128] sm:$0xff]  ;;  %v11764_v12 = vld [vmem:[#allocation105_spill] sm:$0xff] }
 0x34f   : > { %v9905_v35 = vadd.f32 %v916_v32, %v9753_v27  ;;  %v873_v57 = vmul.f32 %v9260_v2, %v11762_v30  ;;  %7837 = vpow2.f32 %v2053_v39  ;;  %v1814_v46 = vmul.f32 2.0, %v1516_v15  ;;  %v11763_v32 = vld [vmem:[#allocation139_spill] sm:$0xff]  ;;  %v11765_v38 = vld [vmem:[#allocation98_spill] sm:$0xff] }
 0x350   : > { %1124 = vperm.xlu1 %7594, %v7971_v52   ;;  %v11761_v52 = vld [vmem:[#allocation95_spill] sm:$0xff]  ;;  %v1514_v27 = vadd.f32 %v9661_v17, %v1222_v25  ;;  %v601_v21 = vmul.f32 %v9263_v29, %v11763_v32  ;;  %7839 = vpow2.f32 %v2049_v54  ;;  %v9926_v61 = vadd.f32 %v913_v50, %v9765_v20  ;;  %v11766_v17 = vld [vmem:[#allocation110_spill] sm:$0xff]  ;;  %v11767_v54 = vld [vmem:[#allocation100_spill] sm:$0xff] }
 0x351   : > { %v9915_v63 = vmul.f32 %v9260_v2, %v11761_v52  ;;  %v912_v52 = vmul.f32 %v9260_v2, %v11764_v12  ;;  %v1827_v56 = vmul.f32 2.0, %v1529_v45  ;;  %v9932_v39 = vmul.f32 %v9260_v2, %v11765_v38 }
 0x352   : > { %v909_v15 = vmul.f32 %v9260_v2, %v11766_v17  ;;  %v928_v25 = vadd.f32 %v9800_v44, %v588_v31  ;;  %v1172_v30 = vmul.f32 %v9355_v1, %v9274_v19  ;;  %v9941_v20 = vmul.f32 %v9260_v2, %v11767_v54  ;;  %v11769_v19 = vld [vmem:[#allocation73_spill] sm:$0xff]  ;;  %v11770_v17 = vld [vmem:[#allocation104_spill] sm:$0xff] }
 0x353   : > { %v9944_v50 = vadd.f32 %v873_v57, %v9769_v49  ;;  %v1527_v45 = vadd.f32 %v9665_v3, %v1235_v0  ;;  %v1185_v32 = vmul.f32 %v9355_v1, %v9282_v8  ;;  %v1862_v44 = vsub.f32 %v9406_v4, %v1814_v46  ;;  %v11771_v3 = vld [vmem:[#allocation106_spill] sm:$0xff]  ;;  %v11772_v0 = vld [vmem:[#allocation108_spill] sm:$0xff] }
 0x354   : > { %1116 = vperm.xlu1 %7594, %v7972_v16   ;;  %v11768_v16 = vld [vmem:[#allocation115_spill] sm:$0xff]  ;;  %v1812_v31 = vmul.f32 2.0, %v1514_v27  ;;  %v941_v38 = vadd.f32 %v893_v14, %v601_v21  ;;  %v9955_v54 = vmul.f32 %v9260_v2, %v11770_v17  ;;  %v9958_v49 = vadd.f32 %v912_v52, %v9773_v43  ;;  %v11773_v27 = vld [vmem:[#allocation141_spill] sm:$0xff] }
 0x355   : > { %v908_v12 = vmul.f32 %v9260_v2, %v11768_v16  ;;  %v9962_v57 = vmul.f32 %v9260_v2, %v11771_v3  ;;  %v1875_v8 = vsub.f32 %v9410_v48, %v1827_v56  ;;  %v9967_v4 = vmul.f32 %v9260_v2, %v11772_v0  ;;  %v11774_v16 = vld [vmem:[#allocation111_spill] sm:$0xff]  ;;  %v11775_v52 = vld [vmem:[#allocation113_spill] sm:$0xff] }
 0x356   : > { %v9970_v14 = vadd.f32 %v909_v15, %v9777_v47  ;;  %v1220_v46 = vadd.f32 %v1172_v30, %v928_v25  ;;  %v586_v21 = vmul.f32 %v9263_v29, %v11773_v27  ;;  %v9976_v43 = vmul.f32 %v9260_v2, %v11774_v16  ;;  %v9988_v30 = vpop.permute.xlu1 %1400  ;;  %v7973_v3 = vld [vmem:[%s11394_s1 + $0x108] sm:$0xff]  ;;  %v11778_v0 = vld [vmem:[#allocation117_spill] sm:$0xff]  ;;  %v11780_v27 = vld [vmem:[#allocation118_spill] sm:$0xff] }
 0x357   : > { %v1825_v48 = vmul.f32 2.0, %v1527_v45  ;;  %v1170_v56 = vmul.f32 %v9355_v1, %v9288_v28  ;;  %v9985_v17 = vadd.f32 %v908_v12, %v9787_v24  ;;  %v1910_v47 = vmax.f32 %v1862_v44, 0.0  ;;  %11777 = vst [vmem:[#allocation54_spill] sm:$0xff] %v9988_v30  ;;  %v11784_v16 = vld [vmem:[#allocation123_spill] sm:$0xff] }
 0x358   : > { %1108 = vperm.xlu1 %7594, %v11769_v19   ;;  %v9980_v19 = vmul.f32 %v9260_v2, %v11775_v52  ;;  %v1860_v15 = vsub.f32 %v9422_v13, %v1812_v31  ;;  %v1233_v25 = vadd.f32 %v1185_v32, %v941_v38  ;;  %v9995_v45 = vmul.f32 %v9260_v2, %v11778_v0  ;;  %v11781_v32 = vld [vmem:[#allocation120_spill] sm:$0xff] }
 0x359   : > { %11776 = vst [vmem:[#allocation99_spill] sm:$0xff] %v9985_v17  ;;  %v9999_v28 = vmul.f32 %v9352_v34, %v11780_v27  ;;  %v1923_v24 = vmax.f32 %v1875_v8, 0.0  ;;  %v1183_v13 = vmul.f32 %v9355_v1, %v9296_v37  ;;  %v10005_v12 = vmul.f32 %v9352_v34, %v11781_v32  ;;  %v11783_v38 = vld [vmem:[#allocation144_spill] sm:$0xff]  ;;  %v11785_v27 = vld [vmem:[#allocation125_spill] sm:$0xff]  ;;  %v11789_v34 = vld [vmem:[#allocation162_spill] sm:$0xff] }
 0x35a   : > { %11779 = vst [vmem:[#allocation56_spill] sm:$0xff] %v9995_v45  ;;  %v1512_v44 = vadd.f32 %v9673_v26, %v1220_v46  ;;  %v926_v31 = vadd.f32 %v9812_v36, %v586_v21  ;;  %v599_v2 = vmul.f32 %v9263_v29, %v11783_v38  ;;  %v594_v52 = vmul.f32 %v9263_v29, %v11784_v16  ;;  %v10026_v38 = vpop.xlane.xlu1 %1700 }
 0x35b   : > { %11782 = vst [vmem:[#allocation103_spill] sm:$0xff] %v10005_v12  ;;  %v1873_v0 = vsub.f32 %v9414_v6, %v1825_v48  ;;  %v10016_v8 = vmul.f32 %v9355_v1, %v9303_v11  ;;  %v10020_v37 = vmul.f32 %v9355_v1, %v9310_v55  ;;  %v608_v26 = vmul.f32 %v9263_v29, %v11785_v27  ;;  %v11788_v48 = vld [vmem:[#allocation126_spill] sm:$0xff]  ;;  %v11792_v12 = vld [vmem:[#allocation165_spill] sm:$0xff] }
 0x35c   : > { %1100 = vperm.xlu1 %7594, %v7973_v3   ;;  %v1958_v36 = vmul.f32 -0.5, %v1910_v47  ;;  %v1908_v46 = vmax.f32 %v1860_v15, 0.0  ;;  %v1525_v21 = vadd.f32 %v9684_v5, %v1233_v25  ;;  %v11786_v32 = vmov 3   ;;  %11787 = vst [vmem:[#allocation58_spill] sm:$0xff] %v10026_v38  ;;  %v10028_v6 = vpop.eup %7837  ;;  %v7974_v5 = vld [vmem:[%s11394_s1 + $0x100] sm:$0xff] }
 0x35d   : > { %v591_v11 = vmul.f32 %v9263_v29, %v11788_v48  ;;  %v1971_v16 = vmul.f32 -0.5, %v1923_v24  ;;  %v10034_v55 = vmul.f32 %v9355_v1, %v9318_v33  ;;  %v10038_v47 = vmul.f32 %v9355_v1, %v11789_v34  ;;  %v10043_v15 = vpop.eup %7839  ;;  %v11790_v24 = vld [vmem:[#allocation163_spill] sm:$0xff] }
 0x35e   : > { %v1810_v25 = vmul.f32 2.0, %v1512_v44  ;;  %v1218_v27 = vadd.f32 %v1170_v56, %v926_v31  ;;  %v10048_v48 = vmul.f32 %v9355_v1, %v11790_v24  ;;  %v934_v33 = vadd.f32 %v9839_v9, %v594_v52  ;;  %v11791_v38 = vld [vmem:[#allocation131_spill] sm:$0xff]  ;;  %v1093_v31 = vpop.permute.xlu1 %1092 }
 0x35f   : > { %v606_v34 = vmul.f32 %v9263_v29, %v11791_v38  ;;  %v1921_v30 = vmax.f32 %v1873_v0, 0.0  ;;  %v10055_v17 = vmul.f32 %v9355_v1, %v11792_v12  ;;  %v2019_v56 = vmul.f32 1.442695, %v1958_v36  ;;  %v11793_v9 = vld [vmem:[#allocation135_spill] sm:$0xff] }
 0x360   : > { %7595 = vset.pattern.permute.xlu1 %v11786_v32  ;;  %v939_v32 = vadd.f32 %v9816_v60, %v599_v2  ;;  %v1956_v44 = vmul.f32 -0.5, %v1908_v46  ;;  %v1823_v60 = vmul.f32 2.0, %v1525_v21  ;;  %v10061_v2 = vadd.f32 %v9849_v42, %v591_v11  ;;  %v11795_v21 = vld [vmem:[#allocation136_spill] sm:$0xff] }
 0x361   : > { %1388 = vperm.xlu1 %7595, %v7974_v5   ;;  %v10058_v5 = vadd.f32 %v9845_v53, %v608_v26  ;;  %v2045_v24 = vmul.f32 1.442695, %v1971_v16  ;;  %v604_v52 = vmul.f32 %v9263_v29, %v11793_v9  ;;  %v1194_v0 = vmul.f32 %v9355_v1, %v1093_v31  ;;  %v11794_v26 = vld [vmem:[#allocation148_spill] sm:$0xff]  ;;  %v11796_v16 = vld [vmem:[#allocation97_spill] sm:$0xff] }
 0x362   : > { %v1858_v12 = vsub.f32 %v9434_v22, %v1810_v25  ;;  %v1510_v38 = vadd.f32 %v9688_v23, %v1218_v27  ;;  %v1231_v53 = vadd.f32 %v1183_v13, %v939_v32  ;;  %v584_v36 = vmul.f32 %v9263_v29, %v11794_v26  ;;  %v11798_v22 = vld [vmem:[#allocation152_spill] sm:$0xff]  ;;  %v1025_v13 = vpop.permute.xlu1 %1024  ;;  %v11800_v26 = vld [vmem:[#allocation39_spill] sm:$0xff] }
 0x363   : > { %v10071_v46 = vadd.f32 %v9862_v51, %v606_v34  ;;  %v1969_v42 = vmul.f32 -0.5, %v1921_v30  ;;  %v587_v11 = vmul.f32 %v9263_v29, %v11795_v21  ;;  %v1242_v9 = vadd.f32 %v1194_v0, %v11796_v16  ;;  %v11799_v51 = vld [vmem:[#allocation32_spill] sm:$0xff] }
 0x364   : > { %7841 = vpow2.f32 %v2019_v56  ;;  %v2015_v31 = vmul.f32 1.442695, %v1956_v44  ;;  %v597_v23 = vmul.f32 %v9263_v29, %v11798_v22  ;;  %v10080_v25 = vadd.f32 %v9870_v7, %v604_v52  ;;  %v11801_v56 = vld [vmem:[#allocation52_spill] sm:$0xff]  ;;  %v11803_v7 = vld [vmem:[#allocation138_spill] sm:$0xff] }
 0x365   : > { %1392 = vperm.xlu1 %7595, %v7973_v3   ;;  %v11797_v3 = vld [vmem:[#allocation17_spill] sm:$0xff]  ;;  %7843 = vpow2.f32 %v2045_v24  ;;  %v1534_v27 = vadd.f32 %v11799_v51, %v1242_v9  ;;  %v1177_v30 = vmul.f32 %v9355_v1, %v1025_v13  ;;  %v1906_v32 = vmax.f32 %v1858_v12, 0.0  ;;  %v11806_v51 = vld [vmem:[#allocation180_spill] sm:$0xff] }
 0x366   : > { %v1871_v45 = vsub.f32 %v11797_v3, %v1823_v60  ;;  %v1808_v34 = vmul.f32 2.0, %v1510_v38  ;;  %v1523_v0 = vadd.f32 %v11800_v26, %v1231_v53  ;;  %v924_v44 = vadd.f32 %v11801_v56, %v584_v36  ;;  %v11802_v3 = vld [vmem:[#allocation51_spill] sm:$0xff]  ;;  %v1029_v12 = vpop.permute.xlu1 %1028  ;;  %v11804_v53 = vld [vmem:[#allocation169_spill] sm:$0xff] }
 0x367   : > { %v2041_v21 = vmul.f32 1.442695, %v1969_v42  ;;  %v10087_v60 = vadd.f32 %v9878_v18, %v587_v11  ;;  %v1832_v16 = vmul.f32 2.0, %v1534_v27  ;;  %v1225_v24 = vadd.f32 %v1177_v30, %v11802_v3  ;;  %v2666_v38 = vld [vmem:[%s11395_s2 + $0x8] sm:$0xff]  ;;  %v11805_v42 = vld [vmem:[#allocation34_spill] sm:$0xff] }
 0x368   : > { %7845 = vpow2.f32 %v2015_v31  ;;  %v626_v52 = vmul.f32 %v9263_v29, %v11803_v7  ;;  %v1919_v9 = vmax.f32 %v1871_v45, 0.0  ;;  %v937_v22 = vadd.f32 %v9941_v20, %v597_v23  ;;  %v11807_v3 = vld [vmem:[#allocation140_spill] sm:$0xff] }
 0x369   : > { %v1880_v36 = vsub.f32 %v11804_v53, %v1832_v16  ;;  %v1517_v18 = vadd.f32 %v11805_v42, %v1225_v24  ;;  %v1178_v11 = vmul.f32 %v9355_v1, %v1029_v12  ;;  %v10099_v13 = vpack.c.bf16 %v2666_v38, %v2666_v38  ;;  %v11810_v53 = vld [vmem:[#allocation21_spill] sm:$0xff] }
 0x36a   : > { %v1954_v31 = vmul.f32 -0.5, %v1906_v32  ;;  %v1856_v27 = vsub.f32 %v11806_v51, %v1808_v34  ;;  %v1821_v30 = vmul.f32 2.0, %v1523_v0  ;;  %v1216_v45 = vadd.f32 %v10016_v8, %v924_v44  ;;  %v1085_v7 = vpop.permute.xlu1 %1084  ;;  %v11808_v0 = vld [vmem:[#allocation170_spill] sm:$0xff]  ;;  %v11809_v8 = vld [vmem:[#allocation69_spill] sm:$0xff] }
 0x36b   : > { %7847 = vpow2.f32 %v2041_v21  ;;  %v1928_v20 = vmax.f32 %v1880_v36, 0.0  ;;  %v1815_v23 = vmul.f32 2.0, %v1517_v18  ;;  %v1226_v26 = vadd.f32 %v1178_v11, %v934_v33  ;;  %2712 = vmatprep.mubr.bf16.mxu0 %v10099_v13 }
 0x36c   : > { %v10105_v56 = vadd.f32 %v9886_v10, %v626_v52  ;;  %v1967_v16 = vmul.f32 -0.5, %v1919_v9  ;;  %v602_v24 = vmul.f32 %v9263_v29, %v11807_v3  ;;  %v1229_v32 = vadd.f32 %v10020_v37, %v937_v22  ;;  %v11811_v10 = vld [vmem:[#allocation42_spill] sm:$0xff]  ;;  %v11812_v22 = vld [vmem:[#allocation93_spill] sm:$0xff] }
 0x36d   : > { %v1976_v34 = vmul.f32 -0.5, %v1928_v20  ;;  %v1863_v12 = vsub.f32 %v11808_v0, %v1815_v23  ;;  %v1518_v44 = vadd.f32 %v11809_v8, %v1226_v26  ;;  %v1192_v21 = vmul.f32 %v9355_v1, %v1085_v7  ;;  %v11813_v20 = vld [vmem:[#allocation143_spill] sm:$0xff]  ;;  %v11814_v26 = vld [vmem:[#allocation44_spill] sm:$0xff] }
 0x36e   : > { %v2011_v33 = vmul.f32 1.442695, %v1954_v31  ;;  %v1904_v38 = vmax.f32 %v1856_v27, 0.0  ;;  %v1869_v36 = vsub.f32 %v11810_v53, %v1821_v30  ;;  %v1508_v52 = vadd.f32 %v11811_v10, %v1216_v45  ;;  %v1017_v31 = vpop.permute.xlu1 %1016  ;;  %v11815_v45 = vld [vmem:[#allocation171_spill] sm:$0xff] }
 0x36f   : > { %v2055_v9 = vmul.f32 1.442695, %v1976_v34  ;;  %v1911_v42 = vmax.f32 %v1863_v12, 0.0  ;;  %v1816_v18 = vmul.f32 2.0, %v1518_v44  ;;  %v1240_v11 = vadd.f32 %v1192_v21, %v10058_v5  ;;  %v11816_v34 = vld [vmem:[#allocation35_spill] sm:$0xff] }
 0x370   : > { %v2037_v37 = vmul.f32 1.442695, %v1967_v16  ;;  %v10117_v51 = vadd.f32 %v11812_v22, %v602_v24  ;;  %v623_v23 = vmul.f32 %v9263_v29, %v11813_v20  ;;  %v1521_v3 = vadd.f32 %v11814_v26, %v1229_v32  ;;  %v11817_v24 = vld [vmem:[#allocation145_spill] sm:$0xff] }
 0x371   : > { %v10122_v27 = vpop.eup %7841  ;;  %7849 = vpow2.f32 %v2055_v9  ;;  %v1959_v30 = vmul.f32 -0.5, %v1911_v42  ;;  %v1864_v7 = vsub.f32 %v11815_v45, %v1816_v18  ;;  %v1532_v0 = vadd.f32 %v11816_v34, %v1240_v11 }
 0x372   : > { %v10126_v12 = vpop.eup %7843  ;;  %v1952_v5 = vmul.f32 -0.5, %v1904_v38  ;;  %v1917_v16 = vmax.f32 %v1869_v36, 0.0  ;;  %v600_v8 = vmul.f32 %v9263_v29, %v11817_v24  ;;  %v1175_v44 = vmul.f32 %v9355_v1, %v1017_v31  ;;  %v1077_v11 = vpop.permute.xlu1 %1076  ;;  %v11818_v36 = vld [vmem:[#allocation172_spill] sm:$0xff]  ;;  %v11822_v24 = vld [vmem:[#allocation154_spill] sm:$0xff] }
 0x373   : > { %7851 = vpow2.f32 %v2011_v33  ;;  %v1806_v32 = vmul.f32 2.0, %v1508_v52  ;;  %v1912_v21 = vmax.f32 %v1864_v7, 0.0  ;;  %v1830_v53 = vmul.f32 2.0, %v1532_v0 }
 0x374   : > { %v10132_v10 = vadd.f32 %v9902_v59, %v623_v23  ;;  %v1819_v9 = vmul.f32 2.0, %v1521_v3  ;;  %v2021_v42 = vmul.f32 1.442695, %v1959_v30  ;;  %v1223_v18 = vadd.f32 %v1175_v44, %v10061_v2  ;;  %v11819_v59 = vld [vmem:[#allocation37_spill] sm:$0xff]  ;;  %v11820_v3 = vld [vmem:[#allocation182_spill] sm:$0xff] }
 0x375   : > { %v10135_v22 = vpop.eup %7845  ;;  %7853 = vpow2.f32 %v2037_v37  ;;  %v1960_v38 = vmul.f32 -0.5, %v1912_v21  ;;  %v1878_v20 = vsub.f32 %v11818_v36, %v1830_v53  ;;  %v1190_v26 = vmul.f32 %v9355_v1, %v1077_v11  ;;  %v11821_v37 = vld [vmem:[#allocation25_spill] sm:$0xff] }
 0x376   : > { %v2007_v33 = vmul.f32 1.442695, %v1952_v5  ;;  %v1965_v52 = vmul.f32 -0.5, %v1917_v16  ;;  %v10140_v31 = vadd.f32 %v9911_v40, %v600_v8  ;;  %v1515_v23 = vadd.f32 %v11819_v59, %v1223_v18  ;;  %v1009_v16 = vpop.permute.xlu1 %1008  ;;  %v11823_v8 = vld [vmem:[#allocation189_spill] sm:$0xff]  ;;  %v11824_v18 = vld [vmem:[#allocation146_spill] sm:$0xff] }
 0x377   : > { %v1854_v30 = vsub.f32 %v11820_v3, %v1806_v32  ;;  %v2023_v45 = vmul.f32 1.442695, %v1960_v38  ;;  %v1926_v2 = vmax.f32 %v1878_v20, 0.0  ;;  %v1238_v7 = vadd.f32 %v1190_v26, %v10071_v46  ;;  %v11825_v11 = vld [vmem:[#allocation173_spill] sm:$0xff] }
 0x378   : > { %v10145_v34 = vpop.eup %7847  ;;  %v1867_v0 = vsub.f32 %v11821_v37, %v1819_v9  ;;  %v1214_v44 = vadd.f32 %v10034_v55, %v11822_v24  ;;  %7855 = vpow2.f32 %v2021_v42  ;;  %v1813_v5 = vmul.f32 2.0, %v1515_v23  ;;  %v11826_v26 = vld [vmem:[#allocation45_spill] sm:$0xff] }
 0x379   : > { %7857 = vpow2.f32 %v2023_v45  ;;  %v1974_v40 = vmul.f32 -0.5, %v1926_v2  ;;  %v1530_v21 = vadd.f32 %v11823_v8, %v1238_v7  ;;  %v1173_v32 = vmul.f32 %v9355_v1, %v1009_v16  ;;  %v11827_v45 = vld [vmem:[#allocation175_spill] sm:$0xff] }
 0x37a   : > { %7859 = vpow2.f32 %v2007_v33  ;;  %v2033_v53 = vmul.f32 1.442695, %v1965_v52  ;;  %v583_v46 = vmul.f32 %v9263_v29, %v11824_v18  ;;  %v1861_v38 = vsub.f32 %v11825_v11, %v1813_v5  ;;  %v1069_v3 = vpop.permute.xlu1 %1068  ;;  %v11828_v33 = vld [vmem:[#allocation190_spill] sm:$0xff] }
 0x37b   : > { %v1902_v9 = vmax.f32 %v1854_v30, 0.0  ;;  %v2051_v36 = vmul.f32 1.442695, %v1974_v40  ;;  %v1828_v20 = vmul.f32 2.0, %v1530_v21  ;;  %v1221_v55 = vadd.f32 %v1173_v32, %v9866_v41 }
 0x37c   : > { %v1915_v42 = vmax.f32 %v1867_v0, 0.0  ;;  %v1506_v59 = vadd.f32 %v11826_v26, %v1214_v44  ;;  %v1909_v23 = vmax.f32 %v1861_v38, 0.0  ;;  %v1188_v7 = vmul.f32 %v9355_v1, %v1069_v3  ;;  %v11830_v0 = vld [vmem:[#allocation150_spill] sm:$0xff] }
 0x37d   : > { %7861 = vpow2.f32 %v2051_v36  ;;  %v1876_v2 = vsub.f32 %v11827_v45, %v1828_v20  ;;  %v1513_v52 = vadd.f32 %v11828_v33, %v1221_v55  ;;  %v11829_v37 = vmov 0.0   ;;  %v11832_v20 = vld [vmem:[#allocation38_spill] sm:$0xff] }
 0x37e   : > { %7284 = vmatprep.mubr.msk.bf16.mxu1 %vm8131_vm2, %v11829_v37  ;;  %v7850_v30 = vpop.eup %7849  ;;  %7863 = vpow2.f32 %v2033_v53  ;;  %v10163_v41 = vadd.f32 %v9915_v63, %v583_v46  ;;  %v622_v24 = vmul.f32 %v9263_v29, %v11830_v0  ;;  %v1957_v44 = vmul.f32 -0.5, %v1909_v23  ;;  %v1001_v53 = vpop.permute.xlu1 %1000  ;;  %v11831_v63 = vld [vmem:[#allocation176_spill] sm:$0xff] }
 0x37f   : > { %v1924_v5 = vmax.f32 %v1876_v2, 0.0  ;;  %v1811_v16 = vmul.f32 2.0, %v1513_v52  ;;  %v1236_v40 = vadd.f32 %v1188_v7, %v10080_v25  ;;  %v2104_v8 = vpack.c.bf16 %v7850_v30, %v10028_v6  ;;  %v11833_v25 = vld [vmem:[#allocation156_spill] sm:$0xff] }
 0x380   : > { %v10169_v21 = vpop.eup %7851  ;;  %v1950_v32 = vmul.f32 -0.5, %v1902_v9  ;;  %v1963_v18 = vmul.f32 -0.5, %v1915_v42  ;;  %v1804_v11 = vmul.f32 2.0, %v1506_v59  ;;  %v2017_v38 = vmul.f32 1.442695, %v1957_v44  ;;  %v11834_v7 = vld [vmem:[#allocation184_spill] sm:$0xff] }
 0x381   : > { %v1972_v36 = vmul.f32 -0.5, %v1924_v5  ;;  %v1859_v46 = vsub.f32 %v11831_v63, %v1811_v16  ;;  %v1528_v55 = vadd.f32 %v11832_v20, %v1236_v40  ;;  %v1171_v26 = vmul.f32 %v9355_v1, %v1001_v53  ;;  %6981 = vst [vmem:[#allocation2 + $0x78] sm:$0xff] %v2104_v8   ;;  %v11835_v63 = vld [vmem:[#allocation178_spill] sm:$0xff] }
 0x382   : > { %v10174_v23 = vpop.eup %7853  ;;  %v1227_v3 = vadd.f32 %v10038_v47, %v11833_v25  ;;  %7865 = vpow2.f32 %v2017_v38  ;;  %v2143_v45 = vunpack.c.l.bf16 %v2104_v8  ;;  %v2144_v9 = vunpack.c.h.bf16 %v2104_v8  ;;  %v1153_v44 = vpop.permute.xlu1 %1152  ;;  %v11836_v38 = vld [vmem:[#allocation55_spill] sm:$0xff] }
 0x383   : > { %v2047_v42 = vmul.f32 1.442695, %v1972_v36  ;;  %v1907_v59 = vmax.f32 %v1859_v46, 0.0  ;;  %v1826_v2 = vmul.f32 2.0, %v1528_v55  ;;  %v1219_v33 = vadd.f32 %v1171_v26, %v10087_v60  ;;  %v11837_v46 = vld [vmem:[#allocation47_spill] sm:$0xff] }
 0x384   : > { %v2003_v52 = vmul.f32 1.442695, %v1950_v32  ;;  %v1852_v0 = vsub.f32 %v11834_v7, %v1804_v11  ;;  %v2191_v5 = vsub.f32 %v10028_v6, %v2143_v45  ;;  %v2192_v16 = vsub.f32 %v7850_v30, %v2144_v9 }
 0x385   : > { %v7856_v40 = vpop.eup %7855  ;;  %7867 = vpow2.f32 %v2047_v42  ;;  %v1955_v53 = vmul.f32 -0.5, %v1907_v59  ;;  %v1874_v47 = vsub.f32 %v11835_v63, %v1826_v2  ;;  %v1511_v20 = vadd.f32 %v11836_v38, %v1219_v33  ;;  %v11838_v59 = vld [vmem:[#allocation177_spill] sm:$0xff] }
 0x386   : > { %v7858_v8 = vpop.eup %7857  ;;  %v10183_v36 = vmul.f32 1.442695, %v1963_v18  ;;  %v1519_v55 = vadd.f32 %v11837_v46, %v1227_v3  ;;  %v1209_v60 = vmul.f32 %v9355_v1, %v1153_v44  ;;  %v2224_v32 = vpack.c.bf16 %v2192_v16, %v2191_v5  ;;  %v1157_v18 = vpop.permute.xlu1 %1156 }
 0x387   : > { %v10187_v11 = vpop.eup %7859  ;;  %v2013_v26 = vmul.f32 1.442695, %v1955_v53  ;;  %v1922_v6 = vmax.f32 %v1874_v47, 0.0  ;;  %v1809_v30 = vmul.f32 2.0, %v1511_v20  ;;  %v2096_v25 = vpack.c.bf16 %v7858_v8, %v7856_v40 }
 0x388   : > { %7869 = vpow2.f32 %v2003_v52  ;;  %v10190_v45 = vadd.f32 %v9932_v39, %v622_v24  ;;  %v1900_v9 = vmax.f32 %v1852_v0, 0.0  ;;  %v1257_v42 = vadd.f32 %v1209_v60, %v9880_v58  ;;  %7004 = vst [vmem:[#allocation3 + $0x78] sm:$0xff] %v2224_v32   ;;  %7059 = vmatprep.subr.bf16.mxu0 %v2224_v32  ;;  %v11839_v52 = vld [vmem:[#allocation89_spill] sm:$0xff]  ;;  %v11840_v32 = vld [vmem:[#allocation75_spill] sm:$0xff] }
 0x389   : > { %7871 = vpow2.f32 %v2013_v26  ;;  %v1970_v3 = vmul.f32 -0.5, %v1922_v6  ;;  %v1857_v2 = vsub.f32 %v11838_v59, %v1809_v30  ;;  %v1210_v33 = vmul.f32 %v9355_v1, %v1157_v18  ;;  %6973 = vst [vmem:[#allocation2 + $0x38] sm:$0xff] %v2096_v25   ;;  %v11841_v30 = vld [vmem:[#allocation15_spill] sm:$0xff] }
 0x38a   : > { %v7862_v7 = vpop.eup %7861  ;;  %v10195_v44 = vmul.f32 2.0, %v1519_v55  ;;  %v1549_v5 = vadd.f32 %v11839_v52, %v1257_v42  ;;  %v2127_v39 = vunpack.c.l.bf16 %v2096_v25  ;;  %v2128_v24 = vunpack.c.h.bf16 %v2096_v25  ;;  %v1061_v20 = vpop.permute.xlu1 %1060 }
 0x38b   : > { %v10198_v0 = vpop.eup %7863  ;;  %v2043_v58 = vmul.f32 1.442695, %v1970_v3  ;;  %v1905_v16 = vmax.f32 %v1857_v2, 0.0  ;;  %v1258_v53 = vadd.f32 %v1210_v33, %v10105_v56  ;;  %v2103_v63 = vpack.c.bf16 %v7862_v7, %v10043_v15 }
 0x38c   : > { %v10202_v47 = vmul.f32 -0.5, %v1900_v9  ;;  %v1847_v38 = vmul.f32 2.0, %v1549_v5  ;;  %v2175_v46 = vsub.f32 %v7856_v40, %v2127_v39  ;;  %v2176_v60 = vsub.f32 %v7858_v8, %v2128_v24  ;;  %v11842_v9 = vld [vmem:[#allocation57_spill] sm:$0xff] }
 0x38d   : > { %7873 = vpow2.f32 %v2043_v58  ;;  %v1953_v55 = vmul.f32 -0.5, %v1905_v16  ;;  %v1550_v26 = vadd.f32 %v11840_v32, %v1258_v53  ;;  %v1186_v6 = vmul.f32 %v9355_v1, %v1061_v20  ;;  %6980 = vst [vmem:[#allocation2 + $0x70] sm:$0xff] %v2103_v63   ;;  %v11843_v58 = vld [vmem:[#allocation16_spill] sm:$0xff] }
 0x38e   : > { %v1895_v25 = vsub.f32 %v11841_v30, %v1847_v38  ;;  %v2216_v42 = vpack.c.bf16 %v2176_v60, %v2175_v46  ;;  %v2141_v18 = vunpack.c.l.bf16 %v2103_v63  ;;  %v2142_v56 = vunpack.c.h.bf16 %v2103_v63  ;;  %v993_v52 = vpop.permute.xlu1 %992  ;;  %v11844_v53 = vld [vmem:[#allocation28_spill] sm:$0xff] }
 0x38f   : > { %v7866_v3 = vpop.eup %7865  ;;  %v1865_v59 = vsub.f32 %v11842_v9, %v10195_v44  ;;  %v2009_v2 = vmul.f32 1.442695, %v1953_v55  ;;  %v1848_v33 = vmul.f32 2.0, %v1550_v26  ;;  %v1234_v40 = vadd.f32 %v1186_v6, %v10117_v51  ;;  %v11845_v26 = vld [vmem:[#allocation155_spill] sm:$0xff] }
 0x390   : > { %v1943_v8 = vmax.f32 %v1895_v25, 0.0  ;;  %6996 = vst [vmem:[#allocation3 + $0x38] sm:$0xff] %v2216_v42   ;;  %7060 = vmatpush3.bf16.msra.mxu0 %v2216_v42  ;;  %v2189_v5 = vsub.f32 %v10043_v15, %v2141_v18  ;;  %v2190_v39 = vsub.f32 %v7862_v7, %v2142_v56  ;;  %v2095_v24 = vpack.c.bf16 %v10122_v27, %v7866_v3 }
 0x391   : > { %7875 = vpow2.f32 %v2009_v2  ;;  %v1896_v16 = vsub.f32 %v11843_v58, %v1848_v33  ;;  %v1526_v63 = vadd.f32 %v11844_v53, %v1234_v40  ;;  %v1169_v44 = vmul.f32 %v9355_v1, %v993_v52  ;;  %v11846_v2 = vld [vmem:[#allocation179_spill] sm:$0xff]  ;;  %v11847_v40 = vld [vmem:[#allocation29_spill] sm:$0xff] }
 0x392   : > { %v7868_v38 = vpop.eup %7867  ;;  %v1991_v20 = vmul.f32 -0.5, %v1943_v8  ;;  %v2223_v46 = vpack.c.bf16 %v2190_v39, %v2189_v5  ;;  %v2125_v51 = vunpack.c.l.bf16 %v2095_v24  ;;  %v2126_v60 = vunpack.c.h.bf16 %v2095_v24  ;;  %6972 = vst [vmem:[#allocation2 + $0x30] sm:$0xff] %v2095_v24   ;;  %v1145_v25 = vpop.permute.xlu1 %1144 }
 0x393   : > { %v1944_v55 = vmax.f32 %v1896_v16, 0.0  ;;  %v1824_v32 = vmul.f32 2.0, %v1526_v63  ;;  %v1217_v15 = vadd.f32 %v1169_v44, %v9898_v62  ;;  %v2102_v7 = vpack.c.bf16 %v7868_v38, %v10126_v12 }
 0x394   : > { %v10219_v6 = vmul.f32 %v9263_v29, %v11845_v26  ;;  %v2085_v30 = vmul.f32 1.442695, %v1991_v20  ;;  %7003 = vst [vmem:[#allocation3 + $0x70] sm:$0xff] %v2223_v46   ;;  %7061 = vmatprep.subr.bf16.mxu0 %v2223_v46  ;;  %v2173_v42 = vsub.f32 %v7866_v3, %v2125_v51  ;;  %v2174_v18 = vsub.f32 %v10122_v27, %v2126_v60  ;;  %v11848_v51 = vld [vmem:[#allocation18_spill] sm:$0xff] }
 0x395   : > { %v10222_v56 = vpop.eup %7869  ;;  %v1992_v9 = vmul.f32 -0.5, %v1944_v55  ;;  %v1872_v33 = vsub.f32 %v11846_v2, %v1824_v32  ;;  %v1509_v62 = vadd.f32 %v11847_v40, %v1217_v15  ;;  %v1207_v8 = vmul.f32 %v9355_v1, %v1145_v25  ;;  %6979 = vst [vmem:[#allocation2 + $0x68] sm:$0xff] %v2102_v7   ;;  %v11849_v55 = vld [vmem:[#allocation91_spill] sm:$0xff] }
 0x396   : > { %v7872_v52 = vpop.eup %7871  ;;  %v10227_v5 = vmax.f32 %v1865_v59, 0.0  ;;  %v2215_v39 = vpack.c.bf16 %v2174_v18, %v2173_v42  ;;  %v2139_v24 = vunpack.c.l.bf16 %v2102_v7  ;;  %v2140_v58 = vunpack.c.h.bf16 %v2102_v7  ;;  %v1149_v63 = vpop.permute.xlu1 %1148 }
 0x397   : > { %v2087_v16 = vmul.f32 1.442695, %v1992_v9  ;;  %v1920_v3 = vmax.f32 %v1872_v33, 0.0  ;;  %v1807_v53 = vmul.f32 2.0, %v1509_v62  ;;  %v1255_v27 = vadd.f32 %v1207_v8, %v10132_v10 }
 0x398   : > { %7877 = vpow2.f32 %v2085_v30  ;;  %6995 = vst [vmem:[#allocation3 + $0x30] sm:$0xff] %v2215_v39   ;;  %7062 = vmatpush3.bf16.msra.mxu0 %v2215_v39  ;;  %v2187_v44 = vsub.f32 %v10126_v12, %v2139_v24  ;;  %v2188_v20 = vsub.f32 %v7868_v38, %v2140_v58  ;;  %v2094_v46 = vpack.c.bf16 %v10135_v22, %v7872_v52  ;;  %v11850_v38 = vld [vmem:[#allocation159_spill] sm:$0xff] }
 0x399   : > { %7879 = vpow2.f32 %v2087_v16  ;;  %v1968_v59 = vmul.f32 -0.5, %v1920_v3  ;;  %v1855_v60 = vsub.f32 %v11848_v51, %v1807_v53  ;;  %v1547_v32 = vadd.f32 %v11849_v55, %v1255_v27  ;;  %v11851_v39 = vld [vmem:[#allocation19_spill] sm:$0xff]  ;;  %v11852_v3 = vld [vmem:[#allocation61_spill] sm:$0xff] }
 0x39a   : > { %v7874_v15 = vpop.eup %7873  ;;  %v1208_v7 = vmul.f32 %v9355_v1, %v1149_v63  ;;  %v2222_v26 = vpack.c.bf16 %v2188_v20, %v2187_v44  ;;  %v2123_v10 = vunpack.c.l.bf16 %v2094_v46  ;;  %v2124_v30 = vunpack.c.h.bf16 %v2094_v46  ;;  %6971 = vst [vmem:[#allocation2 + $0x28] sm:$0xff] %v2094_v46   ;;  %v1053_v33 = vpop.permute.xlu1 %1052 }
 0x39b   : > { %v2039_v25 = vmul.f32 1.442695, %v1968_v59  ;;  %v1903_v42 = vmax.f32 %v1855_v60, 0.0  ;;  %v1845_v18 = vmul.f32 2.0, %v1547_v32  ;;  %v2101_v12 = vpack.c.bf16 %v7874_v15, %v10145_v34 }
 0x39c   : > { %v1212_v9 = vadd.f32 %v10048_v48, %v11850_v38  ;;  %v1256_v2 = vadd.f32 %v1208_v7, %v9905_v35  ;;  %7002 = vst [vmem:[#allocation3 + $0x68] sm:$0xff] %v2222_v26   ;;  %7063 = vmatprep.subr.bf16.mxu0 %v2222_v26  ;;  %v2171_v40 = vsub.f32 %v7872_v52, %v2123_v10  ;;  %v11854_v7 = vld [vmem:[#allocation40_spill] sm:$0xff] }
 0x39d   : > { %v2172_v62 = vsub.f32 %v10135_v22, %v2124_v30  ;;  %7881 = vpow2.f32 %v2039_v25  ;;  %v1951_v8 = vmul.f32 -0.5, %v1903_v42  ;;  %v1893_v24 = vsub.f32 %v11851_v39, %v1845_v18  ;;  %6978 = vst [vmem:[#allocation2 + $0x60] sm:$0xff] %v2101_v12   ;;  %v11853_v22 = vld [vmem:[#allocation49_spill] sm:$0xff]  ;;  %v11855_v30 = vld [vmem:[#allocation20_spill] sm:$0xff] }
 0x39e   : > { %v1184_v58 = vmul.f32 %v9355_v1, %v1053_v33  ;;  %v7876_v16 = vpop.eup %7875  ;;  %v1548_v53 = vadd.f32 %v11852_v3, %v1256_v2  ;;  %v2137_v48 = vunpack.c.l.bf16 %v2101_v12  ;;  %v2138_v63 = vunpack.c.h.bf16 %v2101_v12  ;;  %v985_v51 = vpop.permute.xlu1 %984 }
 0x39f   : > { %v2214_v27 = vpack.c.bf16 %v2172_v62, %v2171_v40  ;;  %v2005_v35 = vmul.f32 1.442695, %v1951_v8  ;;  %v1941_v44 = vmax.f32 %v1893_v24, 0.0  ;;  %v2093_v52 = vpack.c.bf16 %v10169_v21, %v7876_v16  ;;  %v11857_v24 = vld [vmem:[#allocation181_spill] sm:$0xff] }
 0x3a0   : > { %v1232_v20 = vadd.f32 %v1184_v58, %v10140_v31  ;;  %v1504_v46 = vadd.f32 %v11853_v22, %v1212_v9  ;;  %v1846_v59 = vmul.f32 2.0, %v1548_v53  ;;  %v2185_v60 = vsub.f32 %v10145_v34, %v2137_v48  ;;  %v11856_v34 = vld [vmem:[#allocation157_spill] sm:$0xff]  ;;  %v11858_v58 = vld [vmem:[#allocation31_spill] sm:$0xff] }
 0x3a1   : > { %6994 = vst [vmem:[#allocation3 + $0x28] sm:$0xff] %v2214_v27   ;;  %7064 = vmatpush3.bf16.msra.mxu0 %v2214_v27  ;;  %v2186_v55 = vsub.f32 %v7874_v15, %v2138_v63  ;;  %7883 = vpow2.f32 %v2005_v35  ;;  %v1989_v32 = vmul.f32 -0.5, %v1941_v44  ;;  %v1167_v10 = vmul.f32 %v9355_v1, %v985_v51  ;;  %6970 = vst [vmem:[#allocation2 + $0x20] sm:$0xff] %v2093_v52  }
 0x3a2   : > { %v1524_v26 = vadd.f32 %v11854_v7, %v1232_v20  ;;  %v1894_v31 = vsub.f32 %v11855_v30, %v1846_v59  ;;  %v2121_v42 = vunpack.c.l.bf16 %v2093_v52  ;;  %v2122_v18 = vunpack.c.h.bf16 %v2093_v52  ;;  %v1137_v33 = vpop.permute.xlu1 %1136  ;;  %v11859_v59 = vld [vmem:[#allocation22_spill] sm:$0xff] }
 0x3a3   : > { %v2221_v25 = vpack.c.bf16 %v2186_v55, %v2185_v60  ;;  %7885 = vpow2.f32 %v10183_v36  ;;  %v2081_v12 = vmul.f32 1.442695, %v1989_v32  ;;  %v1215_v9 = vadd.f32 %v1167_v10, %v10163_v41  ;;  %v11860_v60 = vld [vmem:[#allocation43_spill] sm:$0xff] }
 0x3a4   : > { %v1822_v38 = vmul.f32 2.0, %v1524_v26  ;;  %v596_v15 = vmul.f32 %v9263_v29, %v11856_v34  ;;  %v1942_v2 = vmax.f32 %v1894_v31, 0.0  ;;  %v2169_v40 = vsub.f32 %v7876_v16, %v2121_v42 }
 0x3a5   : > { %7001 = vst [vmem:[#allocation3 + $0x60] sm:$0xff] %v2221_v25   ;;  %7065 = vmatprep.subr.bf16.mxu0 %v2221_v25  ;;  %v2170_v62 = vsub.f32 %v10169_v21, %v2122_v18  ;;  %v7878_v8 = vpop.eup %7877  ;;  %v10256_v39 = vmul.f32 1.442695, %v10202_v47  ;;  %v1507_v3 = vadd.f32 %v11858_v58, %v1215_v9  ;;  %v1205_v41 = vmul.f32 %v9355_v1, %v1137_v33  ;;  %v11862_v25 = vld [vmem:[#allocation188_spill] sm:$0xff]  ;;  %v11864_v33 = vld [vmem:[#allocation65_spill] sm:$0xff] }
 0x3a6   : > { %v1870_v36 = vsub.f32 %v11857_v24, %v1822_v38  ;;  %v7880_v53 = vpop.eup %7879  ;;  %v10262_v27 = vmul.f32 -0.5, %v10227_v5  ;;  %v10264_v48 = vmul.f32 2.0, %v1504_v46  ;;  %v1990_v63 = vmul.f32 -0.5, %v1942_v2  ;;  %v1141_v22 = vpop.permute.xlu1 %1140 }
 0x3a7   : > { %v2213_v16 = vpack.c.bf16 %v2170_v62, %v2169_v40  ;;  %v1805_v21 = vmul.f32 2.0, %v1507_v3  ;;  %v1253_v44 = vadd.f32 %v1205_v41, %v9926_v61  ;;  %v10267_v47 = vpack.c.bf16 %v7880_v53, %v7878_v8 }
 0x3a8   : > { %v1918_v35 = vmax.f32 %v1870_v36, 0.0  ;;  %v10271_v20 = vadd.f32 %v9955_v54, %v10219_v6  ;;  %v10274_v52 = vadd.f32 %v9962_v57, %v596_v15  ;;  %7887 = vpow2.f32 %v2081_v12  ;;  %v11861_v6 = vld [vmem:[#allocation161_spill] sm:$0xff]  ;;  %v11863_v15 = vld [vmem:[#allocation23_spill] sm:$0xff] }
 0x3a9   : > { %v2083_v5 = vmul.f32 1.442695, %v1990_v63  ;;  %6993 = vst [vmem:[#allocation3 + $0x20] sm:$0xff] %v2213_v16   ;;  %7066 = vmatpush3.bf16.msra.mxu0 %v2213_v16  ;;  %v1853_v51 = vsub.f32 %v11859_v59, %v1805_v21  ;;  %v1545_v55 = vadd.f32 %v11860_v60, %v1253_v44  ;;  %v1206_v61 = vmul.f32 %v9355_v1, %v1141_v22  ;;  %v11865_v16 = vld [vmem:[#allocation153_spill] sm:$0xff] }
 0x3aa   : > { %v1966_v46 = vmul.f32 -0.5, %v1918_v35  ;;  %6989 = vst [vmem:[#allocation2 + $0xb8] sm:$0xff] %v10267_v47   ;;  %7269 = vmatpush3.bf16.msra.mxu1 %v10267_v47  ;;  %v7882_v54 = vpop.eup %7881  ;;  %v615_v57 = vmul.f32 %v9263_v29, %v11861_v6  ;;  %v2159_v32 = vunpack.c.l.bf16 %v10267_v47  ;;  %v2160_v7 = vunpack.c.h.bf16 %v10267_v47  ;;  %v1045_v18 = vpop.permute.xlu1 %1044  ;;  %v11867_v60 = vld [vmem:[#allocation33_spill] sm:$0xff] }
 0x3ab   : > { %7889 = vpow2.f32 %v2083_v5  ;;  %7270 = vmatprep.subr.bf16.mxu1 %v11829_v37  ;;  %v1901_v10 = vmax.f32 %v1853_v51, 0.0  ;;  %v1843_v30 = vmul.f32 2.0, %v1545_v55  ;;  %v1254_v31 = vadd.f32 %v1206_v61, %v10190_v45 }
 0x3ac   : > { %v2035_v26 = vmul.f32 1.442695, %v1966_v46  ;;  %v1850_v42 = vsub.f32 %v11862_v25, %v10264_v48  ;;  %v10290_v12 = vpack.c.bf16 %v7882_v54, %v10174_v23  ;;  %v2207_v38 = vsub.f32 %v7878_v8, %v2159_v32  ;;  %v11866_v46 = vld [vmem:[#allocation24_spill] sm:$0xff] }
 0x3ad   : > { %v2208_v9 = vsub.f32 %v7880_v53, %v2160_v7  ;;  %v1949_v34 = vmul.f32 -0.5, %v1901_v10  ;;  %v1891_v2 = vsub.f32 %v11863_v15, %v1843_v30  ;;  %v1546_v40 = vadd.f32 %v11864_v33, %v1254_v31 }
 0x3ae   : > { %7891 = vpow2.f32 %v2035_v26  ;;  %v7884_v62 = vpop.eup %7883  ;;  %v1182_v24 = vmul.f32 %v9355_v1, %v1045_v18  ;;  %v2135_v45 = vunpack.c.l.bf16 %v10290_v12  ;;  %v2136_v36 = vunpack.c.h.bf16 %v10290_v12  ;;  %6977 = vst [vmem:[#allocation2 + $0x58] sm:$0xff] %v10290_v12   ;;  %v977_v21 = vpop.permute.xlu1 %976 }
 0x3af   : > { %v10298_v58 = vpack.c.bf16 %v2208_v9, %v2207_v38  ;;  %v2001_v3 = vmul.f32 1.442695, %v1949_v34  ;;  %v1939_v8 = vmax.f32 %v1891_v2, 0.0  ;;  %v1844_v41 = vmul.f32 2.0, %v1546_v40  ;;  %v11869_v9 = vld [vmem:[#allocation67_spill] sm:$0xff] }
 0x3b0   : > { %v10301_v53 = vpack.c.bf16 %v10187_v11, %v7884_v62  ;;  %v10303_v48 = vpop.eup %7885  ;;  %v955_v63 = vadd.f32 %v9980_v19, %v615_v57  ;;  %v1230_v35 = vadd.f32 %v1182_v24, %v11865_v16  ;;  %v2183_v44 = vsub.f32 %v10174_v23, %v2135_v45  ;;  %v11868_v57 = vld [vmem:[#allocation158_spill] sm:$0xff]  ;;  %v11870_v2 = vld [vmem:[#allocation183_spill] sm:$0xff] }
 0x3b1   : > { %v2184_v5 = vsub.f32 %v7882_v54, %v2136_v36  ;;  %7012 = vst [vmem:[#allocation3 + $0xb8] sm:$0xff] %v10298_v58   ;;  %7893 = vpow2.f32 %v2001_v3  ;;  %v1987_v22 = vmul.f32 -0.5, %v1939_v8  ;;  %v1892_v59 = vsub.f32 %v11866_v46, %v1844_v41 }
 0x3b2   : > { %v1165_v51 = vmul.f32 %v9355_v1, %v977_v21  ;;  %6969 = vst [vmem:[#allocation2 + $0x18] sm:$0xff] %v10301_v53   ;;  %v1522_v55 = vadd.f32 %v11867_v60, %v1230_v35  ;;  %v2119_v19 = vunpack.c.l.bf16 %v10301_v53  ;;  %v2120_v6 = vunpack.c.h.bf16 %v10301_v53  ;;  %v1129_v30 = vpop.permute.xlu1 %1128 }
 0x3b3   : > { %v2220_v61 = vpack.c.bf16 %v2184_v5, %v2183_v44  ;;  %v579_v23 = vmul.f32 %v9263_v29, %v11868_v57  ;;  %v1898_v54 = vmax.f32 %v1850_v42, 0.0  ;;  %v1940_v32 = vmax.f32 %v1892_v59, 0.0  ;;  %v11873_v57 = vld [vmem:[#allocation27_spill] sm:$0xff] }
 0x3b4   : > { %v1213_v7 = vadd.f32 %v1165_v51, %v9944_v50  ;;  %v2077_v26 = vmul.f32 1.442695, %v1987_v22  ;;  %v1820_v10 = vmul.f32 2.0, %v1522_v55  ;;  %v2167_v31 = vsub.f32 %v7884_v62, %v2119_v19 }
 0x3b5   : > { %7000 = vst [vmem:[#allocation3 + $0x58] sm:$0xff] %v2220_v61   ;;  %7067 = vmatprep.subr.bf16.mxu0 %v2220_v61  ;;  %v2168_v25 = vsub.f32 %v10187_v11, %v2120_v6  ;;  %v7888_v18 = vpop.eup %7887  ;;  %7895 = vpow2.f32 %v10256_v39  ;;  %v1988_v38 = vmul.f32 -0.5, %v1940_v32  ;;  %v1203_v15 = vmul.f32 %v9355_v1, %v1129_v30 }
 0x3b6   : > { %v1505_v34 = vadd.f32 %v11869_v9, %v1213_v7  ;;  %v10323_v42 = vmul.f32 1.442695, %v10262_v27  ;;  %v1247_v50 = vadd.f32 %v10055_v17, %v955_v63  ;;  %v1868_v33 = vsub.f32 %v11870_v2, %v1820_v10  ;;  %v1133_v27 = vpop.permute.xlu1 %1132  ;;  %v11871_v17 = vld [vmem:[#allocation26_spill] sm:$0xff] }
 0x3b7   : > { %v2212_v40 = vpack.c.bf16 %v2168_v25, %v2167_v31  ;;  %v10328_v62 = vadd.f32 %v9967_v4, %v579_v23  ;;  %v2079_v11 = vmul.f32 1.442695, %v1988_v38  ;;  %v1251_v39 = vadd.f32 %v1203_v15, %v10271_v20  ;;  %v11872_v63 = vld [vmem:[#allocation46_spill] sm:$0xff] }
 0x3b8   : > { %v7890_v24 = vpop.eup %7889  ;;  %v1803_v45 = vmul.f32 2.0, %v1505_v34  ;;  %v1946_v36 = vmul.f32 -0.5, %v1898_v54  ;;  %7897 = vpow2.f32 %v2077_v26  ;;  %v1916_v3 = vmax.f32 %v1868_v33, 0.0  ;;  %v11874_v54 = vld [vmem:[#allocation71_spill] sm:$0xff] }
 0x3b9   : > { %6992 = vst [vmem:[#allocation3 + $0x18] sm:$0xff] %v2212_v40   ;;  %7068 = vmatpush3.bf16.msra.mxu0 %v2212_v40  ;;  %v10331_v8 = vpack.c.bf16 %v7890_v24, %v7888_v18  ;;  %7899 = vpow2.f32 %v2079_v11  ;;  %v1543_v16 = vadd.f32 %v11872_v63, %v1251_v39  ;;  %v1204_v4 = vmul.f32 %v9355_v1, %v1133_v27  ;;  %v11875_v40 = vld [vmem:[#allocation101_spill] sm:$0xff]  ;;  %v11876_v11 = vld [vmem:[#allocation48_spill] sm:$0xff] }
 0x3ba   : > { %v1851_v41 = vsub.f32 %v11871_v17, %v1803_v45  ;;  %v1539_v21 = vadd.f32 %v9999_v28, %v1247_v50  ;;  %v1964_v44 = vmul.f32 -0.5, %v1916_v3  ;;  %v1995_v60 = vmul.f32 1.442695, %v1946_v36  ;;  %v11877_v27 = vld [vmem:[#allocation160_spill] sm:$0xff] }
 0x3bb   : > { %v7892_v35 = vpop.eup %7891  ;;  %6988 = vst [vmem:[#allocation2 + $0xb0] sm:$0xff] %v10331_v8   ;;  %7271 = vmatpush3.bf16.msra.mxu1 %v10331_v8  ;;  %v2157_v20 = vunpack.c.l.bf16 %v10331_v8  ;;  %v2158_v5 = vunpack.c.h.bf16 %v10331_v8  ;;  %v1841_v46 = vmul.f32 2.0, %v1543_v16  ;;  %v1252_v59 = vadd.f32 %v1204_v4, %v9958_v49 }
 0x3bc   : > { %v1899_v22 = vmax.f32 %v1851_v41, 0.0  ;;  %v10343_v51 = vpack.c.bf16 %v7892_v35, %v10198_v0  ;;  %7272 = vmatprep.subr.bf16.mxu1 %v11829_v37  ;;  %v2031_v28 = vmul.f32 1.442695, %v1964_v44  ;;  %v1837_v9 = vmul.f32 2.0, %v1539_v21 }
 0x3bd   : > { %v2205_v61 = vsub.f32 %v7888_v18, %v2157_v20  ;;  %v2206_v19 = vsub.f32 %v7890_v24, %v2158_v5  ;;  %v1889_v23 = vsub.f32 %v11873_v57, %v1841_v46  ;;  %v1544_v32 = vadd.f32 %v11874_v54, %v1252_v59  ;;  %v11878_v5 = vld [vmem:[#allocation164_spill] sm:$0xff]  ;;  %v1097_v46 = vpop.permute.xlu0 %1096  ;;  %v11879_v59 = vld [vmem:[#allocation187_spill] sm:$0xff] }
 0x3be   : > { %v1947_v6 = vmul.f32 -0.5, %v1899_v22  ;;  %6976 = vst [vmem:[#allocation2 + $0x50] sm:$0xff] %v10343_v51   ;;  %v7894_v49 = vpop.eup %7893  ;;  %7901 = vpow2.f32 %v2031_v28  ;;  %v2133_v26 = vunpack.c.l.bf16 %v10343_v51  ;;  %v2134_v10 = vunpack.c.h.bf16 %v10343_v51 }
 0x3bf   : > { %v1037_v55 = vpop.permute.xlu1 %1036  ;;  %v10352_v30 = vpack.c.bf16 %v2206_v19, %v2205_v61  ;;  %v1937_v25 = vmax.f32 %v1889_v23, 0.0  ;;  %v1842_v18 = vmul.f32 2.0, %v1544_v32  ;;  %v10357_v2 = vpack.c.bf16 %v10222_v56, %v7894_v49  ;;  %v11880_v19 = vld [vmem:[#allocation53_spill] sm:$0xff] }
 0x3c0   : > { %v1180_v7 = vmul.f32 %v9355_v1, %v1037_v55  ;;  %v1997_v31 = vmul.f32 1.442695, %v1947_v6  ;;  %v2181_v15 = vsub.f32 %v10198_v0, %v2133_v26  ;;  %v2182_v50 = vsub.f32 %v7892_v35, %v2134_v10  ;;  %v11881_v6 = vld [vmem:[#allocation36_spill] sm:$0xff] }
 0x3c1   : > { %7011 = vst [vmem:[#allocation3 + $0xb0] sm:$0xff] %v10352_v30   ;;  %v1985_v33 = vmul.f32 -0.5, %v1937_v25  ;;  %v1890_v24 = vsub.f32 %v11875_v40, %v1842_v18  ;;  %v2117_v3 = vunpack.c.l.bf16 %v10357_v2  ;;  %v2118_v0 = vunpack.c.h.bf16 %v10357_v2  ;;  %6968 = vst [vmem:[#allocation2 + $0x10] sm:$0xff] %v10357_v2  }
 0x3c2   : > { %v1228_v38 = vadd.f32 %v1180_v7, %v10274_v52  ;;  %7903 = vpow2.f32 %v1997_v31  ;;  %v10362_v39 = vpop.eup %7895  ;;  %v2219_v36 = vpack.c.bf16 %v2182_v50, %v2181_v15  ;;  %v618_v17 = vmul.f32 %v9263_v29, %v11877_v27  ;;  %v11882_v31 = vld [vmem:[#allocation50_spill] sm:$0xff] }
 0x3c3   : > { %v969_v34 = vpop.permute.xlu1 %968  ;;  %7905 = vpow2.f32 %v10323_v42  ;;  %v1938_v41 = vmax.f32 %v1890_v24, 0.0  ;;  %v2073_v16 = vmul.f32 1.442695, %v1985_v33  ;;  %v2165_v21 = vsub.f32 %v7894_v49, %v2117_v3  ;;  %v11885_v27 = vld [vmem:[#allocation30_spill] sm:$0xff] }
 0x3c4   : > { %v1520_v45 = vadd.f32 %v11876_v11, %v1228_v38  ;;  %v1163_v52 = vmul.f32 %v9355_v1, %v969_v34  ;;  %6999 = vst [vmem:[#allocation3 + $0x50] sm:$0xff] %v2219_v36   ;;  %7069 = vmatprep.subr.bf16.mxu0 %v2219_v36  ;;  %v2166_v44 = vsub.f32 %v10222_v56, %v2118_v0  ;;  %7907 = vpow2.f32 %v1995_v60  ;;  %v11884_v38 = vld [vmem:[#allocation59_spill] sm:$0xff] }
 0x3c5   : > { %v7898_v20 = vpop.eup %7897  ;;  %v614_v22 = vmul.f32 %v9263_v29, %v11878_v5  ;;  %v1986_v42 = vmul.f32 -0.5, %v1938_v41  ;;  %v958_v29 = vadd.f32 %v9976_v43, %v618_v17  ;;  %v10384_v49 = vmul.f32 %v9355_v1, %v1097_v46  ;;  %v11886_v41 = vld [vmem:[#allocation74_spill] sm:$0xff]  ;;  %v11887_v46 = vld [vmem:[#allocation99_spill] sm:$0xff] }
 0x3c6   : > { %v1818_v63 = vmul.f32 2.0, %v1520_v45  ;;  %v1211_v4 = vadd.f32 %v1163_v52, %v10328_v62  ;;  %v7900_v61 = vpop.eup %7899  ;;  %v1885_v62 = vsub.f32 %v11880_v19, %v1837_v9  ;;  %v2211_v23 = vpack.c.bf16 %v2166_v44, %v2165_v21 }
 0x3c7   : > { %v1121_v35 = vpop.permute.xlu1 %1120  ;;  %v2075_v54 = vmul.f32 1.442695, %v1986_v42  ;;  %v10380_v7 = vpack.c.bf16 %v7900_v61, %v7898_v20  ;;  %7909 = vpow2.f32 %v2073_v16 }
 0x3c8   : > { %v1866_v28 = vsub.f32 %v11879_v59, %v1818_v63  ;;  %v1201_v55 = vmul.f32 %v9355_v1, %v1121_v35  ;;  %v1503_v57 = vadd.f32 %v11881_v6, %v1211_v4  ;;  %6991 = vst [vmem:[#allocation3 + $0x10] sm:$0xff] %v2211_v23   ;;  %7070 = vmatpush3.bf16.msra.mxu0 %v2211_v23  ;;  %v1933_v33 = vmax.f32 %v1885_v62, 0.0  ;;  %v11888_v23 = vld [vmem:[#allocation63_spill] sm:$0xff] }
 0x3c9   : > { %7911 = vpow2.f32 %v2075_v54  ;;  %6987 = vst [vmem:[#allocation2 + $0xa8] sm:$0xff] %v10380_v7   ;;  %7273 = vmatpush3.bf16.msra.mxu1 %v10380_v7  ;;  %v2155_v34 = vunpack.c.l.bf16 %v10380_v7  ;;  %v2156_v15 = vunpack.c.h.bf16 %v10380_v7 }
 0x3ca   : > { %v1914_v32 = vmax.f32 %v1866_v28, 0.0  ;;  %v1249_v56 = vadd.f32 %v1201_v55, %v9970_v14  ;;  %v1801_v26 = vmul.f32 2.0, %v1503_v57  ;;  %v11883_v14 = vld [vmem:[#allocation56_spill] sm:$0xff]  ;;  %7274 = vmatprep.subr.bf16.mxu1 %v11829_v37  ;;  %v1981_v55 = vmul.f32 -0.5, %v1933_v33 }
 0x3cb   : > { %v1125_v60 = vpop.permute.xlu1 %1124  ;;  %v954_v43 = vadd.f32 %v11883_v14, %v614_v22  ;;  %v7902_v50 = vpop.eup %7901  ;;  %v2203_v3 = vsub.f32 %v7898_v20, %v2155_v34  ;;  %v2204_v0 = vsub.f32 %v7900_v61, %v2156_v15  ;;  %v11892_v34 = vld [vmem:[#allocation185_spill] sm:$0xff]  ;;  %v11893_v15 = vld [vmem:[#allocation186_spill] sm:$0xff] }
 0x3cc   : > { %v1962_v10 = vmul.f32 -0.5, %v1914_v32  ;;  %v1541_v25 = vadd.f32 %v11882_v31, %v1249_v56  ;;  %v1202_v18 = vmul.f32 %v9355_v1, %v1125_v60  ;;  %v1849_v9 = vsub.f32 %v11884_v38, %v1801_v26  ;;  %v11889_v32 = vld [vmem:[#allocation103_spill] sm:$0xff] }
 0x3cd   : > { %v10396_v36 = vpack.c.bf16 %v7902_v50, %v10303_v48  ;;  %v10404_v5 = vpack.c.bf16 %v2204_v0, %v2203_v3  ;;  %v11895_v0 = vld [vmem:[#allocation41_spill] sm:$0xff] }
 0x3ce   : > { %v2027_v40 = vmul.f32 1.442695, %v1962_v10  ;;  %v1839_v24 = vmul.f32 2.0, %v1541_v25  ;;  %v1250_v11 = vadd.f32 %v1202_v18, %v958_v29  ;;  %v1897_v45 = vmax.f32 %v1849_v9, 0.0  ;;  %v11891_v25 = vld [vmem:[#allocation168_spill] sm:$0xff] }
 0x3cf   : > { %v1117_v52 = vpop.permute.xlu1 %1116  ;;  %v7904_v4 = vpop.eup %7903  ;;  %v2131_v21 = vunpack.c.l.bf16 %v10396_v36  ;;  %v2132_v44 = vunpack.c.h.bf16 %v10396_v36  ;;  %6975 = vst [vmem:[#allocation2 + $0x48] sm:$0xff] %v10396_v36   ;;  %7010 = vst [vmem:[#allocation3 + $0xa8] sm:$0xff] %v10404_v5  }
 0x3d0   : > { %7913 = vpow2.f32 %v2027_v40  ;;  %v1887_v17 = vsub.f32 %v11885_v27, %v1839_v24  ;;  %v1542_v63 = vadd.f32 %v11886_v41, %v1250_v11  ;;  %v1200_v16 = vmul.f32 %v9355_v1, %v1117_v52  ;;  %v10410_v28 = vpop.eup %7905 }
 0x3d1   : > { %v1945_v35 = vmul.f32 -0.5, %v1897_v45  ;;  %v10408_v59 = vpack.c.bf16 %v10362_v39, %v7904_v4  ;;  %v2179_v62 = vsub.f32 %v10303_v48, %v2131_v21  ;;  %v2180_v6 = vsub.f32 %v7902_v50, %v2132_v44  ;;  %v10420_v31 = vpop.eup %7907  ;;  %v11890_v48 = vld [vmem:[#allocation54_spill] sm:$0xff] }
 0x3d2   : > { %v1935_v22 = vmax.f32 %v1887_v17, 0.0  ;;  %v1840_v20 = vmul.f32 2.0, %v1542_v63  ;;  %v1248_v42 = vadd.f32 %v1200_v16, %v11887_v46  ;;  %v1490_v18 = vmul.f32 %v11891_v25, %v11890_v48  ;;  %v11896_v63 = vld [vmem:[#allocation121_spill] sm:$0xff]  ;;  %v11897_v16 = vld [vmem:[#allocation166_spill] sm:$0xff] }
 0x3d3   : > { %v1993_v61 = vmul.f32 1.442695, %v1945_v35  ;;  %v1109_v19 = vpop.permute.xlu1 %1108  ;;  %6967 = vst [vmem:[#allocation2 + $0x8] sm:$0xff] %v10408_v59   ;;  %v2218_v26 = vpack.c.bf16 %v2180_v6, %v2179_v62  ;;  %v2115_v60 = vunpack.c.l.bf16 %v10408_v59  ;;  %v2116_v10 = vunpack.c.h.bf16 %v10408_v59 }
 0x3d4   : > { %v1983_v57 = vmul.f32 -0.5, %v1935_v22  ;;  %v1888_v54 = vsub.f32 %v11888_v23, %v1840_v20  ;;  %v1540_v56 = vadd.f32 %v11889_v32, %v1248_v42  ;;  %v1198_v29 = vmul.f32 %v9355_v1, %v1109_v19  ;;  %v7910_v52 = vpop.eup %7909  ;;  %v11898_v42 = vld [vmem:[#allocation174_spill] sm:$0xff] }
 0x3d5   : > { %7915 = vpow2.f32 %v1993_v61  ;;  %v11894_v50 = vsub.f32 %v11892_v34, %v11893_v15  ;;  %6998 = vst [vmem:[#allocation3 + $0x48] sm:$0xff] %v2218_v26   ;;  %7071 = vmatprep.subr.bf16.mxu0 %v2218_v26  ;;  %v2163_v11 = vsub.f32 %v7904_v4, %v2115_v60  ;;  %v2164_v45 = vsub.f32 %v10362_v39, %v2116_v10  ;;  %v11899_v23 = vld [vmem:[#allocation142_spill] sm:$0xff]  ;;  %v11900_v10 = vld [vmem:[#allocation167_spill] sm:$0xff] }
 0x3d6   : > { %v1936_v14 = vmax.f32 %v1888_v54, 0.0  ;;  %v1838_v38 = vmul.f32 2.0, %v1540_v56  ;;  %v1246_v9 = vadd.f32 %v1198_v29, %v954_v43  ;;  %v2069_v40 = vmul.f32 1.442695, %v1983_v57  ;;  %v7912_v41 = vpop.eup %7911 }
 0x3d7   : > { %v1931_v33 = vmax.f32 %v11894_v50, 0.0  ;;  %v1101_v24 = vpop.permute.xlu1 %1100  ;;  %v1788_v43 = vadd.f32 %v11897_v16, %v11896_v63  ;;  %v2065_v35 = vmul.f32 1.442695, %v1981_v55  ;;  %v2210_v21 = vpack.c.bf16 %v2164_v45, %v2163_v11 }
 0x3d8   : > { %v1984_v3 = vmul.f32 -0.5, %v1936_v14  ;;  %v1886_v27 = vsub.f32 %v11895_v0, %v1838_v38  ;;  %v1538_v17 = vadd.f32 %v1490_v18, %v1246_v9  ;;  %v10431_v46 = vpack.c.bf16 %v7912_v41, %v7910_v52 }
 0x3d9   : > { %v1243_v4 = vadd.f32 %v10384_v49, %v11898_v42  ;;  %v1979_v39 = vmul.f32 -0.5, %v1931_v33  ;;  %7917 = vpow2.f32 %v2069_v40  ;;  %v1196_v61 = vmul.f32 %v9355_v1, %v1101_v24  ;;  %6990 = vst [vmem:[#allocation3 + $0x8] sm:$0xff] %v2210_v21   ;;  %7072 = vmatpush3.bf16.msra.mxu0 %v2210_v21 }
 0x3da   : > { %v2071_v44 = vmul.f32 1.442695, %v1984_v3  ;;  %v1934_v22 = vmax.f32 %v1886_v27, 0.0  ;;  %v1836_v20 = vmul.f32 2.0, %v1538_v17  ;;  %6986 = vst [vmem:[#allocation2 + $0xa0] sm:$0xff] %v10431_v46   ;;  %7275 = vmatpush3.bf16.msra.mxu1 %v10431_v46  ;;  %v1785_v49 = vadd.f32 %v11897_v16, %v11899_v23 }
 0x3db   : > { %7276 = vmatprep.subr.bf16.mxu1 %v11829_v37  ;;  %v2153_v1 = vunpack.c.l.bf16 %v10431_v46  ;;  %v2154_v54 = vunpack.c.h.bf16 %v10431_v46  ;;  %v2061_v60 = vmul.f32 1.442695, %v1979_v39  ;;  %v1244_v48 = vadd.f32 %v1196_v61, %v11900_v10 }
 0x3dc   : > { %v1389_v19 = vpop.permute.xlu1 %1388  ;;  %7919 = vpow2.f32 %v2071_v44  ;;  %v1982_v62 = vmul.f32 -0.5, %v1934_v22  ;;  %v1884_v6 = vsub.f32 %v1788_v43, %v1836_v20 }
 0x3dd   : > { %v1487_v55 = vmul.f32 %v11891_v25, %v1389_v19  ;;  %v7914_v57 = vpop.eup %7913  ;;  %7921 = vpow2.f32 %v2065_v35  ;;  %v2201_v14 = vsub.f32 %v7910_v52, %v2153_v1  ;;  %v2202_v38 = vsub.f32 %v7912_v41, %v2154_v54 }
 0x3de   : > { %v2067_v32 = vmul.f32 1.442695, %v1982_v62  ;;  %v1932_v56 = vmax.f32 %v1884_v6, 0.0  ;;  %v10445_v26 = vpack.c.bf16 %v7914_v57, %v10410_v28 }
 0x3df   : > { %v1535_v29 = vadd.f32 %v1487_v55, %v1243_v4  ;;  %v10452_v40 = vpack.c.bf16 %v2202_v38, %v2201_v14 }
 0x3e0   : > { %v1393_v18 = vpop.permute.xlu1 %1392  ;;  %7923 = vpow2.f32 %v2067_v32  ;;  %v1980_v9 = vmul.f32 -0.5, %v1932_v56  ;;  %6974 = vst [vmem:[#allocation2 + $0x40] sm:$0xff] %v10445_v26   ;;  %v2129_v50 = vunpack.c.l.bf16 %v10445_v26  ;;  %v2130_v33 = vunpack.c.h.bf16 %v10445_v26 }
 0x3e1   : > { %v1833_v34 = vmul.f32 2.0, %v1535_v29  ;;  %v1488_v15 = vmul.f32 %v11891_v25, %v1393_v18  ;;  %7925 = vpow2.f32 %v2061_v60  ;;  %7009 = vst [vmem:[#allocation3 + $0xa0] sm:$0xff] %v10452_v40   ;;  %v11901_v25 = vld [vmem:[#allocation58_spill] sm:$0xff] }
 0x3e2   : > { %v7916_v24 = vpop.eup %7915  ;;  %v2063_v11 = vmul.f32 1.442695, %v1980_v9  ;;  %v2177_v52 = vsub.f32 %v10410_v28, %v2129_v50  ;;  %v2178_v0 = vsub.f32 %v7914_v57, %v2130_v33  ;;  %v1786_v17 = vadd.f32 %v11897_v16, %v11901_v25  ;;  %v10468_v16 = vld [vmem:[%s11395_s2] sm:$0xff] }
 0x3e3   : > { %v1881_v45 = vsub.f32 %v1785_v49, %v1833_v34  ;;  %v1536_v3 = vadd.f32 %v1488_v15, %v1244_v48  ;;  %v10456_v27 = vpack.c.bf16 %v10420_v31, %v7916_v24  ;;  %v10474_v57 = vpack.c.bf16 %v10468_v16, %v10468_v16 }
 0x3e4   : > { %7927 = vpow2.f32 %v2063_v11  ;;  %v2217_v43 = vpack.c.bf16 %v2178_v0, %v2177_v52  ;;  %v2667_v11 = vld [vmem:[%s11395_s2 + $0x10] sm:$0xff] }
 0x3e5   : > { %v1929_v41 = vmax.f32 %v1881_v45, 0.0  ;;  %v1834_v63 = vmul.f32 2.0, %v1536_v3  ;;  %v2113_v35 = vunpack.c.l.bf16 %v10456_v27  ;;  %v2114_v21 = vunpack.c.h.bf16 %v10456_v27  ;;  %6539 = vst [vmem:[#allocation2] sm:$0xff] %v10456_v27  }
 0x3e6   : > { %6997 = vst [vmem:[#allocation3 + $0x40] sm:$0xff] %v2217_v43   ;;  %7073 = vmatprep.subr.bf16.mxu0 %v2217_v43  ;;  %v7918_v42 = vpop.eup %7917  ;;  %v2670_v52 = vpack.c.bf16 %v2667_v11, %v2667_v11 }
 0x3e7   : > { %v1977_v28 = vmul.f32 -0.5, %v1929_v41  ;;  %v1882_v44 = vsub.f32 %v1786_v17, %v1834_v63  ;;  %v2161_v22 = vsub.f32 %v7916_v24, %v2113_v35  ;;  %v2162_v20 = vsub.f32 %v10420_v31, %v2114_v21  ;;  %v7978_v63 = vld [vmem:[#allocation2 + $0x30] sm:$0xff]  ;;  %v7981_v35 = vld [vmem:[#allocation2 + $0x60] sm:$0xff] }
 0x3e8   : > { %v2673_v43 = vunpack.c.l.bf16 %v2670_v52 }
 0x3e9   : > { %v1930_v4 = vmax.f32 %v1882_v44, 0.0  ;;  %v7920_v39 = vpop.eup %7919  ;;  %v2057_v61 = vmul.f32 1.442695, %v1977_v28  ;;  %v2209_v19 = vpack.c.bf16 %v2162_v20, %v2161_v22  ;;  %v7982_v28 = vld [vmem:[#allocation2 + $0x20] sm:$0xff]  ;;  %v7597_v22 = vld [vmem:[#allocation3 + $0xb8] sm:$0xff]  }
 0x3ea   : > { %v7922_v62 = vpop.eup %7921  ;;  %v10470_v55 = vpack.c.bf16 %v7920_v39, %v7918_v42  ;;  %v2676_v21 = vsub.f32 %v2667_v11, %v2673_v43  ;;  %v10532_v20 = vld [vmem:[#allocation6 + $0x8] ss:$12 sps:$4 sm:$0xff]  }
 0x3eb   : > { %v1978_v6 = vmul.f32 -0.5, %v1930_v4  ;;  %6659 = vst [vmem:[#allocation3] sm:$0xff] %v2209_v19   ;;  %7074 = vmatpush3.bf16.msra.mxu0 %v2209_v19  ;;  %7929 = vpow2.f32 %v2057_v61  ;;  %v7599_v4 = vld [vmem:[#allocation3 + $0xa8] sm:$0xff]   ;;  %v7600_v19 = vld [vmem:[#allocation3 + $0xa0] sm:$0xff]  }
 0x3ec   : > { %6985 = vst [vmem:[#allocation2 + $0x98] sm:$0xff] %v10470_v55   ;;  %7277 = vmatpush3.bf16.msra.mxu1 %v10470_v55  ;;  %7248 = vmatprep.subr.bf16.mxu0 %v11829_v37  ;;  %v2151_v23 = vunpack.c.l.bf16 %v10470_v55  ;;  %v2152_v49 = vunpack.c.h.bf16 %v10470_v55  ;;  %v2679_v44 = vpack.c.bf16 %v2676_v21, %v2676_v21  ;;  %v7630_v11 = vld [vmem:[#allocation3 + $0x8] sm:$0xff]   ;;  %v10682_v21 = vld [vmem:[#allocation2 + $0x40] sm:$0xff]  }
 0x3ed   : > { %v2059_v31 = vmul.f32 1.442695, %v1978_v6  ;;  %v7924_v1 = vpop.eup %7923  ;;  %7278 = vmatprep.subr.bf16.mxu1 %v11829_v37  ;;  %v10671_v43 = vld [vmem:[#allocation6 + $0x188] ss:$12 sps:$4 sm:$0xff]  }
 0x3ee   : > { %2713 = vmatmul.mubr.bf16.vlgmr.msra.gmra.mxu0 %v10474_v57  ;;  %v10483_v54 = vpack.c.bf16 %v7924_v1, %v7922_v62  ;;  %v2199_v32 = vsub.f32 %v7918_v42, %v2151_v23  ;;  %v2200_v56 = vsub.f32 %v7920_v39, %v2152_v49  ;;  %v7926_v29 = vpop.eup %7925  ;;  %v7598_v42 = vld [vmem:[#allocation3 + $0xb0] sm:$0xff]   ;;  %v7983_v39 = vld [vmem:[%s11395_s2 + $0x8] sm:$0xff] }
 0x3ef   : > { %7931 = vpow2.f32 %v2059_v31  ;;  %7249 = vmatpush3.bf16.msra.mxu0 %v10298_v58  ;;  %7264 = vmatprep.mubr.msk.bf16.mxu0 %vm8131_vm2, %v11829_v37  ;;  %v10548_v23 = vld [vmem:[#allocation6 + $0x20] ss:$12 sps:$4 sm:$0xff]   ;;  %v10550_v49 = vld [vmem:[#allocation6 + $0x38] ss:$12 sps:$4 sm:$0xff]  }
 0x3f0   : > { %6984 = vst [vmem:[#allocation2 + $0x90] sm:$0xff] %v10483_v54   ;;  %7279 = vmatpush3.bf16.msra.mxu1 %v10483_v54  ;;  %7250 = vmatprep.subr.bf16.mxu0 %v11829_v37  ;;  %v2228_v60 = vpack.c.bf16 %v2200_v56, %v2199_v32  ;;  %v2149_v10 = vunpack.c.l.bf16 %v10483_v54  ;;  %v2150_v48 = vunpack.c.h.bf16 %v10483_v54  ;;  %v2671_v32 = vunpack.c.l.bf16 %v10474_v57  ;;  %v10570_v56 = vld [vmem:[#allocation6 + $0x68] ss:$12 sps:$4 sm:$0xff]  }
 0x3f1   : > { %v7928_v18 = vpop.eup %7927  ;;  %7280 = vmatprep.subr.bf16.mxu1 %v11829_v37 }
 0x3f2   : > { %v10494_v14 = vpack.c.bf16 %v7928_v18, %v7926_v29  ;;  %7008 = vst [vmem:[#allocation3 + $0x98] sm:$0xff] %v2228_v60   ;;  %v2197_v58 = vsub.f32 %v7922_v62, %v2149_v10  ;;  %v2198_v38 = vsub.f32 %v7924_v1, %v2150_v48  ;;  %v11902_v1 = vmov 0   ;;  %v10602_v10 = vld [vmem:[#allocation2 + $0x10] sm:$0xff]   ;;  %v7618_v48 = vld [vmem:[#allocation3 + $0x28] sm:$0xff]  }
 0x3f3   : > { %7251 = vmatpush3.bf16.msra.mxu0 %v10352_v30 }
 0x3f4   : > { %6983 = vst [vmem:[#allocation2 + $0x88] sm:$0xff] %v10494_v14   ;;  %7281 = vmatpush3.bf16.msra.mxu1 %v10494_v14  ;;  %7252 = vmatprep.subr.bf16.mxu0 %v11829_v37  ;;  %v2227_v9 = vpack.c.bf16 %v2198_v38, %v2197_v58  ;;  %v2147_v34 = vunpack.c.l.bf16 %v10494_v14  ;;  %v2148_v15 = vunpack.c.h.bf16 %v10494_v14  ;;  %v10611_v58 = vld [vmem:[#allocation2 + $0x8] sm:$0xff]   ;;  %v7622_v38 = vld [vmem:[#allocation3 + $0x20] sm:$0xff]  }
 0x3f5   : > { %7282 = vmatprep.subr.bf16.mxu1 %v11829_v37 }
 0x3f6   : > { %7007 = vst [vmem:[#allocation3 + $0x90] sm:$0xff] %v2227_v9   ;;  %v2195_v50 = vsub.f32 %v7926_v29, %v2147_v34  ;;  %v2196_v33 = vsub.f32 %v7928_v18, %v2148_v15  ;;  %v10590_v29 = vld [vmem:[#allocation6 + $0x98] ss:$12 sps:$4 sm:$0xff]   ;;  %v10604_v18 = vld [vmem:[#allocation6 + $0xb0] ss:$12 sps:$4 sm:$0xff]  }
 0x3f7   : > { %7253 = vmatpush3.bf16.msra.mxu0 %v10404_v5  ;;  %v7624_v34 = vld [vmem:[#allocation3 + $0x18] sm:$0xff]   ;;  %v10620_v15 = vld [vmem:[#allocation6 + $0xe0] ss:$12 sps:$4 sm:$0xff]  }
 0x3f8   : > { %7254 = vmatprep.subr.bf16.mxu0 %v11829_v37  ;;  %v2226_v30 = vpack.c.bf16 %v2196_v33, %v2195_v50  ;;  %v7930_v24 = vpop.eup %7929  ;;  %v10623_v50 = vld [vmem:[#allocation6 + $0xf8] ss:$12 sps:$4 sm:$0xff]  }
 0x3f9   : > { %v10627_v33 = vld [vmem:[#allocation2 + $0x78] sm:$0xff]  }
 0x3fa   : > { %7006 = vst [vmem:[#allocation3 + $0x88] sm:$0xff] %v2226_v30  }
 0x3fb   : > { %7255 = vmatpush3.bf16.msra.mxu0 %v10452_v40  ;;  %v7976_v40 = vld [vmem:[#allocation2 + $0x38] sm:$0xff] }
 0x3fc   : > { %v7932_v45 = vpop.eup %7931  ;;  %7256 = vmatprep.subr.bf16.mxu0 %v11829_v37 }
 0x3fd   : > { %v2105_v3 = vpack.c.bf16 %v7932_v45, %v7930_v24  ;;  %v7602_v6 = vld [vmem:[#allocation3 + $0x90] sm:$0xff]  }
 0x3ff   : > { %6982 = vst [vmem:[#allocation2 + $0x80] sm:$0xff] %v2105_v3   ;;  %7283 = vmatpush3.bf16.msra.mxu1 %v2105_v3  ;;  %v2145_v0 = vunpack.c.l.bf16 %v2105_v3  ;;  %v2146_v5 = vunpack.c.h.bf16 %v2105_v3  ;;  %7257 = vmatpush3.bf16.msra.mxu0 %v2228_v60  ;;  %v7616_v60 = vld [vmem:[#allocation3 + $0x30] sm:$0xff]  }
 0x400   : > { %7288 = vmatprep.subr.bf16.mxu1 %v11829_v37  ;;  %7258 = vmatprep.subr.bf16.mxu0 %v11829_v37 }
 0x401   : > { %v2193_v25 = vsub.f32 %v7930_v24, %v2145_v0  ;;  %v2194_v17 = vsub.f32 %v7932_v45, %v2146_v5  ;;  %v10634_v24 = vld [vmem:[#allocation2 + $0x70] sm:$0xff]   ;;  %v7634_v0 = vld [vmem:[#allocation3] sm:$0xff]  }
 0x402   : > { %7285 = vmatmul.mubr.bf16.vlgmr.msra.gmra.mxu1 %v2670_v52  ;;  %v10636_v45 = vld [vmem:[#allocation6 + $0x110] ss:$12 sps:$4 sm:$0xff]  }
 0x403   : > { %7289 = vmatpush3.bf16.msra.mxu1 %v10267_v47  ;;  %v2225_v41 = vpack.c.bf16 %v2194_v17, %v2193_v25  ;;  %7304 = vmatprep.mubr.msk.bf16.mxu1 %vm8131_vm2, %v11829_v37  ;;  %v7975_v47 = vld [vmem:[#allocation2 + $0x78] sm:$0xff]  ;;  %v10650_v5 = vld [vmem:[#allocation2 + $0x60] sm:$0xff]  }
 0x404   : > { %7259 = vmatpush3.bf16.msra.mxu0 %v2227_v9  ;;  %7290 = vmatprep.subr.bf16.mxu1 %v11829_v37  ;;  %v10618_v9 = vld [vmem:[#allocation2] sm:$0xff]   ;;  %v7636_v25 = vld [vmem:[#allocation3 + $0x78] sm:$0xff]  }
 0x405   : > { %7260 = vmatprep.subr.bf16.mxu0 %v11829_v37  ;;  %7005 = vst [vmem:[#allocation3 + $0x80] sm:$0xff] %v2225_v41   ;;  %v10652_v17 = vld [vmem:[#allocation6 + $0x140] ss:$12 sps:$4 sm:$0xff]  }
 0x407   : > { %7291 = vmatpush3.bf16.msra.mxu1 %v10331_v8  ;;  %v7977_v8 = vld [vmem:[#allocation2 + $0x70] sm:$0xff] }
 0x408   : > { %7261 = vmatpush3.bf16.msra.mxu0 %v2226_v30  ;;  %7292 = vmatprep.subr.bf16.mxu1 %v11829_v37  ;;  %v7628_v30 = vld [vmem:[#allocation3 + $0x10] sm:$0xff]  }
 0x409   : > { %7262 = vmatprep.subr.bf16.mxu0 %v11829_v37 }
 0x40b   : > { %7293 = vmatpush3.bf16.msra.mxu1 %v10380_v7  ;;  %v7979_v7 = vld [vmem:[#allocation2 + $0x68] sm:$0xff] }
 0x40c   : > { %7263 = vmatpush3.bf16.msra.mxu0 %v2225_v41  ;;  %7294 = vmatprep.subr.bf16.mxu1 %v11829_v37  ;;  %v7604_v31 = vld [vmem:[#allocation3 + $0x80] sm:$0xff]  }
 0x40d   : > { %7090 = vmatprep.subr.bf16.mxu0 %v7975_v47  ;;  %v10655_v41 = vld [vmem:[#allocation6 + $0x158] ss:$12 sps:$4 sm:$0xff]  }
 0x40f   : > { %7265 = vmatmul.mubr.bf16.vlgmr.msra.gmra.mxu0 %v2670_v52  ;;  %7295 = vmatpush3.bf16.msra.mxu1 %v10431_v46  ;;  %v7980_v46 = vld [vmem:[#allocation2 + $0x28] sm:$0xff] }
 0x410   : > { %7091 = vmatpush3.bf16.msra.mxu0 %v7976_v40  ;;  %7296 = vmatprep.subr.bf16.mxu1 %v11829_v37  ;;  %v10643_v52 = vld [vmem:[#allocation2 + $0x68] sm:$0xff]  }
 0x411   : > { %7092 = vmatprep.subr.bf16.mxu0 %v7977_v8  ;;  %2792 = vmatprep.mubr.bf16.mxu0 %v10099_v13 }
 0x413   : > { %7297 = vmatpush3.bf16.msra.mxu1 %v10470_v55  ;;  %v7603_v55 = vld [vmem:[#allocation3 + $0x88] sm:$0xff]  }
 0x414   : > { %7093 = vmatpush3.bf16.msra.mxu0 %v7978_v63  ;;  %7298 = vmatprep.subr.bf16.mxu1 %v11829_v37 }
 0x415   : > { %7094 = vmatprep.subr.bf16.mxu0 %v7979_v7 }
 0x417   : > { %7299 = vmatpush3.bf16.msra.mxu1 %v10483_v54  ;;  %v10555_v54 = vld [vmem:[#allocation2 + $0x38] sm:$0xff]  }
 0x418   : > { %7095 = vmatpush3.bf16.msra.mxu0 %v7980_v46  ;;  %7300 = vmatprep.subr.bf16.mxu1 %v11829_v37 }
 0x419   : > { %7096 = vmatprep.subr.bf16.mxu0 %v7981_v35 }
 0x41b   : > { %7301 = vmatpush3.bf16.msra.mxu1 %v10494_v14  ;;  %v10607_v14 = vld [vmem:[#allocation6 + $0xc8] ss:$12 sps:$4 sm:$0xff]  }
 0x41c   : > { %7097 = vmatpush3.bf16.msra.mxu0 %v7982_v28  ;;  %7302 = vmatprep.subr.bf16.mxu1 %v11829_v37  ;;  %v2672_v37 = vunpack.c.l.bf16 %v10099_v13  ;;  %v7601_v13 = vld [vmem:[#allocation3 + $0x98] sm:$0xff]  }
 0x41d   : > { %7098 = vmatprep.subr.bf16.mxu0 %v10290_v12 }
 0x41e   : > { %v2675_v61 = vsub.f32 %v7983_v39, %v2672_v37  ;;  %v7653_v37 = vld [vmem:[#allocation3 + $0x48] sm:$0xff]  }
 0x41f   : > { %7303 = vmatpush3.bf16.msra.mxu1 %v2105_v3  ;;  %v10639_v3 = vld [vmem:[#allocation6 + $0x128] ss:$12 sps:$4 sm:$0xff]  }
 0x420   : > { %7099 = vmatpush3.bf16.msra.mxu0 %v10301_v53  ;;  %7308 = vmatprep.subr.bf16.mxu1 %v7597_v22  ;;  %v2678_v62 = vpack.c.bf16 %v2675_v61, %v2675_v61  ;;  %v10696_v39 = vld [vmem:[#allocation6 + $0x1e8] ss:$12 sps:$4 sm:$0xff]   ;;  %v7656_v61 = vld [vmem:[#allocation3 + $0x40] sm:$0xff]  }
 0x421   : > { %7100 = vmatprep.subr.bf16.mxu0 %v10343_v51 }
 0x422   : > { %7305 = vmatmul.mubr.bf16.vlgmr.msra.gmra.mxu1 %v2679_v44  ;;  %v10684_v44 = vld [vmem:[#allocation6 + $0x1a0] ss:$12 sps:$4 sm:$0xff]  }
 0x423   : > { %7309 = vmatpush3.bf16.msra.mxu1 %v7597_v22  ;;  %7324 = vmatprep.mubr.bf16.mxu1 %v10532_v20  ;;  %v10687_v22 = vld [vmem:[#allocation6 + $0x1b8] ss:$12 sps:$4 sm:$0xff]  }
 0x424   : > { %7101 = vmatpush3.bf16.msra.mxu0 %v10357_v2  ;;  %7310 = vmatprep.subr.bf16.mxu1 %v7598_v42 }
 0x425   : > { %7102 = vmatprep.subr.bf16.mxu0 %v10396_v36 }
 0x427   : > { %7311 = vmatpush3.bf16.msra.mxu1 %v7598_v42  ;;  %v7652_v42 = vld [vmem:[#allocation3 + $0x50] sm:$0xff]  }
 0x428   : > { %7103 = vmatpush3.bf16.msra.mxu0 %v10408_v59  ;;  %7312 = vmatprep.subr.bf16.mxu1 %v7599_v4 }
 0x429   : > { %7104 = vmatprep.subr.bf16.mxu0 %v10445_v26 }
 0x42b   : > { %7313 = vmatpush3.bf16.msra.mxu1 %v7599_v4  ;;  %v10694_v4 = vld [vmem:[#allocation6 + $0x1d0] ss:$12 sps:$4 sm:$0xff]  }
 0x42c   : > { %7105 = vmatpush3.bf16.msra.mxu0 %v10456_v27  ;;  %7314 = vmatprep.subr.bf16.mxu1 %v7600_v19 }
 0x42d   : > { %7121 = vmatprep.subr.bf16.mxu0 %v7975_v47  ;;  %v10659_v47 = vld [vmem:[#allocation2 + $0x58] sm:$0xff]  }
 0x42f   : > { %2793 = vmatmul.mubr.bf16.vlgmr.msra.gmra.mxu0 %v10474_v57  ;;  %7315 = vmatpush3.bf16.msra.mxu1 %v7600_v19  ;;  %v10587_v57 = vld [vmem:[#allocation6 + $0x80] ss:$12 sps:$4 sm:$0xff]   ;;  %v10700_v19 = vld [vmem:[#allocation2 + $0xb8] sm:$0xff]  }
 0x430   : > { %7122 = vmatpush3.bf16.msra.mxu0 %v7976_v40  ;;  %7316 = vmatprep.subr.bf16.mxu1 %v7601_v13  ;;  %v7640_v40 = vld [vmem:[#allocation3 + $0x70] sm:$0xff]  }
 0x431   : > { %7123 = vmatprep.subr.bf16.mxu0 %v7977_v8  ;;  %2872 = vmatprep.mubr.bf16.mxu0 %v2678_v62  ;;  %v10666_v8 = vld [vmem:[#allocation2 + $0x50] sm:$0xff]  }
 0x432   : > { %v7658_v62 = vld [vmem:[#allocation6] ss:$12 sps:$4 sm:$0xff]  }
 0x433   : > { %7317 = vmatpush3.bf16.msra.mxu1 %v7601_v13  ;;  %v7665_v13 = vld [vmem:[#allocation6 + $0x1c] ss:$12 sps:$4 sm:$0xff]  }
 0x434   : > { %7124 = vmatpush3.bf16.msra.mxu0 %v7978_v63  ;;  %7318 = vmatprep.subr.bf16.mxu1 %v7602_v6  ;;  %v7642_v63 = vld [vmem:[#allocation3 + $0x68] sm:$0xff]  }
 0x435   : > { %7125 = vmatprep.subr.bf16.mxu0 %v7979_v7  ;;  %v10668_v7 = vld [vmem:[#allocation6 + $0x170] ss:$12 sps:$4 sm:$0xff]  }
 0x437   : > { %7319 = vmatpush3.bf16.msra.mxu1 %v7602_v6  ;;  %v10704_v6 = vld [vmem:[#allocation6 + $0x200] ss:$12 sps:$4 sm:$0xff]  }
 0x438   : > { %7126 = vmatpush3.bf16.msra.mxu0 %v7980_v46  ;;  %7320 = vmatprep.subr.bf16.mxu1 %v7603_v55  ;;  %v10675_v46 = vld [vmem:[#allocation2 + $0x48] sm:$0xff]  }
 0x439   : > { %7127 = vmatprep.subr.bf16.mxu0 %v7981_v35  ;;  %v7646_v35 = vld [vmem:[#allocation3 + $0x60] sm:$0xff]  }
 0x43b   : > { %7321 = vmatpush3.bf16.msra.mxu1 %v7603_v55  ;;  %v10706_v55 = vld [vmem:[#allocation2 + $0xb0] sm:$0xff]  }
 0x43c   : > { %7128 = vmatpush3.bf16.msra.mxu0 %v7982_v28  ;;  %7322 = vmatprep.subr.bf16.mxu1 %v7604_v31  ;;  %v7648_v28 = vld [vmem:[#allocation3 + $0x58] sm:$0xff]  }
 0x43d   : > { %7129 = vmatprep.subr.bf16.mxu0 %v10290_v12  ;;  %v10564_v12 = vld [vmem:[#allocation2 + $0x30] sm:$0xff]  }
 0x43f   : > { %7323 = vmatpush3.bf16.msra.mxu1 %v7604_v31  ;;  %v10708_v31 = vld [vmem:[#allocation6 + $0x218] ss:$12 sps:$4 sm:$0xff]  }
 0x440   : > { %7130 = vmatpush3.bf16.msra.mxu0 %v10301_v53  ;;  %4333 = vmatprep.subr.bf16.mxu1 %v11902_v1  ;;  %v10566_v53 = vld [vmem:[#allocation6 + $0x50] ss:$12 sps:$4 sm:$0xff]  }
 0x441   : > { %7131 = vmatprep.subr.bf16.mxu0 %v10343_v51  ;;  %v2674_v51 = vsub.f32 %v10468_v16, %v2671_v32  ;;  %v10585_v16 = vld [vmem:[#allocation6 + $0x4] ss:$12 sps:$4 sm:$0xff]  }
 0x442   : > { %7325 = vmatmul.mubr.bf16.vlgmr.msra.gmra.mxu1 %v10548_v23  ;;  %v10713_v32 = vld [vmem:[#allocation2 + $0xa8] sm:$0xff]  }
 0x443   : > { %4334 = vmatpush1.bf16.msra.mxu1 %v10555_v54  ;;  %7328 = vmatprep.mubr.bf16.mxu1 %v10550_v49 }
 0x444   : > { %7132 = vmatpush3.bf16.msra.mxu0 %v10357_v2  ;;  %4335 = vmatprep.subr.bf16.mxu1 %v11902_v1  ;;  %v10575_v2 = vld [vmem:[#allocation2 + $0x28] sm:$0xff]  }
 0x445   : > { %7133 = vmatprep.subr.bf16.mxu0 %v10396_v36  ;;  %v2677_v36 = vpack.c.bf16 %v2674_v51, %v2674_v51  ;;  %v7667_v51 = vld [vmem:[#allocation6 + $0x18] ss:$12 sps:$4 sm:$0xff]  }
 0x447   : > { %4336 = vmatpush1.bf16.msra.mxu1 %v10564_v12 }
 0x448   : > { %7134 = vmatpush3.bf16.msra.mxu0 %v10408_v59  ;;  %4337 = vmatprep.subr.bf16.mxu1 %v11902_v1  ;;  %v10583_v59 = vld [vmem:[#allocation2 + $0x20] sm:$0xff]  }
 0x449   : > { %7135 = vmatprep.subr.bf16.mxu0 %v10445_v26  ;;  %v7612_v26 = vld [vmem:[#allocation3 + $0x38] sm:$0xff]  }
 0x44a   : > { %7329 = vmatmul.mubr.bf16.gmra.mxu1 %v10566_v53 }
 0x44b   : > { %4338 = vmatpush1.bf16.msra.mxu1 %v10575_v2  ;;  %7332 = vmatprep.mubr.bf16.mxu1 %v10570_v56 }
 0x44c   : > { %7136 = vmatpush3.bf16.msra.mxu0 %v10456_v27  ;;  %4339 = vmatprep.subr.bf16.mxu1 %v11902_v1  ;;  %v10594_v27 = vld [vmem:[#allocation2 + $0x18] sm:$0xff]  }
 0x44d   : > { %3739 = vmatprep.subr.bf16.mxu0 %v11902_v1 }
 0x44f   : > { %2873 = vmatmul.mubr.bf16.vlgmr.msra.gmra.mxu0 %v2677_v36  ;;  %4340 = vmatpush1.bf16.msra.mxu1 %v10583_v59  ;;  %v7672_v36 = vld [vmem:[#allocation6 + $0x34] ss:$12 sps:$4 sm:$0xff]  }
 0x450   : > { %3740 = vmatpush1.bf16.msra.mxu0 %v7612_v26  ;;  %4341 = vmatprep.subr.bf16.mxu1 %v11902_v1  ;;  %v10718_v26 = vld [vmem:[#allocation6 + $0x230] ss:$12 sps:$4 sm:$0xff]  }
 0x451   : > { %3741 = vmatprep.subr.bf16.mxu0 %v11902_v1  ;;  %3771 = vmatprep.mubr.bf16.mxu0 %v10585_v16  ;;  %11903 = vst [vmem:[#allocation60_spill] sm:$0xff] %v10718_v26 }
 0x452   : > { %7333 = vmatmul.mubr.bf16.gmra.mxu1 %v10587_v57 }
 0x453   : > { %4342 = vmatpush1.bf16.msra.mxu1 %v10594_v27  ;;  %7336 = vmatprep.mubr.bf16.mxu1 %v10590_v29 }
 0x454   : > { %3742 = vmatpush1.bf16.msra.mxu0 %v7616_v60  ;;  %4343 = vmatprep.subr.bf16.mxu1 %v11902_v1  ;;  %v10720_v60 = vld [vmem:[#allocation2 + $0xa0] sm:$0xff]  }
 0x455   : > { %3743 = vmatprep.subr.bf16.mxu0 %v11902_v1 }
 0x457   : > { %4344 = vmatpush1.bf16.msra.mxu1 %v10602_v10 }
 0x458   : > { %3744 = vmatpush1.bf16.msra.mxu0 %v7618_v48  ;;  %4345 = vmatprep.subr.bf16.mxu1 %v11902_v1  ;;  %v10725_v48 = vld [vmem:[#allocation2 + $0x98] sm:$0xff]  }
 0x459   : > { %3745 = vmatprep.subr.bf16.mxu0 %v11902_v1 }
 0x45a   : > { %7337 = vmatmul.mubr.bf16.gmra.mxu1 %v10604_v18 }
 0x45b   : > { %4346 = vmatpush1.bf16.msra.mxu1 %v10611_v58  ;;  %7340 = vmatprep.mubr.bf16.mxu1 %v10607_v14 }
 0x45c   : > { %3746 = vmatpush1.bf16.msra.mxu0 %v7622_v38  ;;  %4347 = vmatprep.subr.bf16.mxu1 %v11902_v1  ;;  %v7674_v38 = vld [vmem:[#allocation6 + $0x30] ss:$12 sps:$4 sm:$0xff]  }
 0x45d   : > { %3747 = vmatprep.subr.bf16.mxu0 %v11902_v1 }
 0x45f   : > { %4348 = vmatpush1.bf16.msra.mxu1 %v10618_v9 }
 0x460   : > { %3748 = vmatpush1.bf16.msra.mxu0 %v7624_v34  ;;  %4349 = vmatprep.subr.bf16.mxu1 %v11902_v1  ;;  %v7677_v34 = vld [vmem:[#allocation6 + $0x4c] ss:$12 sps:$4 sm:$0xff]  }
 0x461   : > { %3749 = vmatprep.subr.bf16.mxu0 %v11902_v1 }
 0x462   : > { %7341 = vmatmul.mubr.bf16.gmra.mxu1 %v10620_v15 }
 0x463   : > { %4350 = vmatpush2.bf16.msra.mxu1 %v10627_v33  ;;  %7344 = vmatprep.mubr.bf16.mxu1 %v10623_v50 }
 0x464   : > { %3750 = vmatpush1.bf16.msra.mxu0 %v7628_v30  ;;  %4351 = vmatprep.subr.bf16.mxu1 %v11902_v1  ;;  %v10730_v30 = vld [vmem:[#allocation2 + $0x90] sm:$0xff]  }
 0x465   : > { %3751 = vmatprep.subr.bf16.mxu0 %v11902_v1 }
 0x467   : > { %4352 = vmatpush2.bf16.msra.mxu1 %v10634_v24 }
 0x468   : > { %3752 = vmatpush1.bf16.msra.mxu0 %v7630_v11  ;;  %4353 = vmatprep.subr.bf16.mxu1 %v11902_v1  ;;  %v10735_v11 = vld [vmem:[#allocation2 + $0x88] sm:$0xff]  }
 0x469   : > { %3753 = vmatprep.subr.bf16.mxu0 %v11902_v1 }
 0x46a   : > { %7345 = vmatmul.mubr.bf16.gmra.mxu1 %v10636_v45 }
 0x46b   : > { %4354 = vmatpush2.bf16.msra.mxu1 %v10643_v52  ;;  %7348 = vmatprep.mubr.bf16.mxu1 %v10639_v3 }
 0x46c   : > { %3754 = vmatpush1.bf16.msra.mxu0 %v7634_v0  ;;  %4355 = vmatprep.subr.bf16.mxu1 %v11902_v1  ;;  %v7679_v0 = vld [vmem:[#allocation6 + $0x48] ss:$12 sps:$4 sm:$0xff]  }
 0x46d   : > { %3755 = vmatprep.subr.bf16.mxu0 %v11902_v1 }
 0x46f   : > { %4356 = vmatpush2.bf16.msra.mxu1 %v10650_v5 }
 0x470   : > { %3756 = vmatpush2.bf16.msra.mxu0 %v7636_v25  ;;  %4357 = vmatprep.subr.bf16.mxu1 %v11902_v1  ;;  %v10741_v25 = vld [vmem:[#allocation2 + $0x80] sm:$0xff]  }
 0x471   : > { %3757 = vmatprep.subr.bf16.mxu0 %v11902_v1 }
 0x472   : > { %7349 = vmatmul.mubr.bf16.gmra.mxu1 %v10652_v17 }
 0x473   : > { %4358 = vmatpush2.bf16.msra.mxu1 %v10659_v47  ;;  %7352 = vmatprep.mubr.bf16.mxu1 %v10655_v41 }
 0x474   : > { %3758 = vmatpush2.bf16.msra.mxu0 %v7640_v40  ;;  %4359 = vmatprep.subr.bf16.mxu1 %v11902_v1  ;;  %v7684_v40 = vld [vmem:[#allocation6 + $0x7c] ss:$12 sps:$4 sm:$0xff]  }
 0x475   : > { %3759 = vmatprep.subr.bf16.mxu0 %v11902_v1 }
 0x477   : > { %4360 = vmatpush2.bf16.msra.mxu1 %v10666_v8 }
 0x478   : > { %3760 = vmatpush2.bf16.msra.mxu0 %v7642_v63  ;;  %4361 = vmatprep.subr.bf16.mxu1 %v11902_v1 }
 0x479   : > { %3761 = vmatprep.subr.bf16.mxu0 %v11902_v1 }
 0x47a   : > { %7353 = vmatmul.mubr.bf16.gmra.mxu1 %v10668_v7 }
 0x47b   : > { %4362 = vmatpush2.bf16.msra.mxu1 %v10675_v46  ;;  %7356 = vmatprep.mubr.bf16.mxu1 %v10671_v43 }
 0x47c   : > { %3762 = vmatpush2.bf16.msra.mxu0 %v7646_v35  ;;  %4363 = vmatprep.subr.bf16.mxu1 %v11902_v1 }
 0x47d   : > { %3763 = vmatprep.subr.bf16.mxu0 %v11902_v1 }
 0x47f   : > { %4364 = vmatpush2.bf16.msra.mxu1 %v10682_v21 }
 0x480   : > { %3764 = vmatpush2.bf16.msra.mxu0 %v7648_v28  ;;  %5167 = vmatprep.subr.bf16.mxu1 %v11902_v1 }
 0x481   : > { %3765 = vmatprep.subr.bf16.mxu0 %v11902_v1 }
 0x482   : > { %7357 = vmatmul.mubr.bf16.gmra.mxu1 %v10684_v44 }
 0x483   : > { %7360 = vmatprep.mubr.bf16.mxu1 %v10687_v22 }
 0x484   : > { %3766 = vmatpush2.bf16.msra.mxu0 %v7652_v42  ;;  %v7687_v42 = vld [vmem:[#allocation6 + $0x94] ss:$12 sps:$4 sm:$0xff]  }
 0x485   : > { %3767 = vmatprep.subr.bf16.mxu0 %v11902_v1 }
 0x488   : > { %3768 = vmatpush2.bf16.msra.mxu0 %v7653_v37 }
 0x489   : > { %3769 = vmatprep.subr.bf16.mxu0 %v11902_v1 }
 0x48a   : > { %7361 = vmatmul.mubr.bf16.gmra.mxu1 %v10694_v4 }
 0x48b   : > { %7364 = vmatprep.mubr.bf16.mxu1 %v10696_v39 }
 0x48c   : > { %3770 = vmatpush2.bf16.msra.mxu0 %v7656_v61 }
 0x48d   : > { %7372 = vmatprep.subr.bf16.mxu0 %v10700_v19 }
 0x48f   : > { %3772 = vmatmul.mubr.bf16.vlgmr.msra.gmra.mxu0 %v7658_v62 }
 0x490   : > { %7373 = vmatpush3.bf16.msra.mxu0 %v10700_v19  ;;  %3779 = vmatprep.mubr.bf16.mxu0 %v7665_v13 }
 0x491   : > { %7374 = vmatprep.subr.bf16.mxu0 %v10706_v55 }
 0x492   : > { %7365 = vmatmul.mubr.bf16.gmra.mxu1 %v10704_v6 }
 0x493   : > { %7368 = vmatprep.mubr.bf16.mxu1 %v10708_v31 }
 0x494   : > { %7375 = vmatpush3.bf16.msra.mxu0 %v10706_v55 }
 0x495   : > { %7376 = vmatprep.subr.bf16.mxu0 %v10713_v32 }
 0x497   : > { %3780 = vmatmul.mubr.bf16.gmra.mxu0 %v7667_v51 }
 0x498   : > { %7377 = vmatpush3.bf16.msra.mxu0 %v10713_v32  ;;  %3787 = vmatprep.mubr.bf16.mxu0 %v7672_v36 }
 0x499   : > { %7378 = vmatprep.subr.bf16.mxu0 %v10720_v60 }
 0x49a   : > { %7369 = vmatmul.mubr.bf16.gmra.mxu1 %v10718_v26 }
 0x49b   : > { %4365 = vmatprep.mubr.bf16.mxu1 %v10585_v16  ;;  %v7681_v16 = vld [vmem:[#allocation6 + $0x64] ss:$12 sps:$4 sm:$0xff]  }
 0x49c   : > { %7379 = vmatpush3.bf16.msra.mxu0 %v10720_v60 }
 0x49d   : > { %7380 = vmatprep.subr.bf16.mxu0 %v10725_v48 }
 0x49f   : > { %3788 = vmatmul.mubr.bf16.gmra.mxu0 %v7674_v38 }
 0x4a0   : > { %7381 = vmatpush3.bf16.msra.mxu0 %v10725_v48  ;;  %3795 = vmatprep.mubr.bf16.mxu0 %v7677_v34 }
 0x4a1   : > { %7382 = vmatprep.subr.bf16.mxu0 %v10730_v30 }
 0x4a2   : > { %4366 = vmatmul.mubr.bf16.vlgmr.msra.gmra.mxu1 %v7658_v62 }
 0x4a3   : > { %5168 = vmatpush1.bf16.msra.mxu1 %v10555_v54  ;;  %4373 = vmatprep.mubr.bf16.mxu1 %v7665_v13  ;;  %v7683_v54 = vld [vmem:[#allocation6 + $0x60] ss:$12 sps:$4 sm:$0xff]  }
 0x4a4   : > { %7383 = vmatpush3.bf16.msra.mxu0 %v10730_v30  ;;  %5169 = vmatprep.subr.bf16.mxu1 %v11902_v1 }
 0x4a5   : > { %7384 = vmatprep.subr.bf16.mxu0 %v10735_v11 }
 0x4a7   : > { %3796 = vmatmul.mubr.bf16.gmra.mxu0 %v7679_v0  ;;  %5170 = vmatpush1.bf16.msra.mxu1 %v10564_v12 }
 0x4a8   : > { %7385 = vmatpush3.bf16.msra.mxu0 %v10735_v11  ;;  %5171 = vmatprep.subr.bf16.mxu1 %v11902_v1 }
 0x4a9   : > { %7386 = vmatprep.subr.bf16.mxu0 %v10741_v25  ;;  %3803 = vmatprep.mubr.bf16.mxu0 %v7681_v16 }
 0x4aa   : > { %4374 = vmatmul.mubr.bf16.gmra.mxu1 %v7667_v51 }
 0x4ab   : > { %5172 = vmatpush1.bf16.msra.mxu1 %v10575_v2  ;;  %4381 = vmatprep.mubr.bf16.mxu1 %v7672_v36  ;;  %v7686_v2 = vld [vmem:[#allocation6 + $0x78] ss:$12 sps:$4 sm:$0xff]  }
 0x4ac   : > { %7387 = vmatpush3.bf16.msra.mxu0 %v10741_v25  ;;  %5173 = vmatprep.subr.bf16.mxu1 %v11902_v1 }
 0x4ad   : > { %7436 = vmatprep.subr.bf16.mxu0 %v10700_v19 }
 0x4ae   : > { %v7075_v12 = vpop.f32.mrf.mxu0 }
 0x4af   : > { %3804 = vmatmul.mubr.bf16.gmra.mxu0 %v7683_v54  ;;  %5174 = vmatpush1.bf16.msra.mxu1 %v10583_v59  ;;  %v7689_v59 = vld [vmem:[#allocation6 + $0x90] ss:$12 sps:$4 sm:$0xff]  }
 0x4b0   : > { %5175 = vmatprep.subr.bf16.mxu1 %v11902_v1  ;;  %3811 = vmatprep.mubr.bf16.mxu0 %v7684_v40  ;;  %v7076_v63 = vpop.f32.mrf.mxu0 }
 0x4b1   : > { %v7077_v35 = vadd.f32 %v7076_v63, %v7075_v12  ;;  %v7705_v12 = vld [vmem:[#allocation6 + $0x124] ss:$12 sps:$4 sm:$0xff]  }
 0x4b2   : > { %4382 = vmatmul.mubr.bf16.gmra.mxu1 %v7674_v38  ;;  %v7078_v28 = vpop.f32.mrf.mxu0 }
 0x4b3   : > { %5176 = vmatpush1.bf16.msra.mxu1 %v10594_v27  ;;  %4389 = vmatprep.mubr.bf16.mxu1 %v7677_v34  ;;  %v7690_v27 = vld [vmem:[#allocation6 + $0xac] ss:$12 sps:$4 sm:$0xff]  }
 0x4b4   : > { %5177 = vmatprep.subr.bf16.mxu1 %v11902_v1  ;;  %v7079_v37 = vpop.f32.mrf.mxu0  ;;  %v7698_v34 = vld [vmem:[#allocation6 + $0xd8] ss:$12 sps:$4 sm:$0xff]  }
 0x4b7   : > { %3812 = vmatmul.mubr.bf16.gmra.mxu0 %v7686_v2  ;;  %5178 = vmatpush1.bf16.msra.mxu1 %v10602_v10  ;;  %v7692_v10 = vld [vmem:[#allocation6 + $0xa8] ss:$12 sps:$4 sm:$0xff]  }
 0x4b8   : > { %5179 = vmatprep.subr.bf16.mxu1 %v11902_v1  ;;  %3819 = vmatprep.mubr.bf16.mxu0 %v7687_v42 }
 0x4ba   : > { %4390 = vmatmul.mubr.bf16.gmra.mxu1 %v7679_v0  ;;  %v7699_v0 = vld [vmem:[#allocation6 + $0xf4] ss:$12 sps:$4 sm:$0xff]  }
 0x4bb   : > { %5180 = vmatpush1.bf16.msra.mxu1 %v10611_v58  ;;  %4397 = vmatprep.mubr.bf16.mxu1 %v7681_v16  ;;  %v7693_v58 = vld [vmem:[#allocation6 + $0xc4] ss:$12 sps:$4 sm:$0xff]  }
 0x4bc   : > { %5181 = vmatprep.subr.bf16.mxu1 %v11902_v1 }
 0x4bf   : > { %3820 = vmatmul.mubr.bf16.gmra.mxu0 %v7689_v59  ;;  %5182 = vmatpush1.bf16.msra.mxu1 %v10618_v9  ;;  %v7695_v9 = vld [vmem:[#allocation6 + $0xc0] ss:$12 sps:$4 sm:$0xff]  }
 0x4c0   : > { %5183 = vmatprep.subr.bf16.mxu1 %v11902_v1  ;;  %3827 = vmatprep.mubr.bf16.mxu0 %v7690_v27 }
 0x4c2   : > { %v10760_v61 = vpop.f32.mrf.mxu1  ;;  %4398 = vmatmul.mubr.bf16.gmra.mxu1 %v7683_v54 }
 0x4c3   : > { %5184 = vmatpush2.bf16.msra.mxu1 %v10627_v33  ;;  %4405 = vmatprep.mubr.bf16.mxu1 %v7684_v40  ;;  %v7696_v33 = vld [vmem:[#allocation6 + $0xdc] ss:$12 sps:$4 sm:$0xff]  }
 0x4c4   : > { %v7286_v62 = vpop.f32.mrf.mxu1  ;;  %5185 = vmatprep.subr.bf16.mxu1 %v11902_v1  ;;  %v7704_v40 = vld [vmem:[#allocation6 + $0x108] ss:$12 sps:$4 sm:$0xff]  }
 0x4c6   : > { %v2837_v13 = vpop.f32.mrf.mxu1 }
 0x4c7   : > { %3828 = vmatmul.mubr.bf16.gmra.mxu0 %v7692_v10  ;;  %5186 = vmatpush2.bf16.msra.mxu1 %v10634_v24  ;;  %v7714_v13 = vld [vmem:[#allocation6 + $0x16c] ss:$12 sps:$4 sm:$0xff]  }
 0x4c8   : > { %v7287_v51 = vpop.f32.mrf.mxu1  ;;  %5187 = vmatprep.subr.bf16.mxu1 %v11902_v1  ;;  %3835 = vmatprep.mubr.bf16.mxu0 %v7693_v58 }
 0x4ca   : > { %4406 = vmatmul.mubr.bf16.gmra.mxu1 %v7686_v2 }
 0x4cb   : > { %5188 = vmatpush2.bf16.msra.mxu1 %v10643_v52  ;;  %4413 = vmatprep.mubr.bf16.mxu1 %v7687_v42  ;;  %v7710_v42 = vld [vmem:[#allocation6 + $0x138] ss:$12 sps:$4 sm:$0xff]  }
 0x4cc   : > { %5189 = vmatprep.subr.bf16.mxu1 %v11902_v1 }
 0x4cf   : > { %v2754_v36 = vpop.f32.mrf.mxu0  ;;  %3836 = vmatmul.mubr.bf16.gmra.mxu0 %v7695_v9  ;;  %5190 = vmatpush2.bf16.msra.mxu1 %v10650_v5  ;;  %v7701_v5 = vld [vmem:[#allocation6 + $0xf0] ss:$12 sps:$4 sm:$0xff]  }
 0x4d0   : > { %v2755_v38 = vadd.f32 %v7077_v35, %v2754_v36  ;;  %5191 = vmatprep.subr.bf16.mxu1 %v11902_v1  ;;  %3843 = vmatprep.mubr.bf16.mxu0 %v7696_v33  ;;  %v7717_v36 = vld [vmem:[#allocation6 + $0x184] ss:$12 sps:$4 sm:$0xff]  }
 0x4d1   : > { %v7266_v24 = vpop.f32.mrf.mxu0 }
 0x4d2   : > { %4414 = vmatmul.mubr.bf16.gmra.mxu1 %v7689_v59 }
 0x4d3   : > { %5192 = vmatpush2.bf16.msra.mxu1 %v10659_v47  ;;  %4421 = vmatprep.mubr.bf16.mxu1 %v7690_v27  ;;  %v2757_v52 = vpop.f32.mrf.mxu0  ;;  %v7702_v47 = vld [vmem:[#allocation6 + $0x10c] ss:$12 sps:$4 sm:$0xff]   ;;  %v7711_v27 = vld [vmem:[#allocation6 + $0x154] ss:$12 sps:$4 sm:$0xff]  }
 0x4d4   : > { %5193 = vmatprep.subr.bf16.mxu1 %v11902_v1 }
 0x4d5   : > { %v7267_v16 = vpop.f32.mrf.mxu0 }
 0x4d7   : > { %3844 = vmatmul.mubr.bf16.gmra.mxu0 %v7698_v34  ;;  %5194 = vmatpush2.bf16.msra.mxu1 %v10666_v8 }
 0x4d8   : > { %5195 = vmatprep.subr.bf16.mxu1 %v11902_v1  ;;  %3851 = vmatprep.mubr.bf16.mxu0 %v7699_v0 }
 0x4da   : > { %4422 = vmatmul.mubr.bf16.gmra.mxu1 %v7692_v10 }
 0x4db   : > { %5196 = vmatpush2.bf16.msra.mxu1 %v10675_v46  ;;  %4429 = vmatprep.mubr.bf16.mxu1 %v7693_v58  ;;  %v7707_v46 = vld [vmem:[#allocation6 + $0x120] ss:$12 sps:$4 sm:$0xff]   ;;  %v7713_v58 = vld [vmem:[#allocation6 + $0x150] ss:$12 sps:$4 sm:$0xff]  }
 0x4dc   : > { %5197 = vmatprep.subr.bf16.mxu1 %v11902_v1  ;;  %v7708_v1 = vld [vmem:[#allocation6 + $0x13c] ss:$12 sps:$4 sm:$0xff]  }
 0x4df   : > { %3852 = vmatmul.mubr.bf16.gmra.mxu0 %v7701_v5  ;;  %5198 = vmatpush2.bf16.msra.mxu1 %v10682_v21 }
 0x4e0   : > { %3859 = vmatprep.mubr.bf16.mxu0 %v7702_v47 }
 0x4e2   : > { %v10777_v54 = vpop.f32.mrf.mxu1  ;;  %4430 = vmatmul.mubr.bf16.gmra.mxu1 %v7695_v9  ;;  %v7716_v9 = vld [vmem:[#allocation6 + $0x168] ss:$12 sps:$4 sm:$0xff]  }
 0x4e3   : > { %4437 = vmatprep.mubr.bf16.mxu1 %v7696_v33 }
 0x4e4   : > { %v7306_v8 = vpop.f32.mrf.mxu1 }
 0x4e6   : > { %v2917_v63 = vpop.f32.mrf.mxu1 }
 0x4e7   : > { %3860 = vmatmul.mubr.bf16.gmra.mxu0 %v7704_v40  ;;  %v7722_v63 = vld [vmem:[#allocation6 + $0x198] ss:$12 sps:$4 sm:$0xff]  }
 0x4e8   : > { %v7307_v35 = vpop.f32.mrf.mxu1  ;;  %3867 = vmatprep.mubr.bf16.mxu0 %v7705_v12 }
 0x4ea   : > { %4438 = vmatmul.mubr.bf16.gmra.mxu1 %v7698_v34  ;;  %v7719_v34 = vld [vmem:[#allocation6 + $0x180] ss:$12 sps:$4 sm:$0xff]  }
 0x4eb   : > { %4445 = vmatprep.mubr.bf16.mxu1 %v7699_v0  ;;  %v7720_v0 = vld [vmem:[#allocation6 + $0x19c] ss:$12 sps:$4 sm:$0xff]  }
 0x4ef   : > { %v7106_v2 = vpop.f32.mrf.mxu0  ;;  %3868 = vmatmul.mubr.bf16.gmra.mxu0 %v7707_v46 }
 0x4f0   : > { %3875 = vmatprep.mubr.bf16.mxu0 %v7708_v1 }
 0x4f1   : > { %v7107_v21 = vpop.f32.mrf.mxu0 }
 0x4f2   : > { %v7108_v28 = vadd.f32 %v7107_v21, %v7106_v2  ;;  %4446 = vmatmul.mubr.bf16.gmra.mxu1 %v7701_v5  ;;  %v7723_v2 = vld [vmem:[#allocation6 + $0x1b4] ss:$12 sps:$4 sm:$0xff]  }
 0x4f3   : > { %4453 = vmatprep.mubr.bf16.mxu1 %v7702_v47  ;;  %v7109_v37 = vpop.f32.mrf.mxu0 }
 0x4f4   : > { %v2795_v59 = vadd.f32 %v7108_v28, %v2755_v38 }
 0x4f5   : > { %v7110_v10 = vpop.f32.mrf.mxu0 }
 0x4f6   : > { %v2835_v62 = vadd.f32 %v10760_v61, %v2795_v59 }
 0x4f7   : > { %3876 = vmatmul.mubr.bf16.gmra.mxu0 %v7710_v42 }
 0x4f8   : > { %3883 = vmatprep.mubr.bf16.mxu0 %v7711_v27 }
 0x4fa   : > { %4454 = vmatmul.mubr.bf16.gmra.mxu1 %v7704_v40 }
 0x4fb   : > { %4461 = vmatprep.mubr.bf16.mxu1 %v7705_v12 }
 0x4ff   : > { %3884 = vmatmul.mubr.bf16.gmra.mxu0 %v7713_v58 }
 0x500   : > { %3891 = vmatprep.mubr.bf16.mxu0 %v7714_v13 }
 0x502   : > { %v10780_v51 = vpop.f32.mrf.mxu1  ;;  %4462 = vmatmul.mubr.bf16.gmra.mxu1 %v7707_v46 }
 0x503   : > { %4469 = vmatprep.mubr.bf16.mxu1 %v7708_v1 }
 0x504   : > { %v10782_v33 = vpop.f32.mrf.mxu1 }
 0x506   : > { %v10784_v38 = vpop.f32.mrf.mxu1 }
 0x507   : > { %3892 = vmatmul.mubr.bf16.gmra.mxu0 %v7716_v9 }
 0x508   : > { %v10786_v61 = vpop.f32.mrf.mxu1  ;;  %3899 = vmatprep.mubr.bf16.mxu0 %v7717_v36 }
 0x50a   : > { %v10788_v24 = vpop.f32.mrf.mxu1  ;;  %4470 = vmatmul.mubr.bf16.gmra.mxu1 %v7710_v42 }
 0x50b   : > { %4477 = vmatprep.mubr.bf16.mxu1 %v7711_v27  ;;  %v7725_v27 = vld [vmem:[#allocation6 + $0x1b0] ss:$12 sps:$4 sm:$0xff]  }
 0x50c   : > { %v10790_v52 = vpop.f32.mrf.mxu1 }
 0x50e   : > { %v10792_v16 = vpop.f32.mrf.mxu1 }
 0x50f   : > { %v7137_v5 = vpop.f32.mrf.mxu0  ;;  %3900 = vmatmul.mubr.bf16.gmra.mxu0 %v7719_v34 }
 0x510   : > { %v10794_v47 = vpop.f32.mrf.mxu1  ;;  %3907 = vmatprep.mubr.bf16.mxu0 %v7720_v0 }
 0x511   : > { %v7138_v40 = vpop.f32.mrf.mxu0 }
 0x512   : > { %v7139_v8 = vadd.f32 %v7138_v40, %v7137_v5  ;;  %v10796_v12 = vpop.f32.mrf.mxu1  ;;  %4478 = vmatmul.mubr.bf16.gmra.mxu1 %v7713_v58  ;;  %v7728_v5 = vld [vmem:[#allocation6 + $0x1c8] ss:$12 sps:$4 sm:$0xff]  }
 0x513   : > { %4485 = vmatprep.mubr.bf16.mxu1 %v7714_v13  ;;  %v7140_v35 = vpop.f32.mrf.mxu0 }
 0x514   : > { %v2915_v46 = vadd.f32 %v7139_v8, %v10777_v54  ;;  %v10799_v1 = vpop.f32.mrf.mxu1  ;;  %v7726_v54 = vld [vmem:[#allocation6 + $0x1cc] ss:$12 sps:$4 sm:$0xff]   ;;  %v7729_v8 = vld [vmem:[#allocation6 + $0x1e4] ss:$12 sps:$4 sm:$0xff]  }
 0x515   : > { %v7141_v21 = vpop.f32.mrf.mxu0 }
 0x516   : > { %v2920_v28 = vadd.f32 %v2915_v46, %v2835_v62  ;;  %v10801_v42 = vpop.f32.mrf.mxu1  ;;  %v7731_v46 = vld [vmem:[#allocation6 + $0x1e0] ss:$12 sps:$4 sm:$0xff]  }
 0x517   : > { %3908 = vmatmul.mubr.bf16.gmra.mxu0 %v7722_v63 }
 0x518   : > { %2921 = vst [vmem:[#allocation4] sm:$0x1] %v2920_v28  ;;  %v10803_v37 = vpop.f32.mrf.mxu1  ;;  %3915 = vmatprep.mubr.bf16.mxu0 %v7723_v2  ;;  %v7732_v28 = vld [vmem:[#allocation6 + $0x1fc] ss:$12 sps:$4 sm:$0xff]  }
 0x51a   : > { %v10805_v59 = vpop.f32.mrf.mxu1  ;;  %4486 = vmatmul.mubr.bf16.gmra.mxu1 %v7716_v9 }
 0x51b   : > { %4493 = vmatprep.mubr.bf16.mxu1 %v7717_v36 }
 0x51c   : > { %v10807_v10 = vpop.f32.mrf.mxu1 }
 0x51e   : > { %v10809_v58 = vpop.f32.mrf.mxu1 }
 0x51f   : > { %3916 = vmatmul.mubr.bf16.gmra.mxu0 %v7725_v27 }
 0x520   : > { %v10811_v13 = vpop.f32.mrf.mxu1  ;;  %3923 = vmatprep.mubr.bf16.mxu0 %v7726_v54 }
 0x522   : > { %v10813_v62 = vpop.f32.mrf.mxu1  ;;  %4494 = vmatmul.mubr.bf16.gmra.mxu1 %v7719_v34 }
 0x523   : > { %11904 = vst [vmem:[#allocation62_spill] sm:$0xff] %v10813_v62  ;;  %4501 = vmatprep.mubr.bf16.mxu1 %v7720_v0 }
 0x524   : > { %v10815_v40 = vpop.f32.mrf.mxu1 }
 0x526   : > { %v10817_v9 = vpop.f32.mrf.mxu1 }
 0x527   : > { %11905 = vst [vmem:[#allocation107_spill] sm:$0xff] %v10817_v9  ;;  %3924 = vmatmul.mubr.bf16.gmra.mxu0 %v7728_v5  ;;  %v7734_v9 = vld [vmem:[#allocation6 + $0x1f8] ss:$12 sps:$4 sm:$0xff]  }
 0x528   : > { %v10819_v36 = vpop.f32.mrf.mxu1  ;;  %3931 = vmatprep.mubr.bf16.mxu0 %v7729_v8 }
 0x52a   : > { %v10821_v35 = vpop.f32.mrf.mxu1  ;;  %4502 = vmatmul.mubr.bf16.gmra.mxu1 %v7722_v63 }
 0x52b   : > { %11906 = vst [vmem:[#allocation64_spill] sm:$0xff] %v10821_v35  ;;  %4509 = vmatprep.mubr.bf16.mxu1 %v7723_v2  ;;  %v7735_v35 = vld [vmem:[#allocation6 + $0x214] ss:$12 sps:$4 sm:$0xff]  }
 0x52c   : > { %v10823_v21 = vpop.f32.mrf.mxu1 }
 0x52d   : > { %11907 = vst [vmem:[#allocation66_spill] sm:$0xff] %v10823_v21 }
 0x52e   : > { %v10825_v34 = vpop.f32.mrf.mxu1 }
 0x52f   : > { %11908 = vst [vmem:[#allocation109_spill] sm:$0xff] %v10825_v34  ;;  %3932 = vmatmul.mubr.bf16.gmra.mxu0 %v7731_v46  ;;  %v7737_v34 = vld [vmem:[#allocation6 + $0x210] ss:$12 sps:$4 sm:$0xff]  }
 0x530   : > { %v10827_v0 = vpop.f32.mrf.mxu1  ;;  %3939 = vmatprep.mubr.bf16.mxu0 %v7732_v28 }
 0x531   : > { %11909 = vst [vmem:[#allocation112_spill] sm:$0xff] %v10827_v0 }
 0x532   : > { %v10829_v62 = vpop.f32.mrf.mxu1  ;;  %4510 = vmatmul.mubr.bf16.gmra.mxu1 %v7725_v27 }
 0x533   : > { %11910 = vst [vmem:[#allocation114_spill] sm:$0xff] %v10829_v62  ;;  %4517 = vmatprep.mubr.bf16.mxu1 %v7726_v54  ;;  %v7738_v62 = vld [vmem:[#allocation6 + $0x22c] ss:$12 sps:$4 sm:$0xff]  }
 0x534   : > { %v10831_v26 = vpop.f32.mrf.mxu1 }
 0x535   : > { %11911 = vst [vmem:[#allocation128_spill] sm:$0xff] %v10831_v26 }
 0x536   : > { %v10833_v63 = vpop.f32.mrf.mxu1 }
 0x537   : > { %11912 = vst [vmem:[#allocation116_spill] sm:$0xff] %v10833_v63  ;;  %3940 = vmatmul.mubr.bf16.gmra.mxu0 %v7734_v9  ;;  %v7740_v63 = vld [vmem:[#allocation6 + $0x228] ss:$12 sps:$4 sm:$0xff]  }
 0x538   : > { %v10835_v2 = vpop.f32.mrf.mxu1  ;;  %3947 = vmatprep.mubr.bf16.mxu0 %v7735_v35 }
 0x539   : > { %11913 = vst [vmem:[#allocation130_spill] sm:$0xff] %v10835_v2 }
 0x53a   : > { %v10837_v21 = vpop.f32.mrf.mxu1  ;;  %4518 = vmatmul.mubr.bf16.gmra.mxu1 %v7728_v5 }
 0x53b   : > { %11914 = vst [vmem:[#allocation70_spill] sm:$0xff] %v10837_v21  ;;  %4525 = vmatprep.mubr.bf16.mxu1 %v7729_v8 }
 0x53c   : > { %v10839_v0 = vpop.f32.mrf.mxu1 }
 0x53e   : > { %v10841_v27 = vpop.f32.mrf.mxu1 }
 0x53f   : > { %11915 = vst [vmem:[#allocation119_spill] sm:$0xff] %v10841_v27  ;;  %3948 = vmatmul.mubr.bf16.gmra.mxu0 %v7737_v34 }
 0x540   : > { %v10843_v54 = vpop.f32.mrf.mxu1  ;;  %3955 = vmatprep.mubr.bf16.mxu0 %v7738_v62 }
 0x541   : > { %11916 = vst [vmem:[#allocation122_spill] sm:$0xff] %v10843_v54 }
 0x542   : > { %v10845_v26 = vpop.f32.mrf.mxu1  ;;  %4526 = vmatmul.mubr.bf16.gmra.mxu1 %v7731_v46 }
 0x543   : > { %4533 = vmatprep.mubr.bf16.mxu1 %v7732_v28 }
 0x544   : > { %v10847_v2 = vpop.f32.mrf.mxu1 }
 0x546   : > { %v10849_v21 = vpop.f32.mrf.mxu1 }
 0x547   : > { %11917 = vst [vmem:[#allocation78_spill] sm:$0xff] %v10849_v21  ;;  %3956 = vmatmul.mubr.bf16.gmra.mxu0 %v7740_v63 }
 0x548   : > { %v10851_v5 = vpop.f32.mrf.mxu1  ;;  %7388 = vmatprep.mubr.bf16.mxu0 %v10532_v20 }
 0x54a   : > { %v10854_v8 = vpop.f32.mrf.mxu1  ;;  %4534 = vmatmul.mubr.bf16.gmra.mxu1 %v7734_v9 }
 0x54b   : > { %4541 = vmatprep.mubr.bf16.mxu1 %v7735_v35 }
 0x54c   : > { %v10856_v27 = vpop.f32.mrf.mxu1 }
 0x54e   : > { %v10858_v54 = vpop.f32.mrf.mxu1 }
 0x54f   : > { %11918 = vst [vmem:[#allocation124_spill] sm:$0xff] %v10858_v54  ;;  %v3773_v46 = vpop.f32.mrf.mxu0  ;;  %7389 = vmatmul.mubr.bf16.vlgmr.msra.gmra.mxu0 %v10548_v23 }
 0x550   : > { %7437 = vmatpush3.bf16.msra.mxu0 %v10700_v19  ;;  %v10862_v28 = vpop.f32.mrf.mxu1  ;;  %7392 = vmatprep.mubr.bf16.mxu0 %v10550_v49  ;;  %v7743_v49 = vld [vmem:[#allocation9 + $0x4] ss:$12 sps:$4 sm:$0xff]  }
 0x551   : > { %7438 = vmatprep.subr.bf16.mxu0 %v10706_v55  ;;  %v3775_v20 = vpop.f32.mrf.mxu0 }
 0x552   : > { %v10866_v21 = vpop.f32.mrf.mxu1  ;;  %4542 = vmatmul.mubr.bf16.gmra.mxu1 %v7737_v34 }
 0x553   : > { %11919 = vst [vmem:[#allocation79_spill] sm:$0xff] %v10866_v21  ;;  %v3776_v9 = vpop.f32.mrf.mxu0  ;;  %4549 = vmatprep.mubr.bf16.mxu1 %v7738_v62 }
 0x554   : > { %7439 = vmatpush3.bf16.msra.mxu0 %v10706_v55  ;;  %v10869_v35 = vpop.f32.mrf.mxu1 }
 0x555   : > { %7440 = vmatprep.subr.bf16.mxu0 %v10713_v32  ;;  %v3778_v23 = vpop.f32.mrf.mxu0 }
 0x556   : > { %v10872_v19 = vpop.f32.mrf.mxu1 }
 0x557   : > { %11920 = vst [vmem:[#allocation127_spill] sm:$0xff] %v10872_v19  ;;  %v3781_v54 = vpop.f32.mrf.mxu0  ;;  %7393 = vmatmul.mubr.bf16.gmra.mxu0 %v10566_v53  ;;  %v7741_v19 = vld [vmem:[#allocation9] ss:$12 sps:$4 sm:$0xff]  }
 0x558   : > { %7441 = vmatpush3.bf16.msra.mxu0 %v10713_v32  ;;  %v10876_v20 = vpop.f32.mrf.mxu1  ;;  %7396 = vmatprep.mubr.bf16.mxu0 %v10570_v56  ;;  %v7746_v56 = vld [vmem:[#allocation9 + $0x1c] ss:$12 sps:$4 sm:$0xff]  }
 0x559   : > { %7442 = vmatprep.subr.bf16.mxu0 %v10720_v60  ;;  %v3783_v55 = vpop.f32.mrf.mxu0 }
 0x55a   : > { %v10880_v62 = vpop.f32.mrf.mxu1  ;;  %4550 = vmatmul.mubr.bf16.gmra.mxu1 %v7740_v63 }
 0x55b   : > { %11921 = vst [vmem:[#allocation129_spill] sm:$0xff] %v10880_v62  ;;  %v3784_v34 = vpop.f32.mrf.mxu0  ;;  %5199 = vmatprep.mubr.bf16.mxu1 %v7743_v49 }
 0x55c   : > { %7443 = vmatpush3.bf16.msra.mxu0 %v10720_v60  ;;  %v10883_v23 = vpop.f32.mrf.mxu1  ;;  %v3999_v60 = vadd.f32 %v10782_v33, %v3773_v46 }
 0x55d   : > { %7444 = vmatprep.subr.bf16.mxu0 %v10725_v48  ;;  %v3786_v53 = vpop.f32.mrf.mxu0 }
 0x55e   : > { %v10886_v32 = vpop.f32.mrf.mxu1 }
 0x55f   : > { %11922 = vst [vmem:[#allocation147_spill] sm:$0xff] %v10886_v32  ;;  %v3789_v21 = vpop.f32.mrf.mxu0  ;;  %7397 = vmatmul.mubr.bf16.gmra.mxu0 %v10587_v57 }
 0x560   : > { %7445 = vmatpush3.bf16.msra.mxu0 %v10725_v48  ;;  %v10890_v55 = vpop.f32.mrf.mxu1  ;;  %7400 = vmatprep.mubr.bf16.mxu0 %v10590_v29  ;;  %v4002_v48 = vadd.f32 %v10786_v61, %v3776_v9 }
 0x561   : > { %11923 = vst [vmem:[#allocation133_spill] sm:$0xff] %v10890_v55  ;;  %7446 = vmatprep.subr.bf16.mxu0 %v10730_v30  ;;  %v3791_v63 = vpop.f32.mrf.mxu0  ;;  %v7744_v55 = vld [vmem:[#allocation9 + $0x18] ss:$12 sps:$4 sm:$0xff]  }
 0x562   : > { %v4367_v49 = vpop.f32.mrf.mxu1  ;;  %5200 = vmatmul.mubr.bf16.vlgmr.msra.gmra.mxu1 %v7741_v19  ;;  %v7749_v19 = vld [vmem:[#allocation9 + $0x34] ss:$12 sps:$4 sm:$0xff]   ;;  %v4010_v63 = vadd.f32 %v10784_v38, %v3784_v34 }
 0x563   : > { %v3792_v53 = vpop.f32.mrf.mxu0  ;;  %v10895_v32 = vadd.f32 %v4367_v49, %v3999_v60  ;;  %5207 = vmatprep.mubr.bf16.mxu1 %v7746_v56 }
 0x564   : > { %7447 = vmatpush3.bf16.msra.mxu0 %v10730_v30  ;;  %v4369_v57 = vpop.f32.mrf.mxu1  ;;  %v4007_v30 = vadd.f32 %v10780_v51, %v3781_v54  ;;  %v7752_v51 = vld [vmem:[#allocation9 + $0x4c] ss:$12 sps:$4 sm:$0xff]   ;;  %v4018_v34 = vadd.f32 %v10794_v47, %v3792_v53 }
 0x565   : > { %7448 = vmatprep.subr.bf16.mxu0 %v10735_v11  ;;  %v3794_v62 = vpop.f32.mrf.mxu0  ;;  %v7747_v57 = vld [vmem:[#allocation9 + $0x30] ss:$12 sps:$4 sm:$0xff]  }
 0x566   : > { %v4370_v29 = vpop.f32.mrf.mxu1 }
 0x567   : > { %v3797_v33 = vpop.f32.mrf.mxu0  ;;  %v10900_v46 = vadd.f32 %v4370_v29, %v4002_v48  ;;  %7401 = vmatmul.mubr.bf16.gmra.mxu0 %v10604_v18 }
 0x568   : > { %7449 = vmatpush3.bf16.msra.mxu0 %v10735_v11  ;;  %v4372_v60 = vpop.f32.mrf.mxu1  ;;  %7404 = vmatprep.mubr.bf16.mxu0 %v10607_v14 }
 0x569   : > { %7450 = vmatprep.subr.bf16.mxu0 %v10741_v25  ;;  %v3799_v61 = vpop.f32.mrf.mxu0 }
 0x56a   : > { %v4375_v9 = vpop.f32.mrf.mxu1  ;;  %5208 = vmatmul.mubr.bf16.gmra.mxu1 %v7744_v55  ;;  %v4015_v55 = vadd.f32 %v10790_v52, %v3789_v21  ;;  %v4023_v21 = vadd.f32 %v10788_v24, %v3797_v33 }
 0x56b   : > { %v3800_v62 = vpop.f32.mrf.mxu0  ;;  %v10907_v56 = vadd.f32 %v4375_v9, %v4007_v30  ;;  %5215 = vmatprep.mubr.bf16.mxu1 %v7749_v19  ;;  %v7750_v9 = vld [vmem:[#allocation9 + $0x48] ss:$12 sps:$4 sm:$0xff]  }
 0x56c   : > { %7451 = vmatpush3.bf16.msra.mxu0 %v10741_v25  ;;  %v4377_v18 = vpop.f32.mrf.mxu1  ;;  %v4026_v53 = vadd.f32 %v10792_v16, %v3800_v62 }
 0x56d   : > { %v3802_v11 = vpop.f32.mrf.mxu0 }
 0x56e   : > { %v4378_v49 = vpop.f32.mrf.mxu1 }
 0x56f   : > { %v3805_v14 = vpop.f32.mrf.mxu0  ;;  %v10911_v48 = vadd.f32 %v4378_v49, %v4010_v63  ;;  %7405 = vmatmul.mubr.bf16.gmra.mxu0 %v10620_v15 }
 0x570   : > { %v4380_v54 = vpop.f32.mrf.mxu1  ;;  %7408 = vmatprep.mubr.bf16.mxu0 %v10623_v50  ;;  %v7755_v50 = vld [vmem:[#allocation9 + $0x64] ss:$12 sps:$4 sm:$0xff]   ;;  %v4031_v33 = vadd.f32 %v10799_v1, %v3805_v14 }
 0x571   : > { %v3807_v29 = vpop.f32.mrf.mxu0 }
 0x572   : > { %v4383_v19 = vpop.f32.mrf.mxu1  ;;  %5216 = vmatmul.mubr.bf16.gmra.mxu1 %v7747_v57 }
 0x573   : > { %v3808_v25 = vpop.f32.mrf.mxu0  ;;  %v10916_v60 = vadd.f32 %v4383_v19, %v4015_v55  ;;  %5223 = vmatprep.mubr.bf16.mxu1 %v7752_v51  ;;  %v7753_v55 = vld [vmem:[#allocation9 + $0x60] ss:$12 sps:$4 sm:$0xff]  }
 0x574   : > { %v4385_v38 = vpop.f32.mrf.mxu1  ;;  %v4034_v62 = vadd.f32 %v10803_v37, %v3808_v25 }
 0x575   : > { %v3810_v30 = vpop.f32.mrf.mxu0 }
 0x576   : > { %v4386_v61 = vpop.f32.mrf.mxu1 }
 0x577   : > { %v3813_v15 = vpop.f32.mrf.mxu0  ;;  %v10919_v18 = vadd.f32 %v4386_v61, %v4018_v34  ;;  %7409 = vmatmul.mubr.bf16.gmra.mxu0 %v10636_v45 }
 0x578   : > { %v4388_v52 = vpop.f32.mrf.mxu1  ;;  %7412 = vmatprep.mubr.bf16.mxu0 %v10639_v3  ;;  %v7758_v3 = vld [vmem:[#allocation9 + $0x7c] ss:$12 sps:$4 sm:$0xff]   ;;  %v4039_v14 = vadd.f32 %v10796_v12, %v3813_v15 }
 0x579   : > { %v3815_v63 = vpop.f32.mrf.mxu0 }
 0x57a   : > { %v4391_v11 = vpop.f32.mrf.mxu1  ;;  %5224 = vmatmul.mubr.bf16.gmra.mxu1 %v7750_v9 }
 0x57b   : > { %v3816_v49 = vpop.f32.mrf.mxu0  ;;  %v10924_v57 = vadd.f32 %v4391_v11, %v4023_v21  ;;  %5231 = vmatprep.mubr.bf16.mxu1 %v7755_v50  ;;  %v7756_v50 = vld [vmem:[#allocation9 + $0x78] ss:$12 sps:$4 sm:$0xff]  }
 0x57c   : > { %v4393_v47 = vpop.f32.mrf.mxu1  ;;  %v4042_v25 = vadd.f32 %v10801_v42, %v3816_v49 }
 0x57d   : > { %v3818_v51 = vpop.f32.mrf.mxu0 }
 0x57e   : > { %v4394_v54 = vpop.f32.mrf.mxu1 }
 0x57f   : > { %v3821_v45 = vpop.f32.mrf.mxu0  ;;  %v10927_v29 = vadd.f32 %v4394_v54, %v4026_v53  ;;  %7413 = vmatmul.mubr.bf16.gmra.mxu0 %v10652_v17  ;;  %v7759_v54 = vld [vmem:[#allocation9 + $0x90] ss:$12 sps:$4 sm:$0xff]  }
 0x580   : > { %v4396_v24 = vpop.f32.mrf.mxu1  ;;  %7416 = vmatprep.mubr.bf16.mxu0 %v10655_v41  ;;  %v7761_v41 = vld [vmem:[#allocation9 + $0x94] ss:$12 sps:$4 sm:$0xff]   ;;  %v4047_v15 = vadd.f32 %v10807_v10, %v3821_v45 }
 0x581   : > { %v3823_v19 = vpop.f32.mrf.mxu0 }
 0x582   : > { %v4399_v38 = vpop.f32.mrf.mxu1  ;;  %5232 = vmatmul.mubr.bf16.gmra.mxu1 %v7753_v55 }
 0x583   : > { %v3824_v34 = vpop.f32.mrf.mxu0  ;;  %v10932_v30 = vadd.f32 %v4399_v38, %v4031_v33  ;;  %5239 = vmatprep.mubr.bf16.mxu1 %v7758_v3 }
 0x584   : > { %v4401_v16 = vpop.f32.mrf.mxu1  ;;  %v4050_v49 = vadd.f32 %v10811_v13, %v3824_v34 }
 0x585   : > { %v3826_v61 = vpop.f32.mrf.mxu0 }
 0x586   : > { %v4402_v9 = vpop.f32.mrf.mxu1 }
 0x587   : > { %v3829_v17 = vpop.f32.mrf.mxu0  ;;  %v10935_v52 = vadd.f32 %v4402_v9, %v4034_v62  ;;  %7417 = vmatmul.mubr.bf16.gmra.mxu0 %v10668_v7  ;;  %v7762_v62 = vld [vmem:[#allocation9 + $0xa8] ss:$12 sps:$4 sm:$0xff]  }
 0x588   : > { %v4404_v1 = vpop.f32.mrf.mxu1  ;;  %7420 = vmatprep.mubr.bf16.mxu0 %v10671_v43  ;;  %v7764_v43 = vld [vmem:[#allocation9 + $0xac] ss:$12 sps:$4 sm:$0xff]   ;;  %v4055_v45 = vadd.f32 %v10805_v59, %v3829_v17 }
 0x589   : > { %v3831_v21 = vpop.f32.mrf.mxu0 }
 0x58a   : > { %v4407_v63 = vpop.f32.mrf.mxu1  ;;  %5240 = vmatmul.mubr.bf16.gmra.mxu1 %v7756_v50 }
 0x58b   : > { %v3832_v11 = vpop.f32.mrf.mxu0  ;;  %v10940_v47 = vadd.f32 %v4407_v63, %v4039_v14  ;;  %5247 = vmatprep.mubr.bf16.mxu1 %v7761_v41  ;;  %v7765_v63 = vld [vmem:[#allocation9 + $0xc0] ss:$12 sps:$4 sm:$0xff]  }
 0x58c   : > { %v4409_v37 = vpop.f32.mrf.mxu1  ;;  %v4058_v34 = vadd.f32 %v10809_v58, %v3832_v11  ;;  %v7771_v11 = vld [vmem:[#allocation9 + $0x8] ss:$12 sps:$4 sm:$0xff]  }
 0x58d   : > { %v3834_v53 = vpop.f32.mrf.mxu0 }
 0x58e   : > { %v4410_v51 = vpop.f32.mrf.mxu1 }
 0x58f   : > { %v3837_v7 = vpop.f32.mrf.mxu0  ;;  %v10943_v55 = vadd.f32 %v4410_v51, %v4042_v25  ;;  %7421 = vmatmul.mubr.bf16.gmra.mxu0 %v10684_v44 }
 0x590   : > { %v4412_v12 = vpop.f32.mrf.mxu1  ;;  %7424 = vmatprep.mubr.bf16.mxu0 %v10687_v22  ;;  %v7767_v22 = vld [vmem:[#allocation9 + $0xc4] ss:$12 sps:$4 sm:$0xff]   ;;  %v4063_v17 = vadd.f32 %v10815_v40, %v3837_v7  ;;  %v7775_v40 = vld [vmem:[#allocation9 + $0xf4] ss:$12 sps:$4 sm:$0xff]  }
 0x591   : > { %v3839_v3 = vpop.f32.mrf.mxu0 }
 0x592   : > { %v4415_v24 = vpop.f32.mrf.mxu1  ;;  %5248 = vmatmul.mubr.bf16.gmra.mxu1 %v7759_v54 }
 0x593   : > { %v3840_v33 = vpop.f32.mrf.mxu0  ;;  %v10948_v19 = vadd.f32 %v4415_v24, %v4047_v15  ;;  %5255 = vmatprep.mubr.bf16.mxu1 %v7764_v43 }
 0x594   : > { %v4417_v42 = vpop.f32.mrf.mxu1  ;;  %v4066_v43 = vadd.f32 %v10819_v36, %v3840_v33  ;;  %v7772_v36 = vld [vmem:[#allocation9 + $0x20] ss:$12 sps:$4 sm:$0xff]  }
 0x595   : > { %v3842_v38 = vpop.f32.mrf.mxu0  ;;  %v11925_v42 = vld [vmem:[#allocation62_spill] sm:$0xff] }
 0x596   : > { %v4418_v16 = vpop.f32.mrf.mxu1 }
 0x597   : > { %v3845_v44 = vpop.f32.mrf.mxu0  ;;  %v10951_v61 = vadd.f32 %v4418_v16, %v4050_v49  ;;  %7425 = vmatmul.mubr.bf16.gmra.mxu0 %v10694_v4 }
 0x598   : > { %v4420_v10 = vpop.f32.mrf.mxu1  ;;  %7428 = vmatprep.mubr.bf16.mxu0 %v10696_v39  ;;  %v7770_v39 = vld [vmem:[#allocation9 + $0xdc] ss:$12 sps:$4 sm:$0xff]   ;;  %v4071_v49 = vadd.f32 %v11925_v42, %v3845_v44  ;;  %v7780_v44 = vld [vmem:[#allocation9 + $0x10c] ss:$12 sps:$4 sm:$0xff]  }
 0x599   : > { %v3847_v9 = vpop.f32.mrf.mxu0  ;;  %v7776_v10 = vld [vmem:[#allocation9 + $0x38] ss:$12 sps:$4 sm:$0xff]  }
 0x59a   : > { %v4423_v50 = vpop.f32.mrf.mxu1  ;;  %5256 = vmatmul.mubr.bf16.gmra.mxu1 %v7762_v62 }
 0x59b   : > { %v3848_v41 = vpop.f32.mrf.mxu0  ;;  %v10956_v1 = vadd.f32 %v4423_v50, %v4055_v45  ;;  %5263 = vmatprep.mubr.bf16.mxu1 %v7767_v22  ;;  %v11926_v45 = vld [vmem:[#allocation107_spill] sm:$0xff] }
 0x59c   : > { %v4425_v13 = vpop.f32.mrf.mxu1  ;;  %v4074_v9 = vadd.f32 %v11926_v45, %v3848_v41 }
 0x59d   : > { %v3850_v14 = vpop.f32.mrf.mxu0 }
 0x59e   : > { %v4426_v21 = vpop.f32.mrf.mxu1 }
 0x59f   : > { %v3853_v4 = vpop.f32.mrf.mxu0  ;;  %v10959_v37 = vadd.f32 %v4426_v21, %v4058_v34  ;;  %7429 = vmatmul.mubr.bf16.gmra.mxu0 %v10704_v6  ;;  %v7768_v6 = vld [vmem:[#allocation9 + $0xd8] ss:$12 sps:$4 sm:$0xff]   ;;  %v7773_v34 = vld [vmem:[#allocation9 + $0xf0] ss:$12 sps:$4 sm:$0xff]  }
 0x5a0   : > { %v4428_v59 = vpop.f32.mrf.mxu1  ;;  %7432 = vmatprep.mubr.bf16.mxu0 %v10708_v31  ;;  %v11924_v31 = vld [vmem:[#allocation60_spill] sm:$0xff] }
 0x5a1   : > { %v3855_v25 = vpop.f32.mrf.mxu0 }
 0x5a2   : > { %v4431_v53 = vpop.f32.mrf.mxu1  ;;  %5264 = vmatmul.mubr.bf16.gmra.mxu1 %v7765_v63 }
 0x5a3   : > { %v3856_v51 = vpop.f32.mrf.mxu0  ;;  %v10964_v54 = vadd.f32 %v4431_v53, %v4063_v17  ;;  %5271 = vmatprep.mubr.bf16.mxu1 %v7770_v39  ;;  %v11927_v39 = vld [vmem:[#allocation66_spill] sm:$0xff] }
 0x5a4   : > { %v4433_v58 = vpop.f32.mrf.mxu1  ;;  %v4079_v59 = vadd.f32 %v11927_v39, %v3853_v4  ;;  %v7785_v4 = vld [vmem:[#allocation9 + $0x124] ss:$12 sps:$4 sm:$0xff]   ;;  %v7783_v39 = vld [vmem:[#allocation9 + $0x120] ss:$12 sps:$4 sm:$0xff]  }
 0x5a5   : > { %v3858_v12 = vpop.f32.mrf.mxu0 }
 0x5a6   : > { %v4434_v15 = vpop.f32.mrf.mxu1  ;;  %v11928_v12 = vld [vmem:[#allocation112_spill] sm:$0xff] }
 0x5a7   : > { %v3861_v3 = vpop.f32.mrf.mxu0  ;;  %v10967_v24 = vadd.f32 %v4434_v15, %v4066_v43  ;;  %7433 = vmatmul.mubr.bf16.gmra.mxu0 %v11924_v31  ;;  %v7781_v43 = vld [vmem:[#allocation9 + $0x68] ss:$12 sps:$4 sm:$0xff]   ;;  %v4082_v15 = vadd.f32 %v11928_v12, %v3856_v51 }
 0x5a8   : > { %v4436_v7 = vpop.f32.mrf.mxu1  ;;  %7452 = vmatprep.mubr.bf16.mxu0 %v7771_v11  ;;  %v7777_v11 = vld [vmem:[#allocation9 + $0x50] ss:$12 sps:$4 sm:$0xff]  }
 0x5a9   : > { %v3863_v38 = vpop.f32.mrf.mxu0 }
 0x5aa   : > { %v4439_v16 = vpop.f32.mrf.mxu1  ;;  %5272 = vmatmul.mubr.bf16.gmra.mxu1 %v7768_v6  ;;  %v11929_v38 = vld [vmem:[#allocation64_spill] sm:$0xff] }
 0x5ab   : > { %v3864_v62 = vpop.f32.mrf.mxu0  ;;  %v10971_v22 = vadd.f32 %v4439_v16, %v4071_v49  ;;  %5279 = vmatprep.mubr.bf16.mxu1 %v7775_v40  ;;  %v7778_v40 = vld [vmem:[#allocation9 + $0x108] ss:$12 sps:$4 sm:$0xff]   ;;  %v4087_v16 = vadd.f32 %v11929_v38, %v3861_v3 }
 0x5ac   : > { %v4441_v33 = vpop.f32.mrf.mxu1  ;;  %v7790_v3 = vld [vmem:[#allocation9 + $0x13c] ss:$12 sps:$4 sm:$0xff]  }
 0x5ad   : > { %v3866_v50 = vpop.f32.mrf.mxu0 }
 0x5ae   : > { %v4442_v13 = vpop.f32.mrf.mxu1  ;;  %v7786_v50 = vld [vmem:[#allocation9 + $0x98] ss:$12 sps:$4 sm:$0xff]  }
 0x5af   : > { %v3869_v14 = vpop.f32.mrf.mxu0  ;;  %v10974_v21 = vadd.f32 %v4442_v13, %v4074_v9  ;;  %7453 = vmatmul.mubr.bf16.vlgmr.msra.gmra.mxu0 %v7772_v36  ;;  %v7782_v9 = vld [vmem:[#allocation9 + $0x80] ss:$12 sps:$4 sm:$0xff]   ;;  %v11930_v13 = vld [vmem:[#allocation109_spill] sm:$0xff] }
 0x5b0   : > { %v4444_v63 = vpop.f32.mrf.mxu1  ;;  %7456 = vmatprep.mubr.bf16.mxu0 %v7776_v10 }
 0x5b1   : > { %v3871_v17 = vpop.f32.mrf.mxu0 }
 0x5b2   : > { %v4447_v25 = vpop.f32.mrf.mxu1  ;;  %5280 = vmatmul.mubr.bf16.gmra.mxu1 %v7773_v34  ;;  %v4090_v34 = vadd.f32 %v11930_v13, %v3864_v62 }
 0x5b3   : > { %v3872_v53 = vpop.f32.mrf.mxu0  ;;  %v10977_v58 = vadd.f32 %v4447_v25, %v4079_v59  ;;  %5287 = vmatprep.mubr.bf16.mxu1 %v7780_v44 }
 0x5b4   : > { %v4449_v41 = vpop.f32.mrf.mxu1 }
 0x5b5   : > { %v3874_v6 = vpop.f32.mrf.mxu0 }
 0x5b6   : > { %v4450_v31 = vpop.f32.mrf.mxu1 }
 0x5b7   : > { %v3877_v7 = vpop.f32.mrf.mxu0  ;;  %v10980_v42 = vadd.f32 %v4450_v31, %v4082_v15  ;;  %7457 = vmatmul.mubr.bf16.gmra.mxu0 %v7777_v11  ;;  %v11931_v11 = vld [vmem:[#allocation128_spill] sm:$0xff] }
 0x5b8   : > { %v4452_v49 = vpop.f32.mrf.mxu1  ;;  %7460 = vmatprep.mubr.bf16.mxu0 %v7781_v43  ;;  %v4095_v41 = vadd.f32 %v11931_v11, %v3869_v14  ;;  %v7787_v31 = vld [vmem:[#allocation9 + $0xb0] ss:$12 sps:$4 sm:$0xff]   ;;  %v7795_v14 = vld [vmem:[#allocation9 + $0x154] ss:$12 sps:$4 sm:$0xff]  }
 0x5b9   : > { %v3879_v36 = vpop.f32.mrf.mxu0  ;;  %v11934_v11 = vld [vmem:[#allocation116_spill] sm:$0xff] }
 0x5ba   : > { %v4455_v33 = vpop.f32.mrf.mxu1  ;;  %5288 = vmatmul.mubr.bf16.gmra.mxu1 %v7778_v40  ;;  %v7791_v40 = vld [vmem:[#allocation9 + $0xc8] ss:$12 sps:$4 sm:$0xff]   ;;  %v7788_v36 = vld [vmem:[#allocation9 + $0x138] ss:$12 sps:$4 sm:$0xff]  }
 0x5bb   : > { %v3880_v10 = vpop.f32.mrf.mxu0  ;;  %v10983_v45 = vadd.f32 %v4455_v33, %v4087_v16  ;;  %5295 = vmatprep.mubr.bf16.mxu1 %v7785_v4  ;;  %v11932_v4 = vld [vmem:[#allocation130_spill] sm:$0xff] }
 0x5bc   : > { %v4457_v51 = vpop.f32.mrf.mxu1  ;;  %v4098_v49 = vadd.f32 %v11932_v4, %v3872_v53 }
 0x5bd   : > { %v3882_v44 = vpop.f32.mrf.mxu0 }
 0x5be   : > { %v4458_v63 = vpop.f32.mrf.mxu1 }
 0x5bf   : > { %v3885_v59 = vpop.f32.mrf.mxu0  ;;  %v10986_v17 = vadd.f32 %v4458_v63, %v4090_v34  ;;  %7461 = vmatmul.mubr.bf16.gmra.mxu0 %v7782_v9 }
 0x5c0   : > { %v4460_v25 = vpop.f32.mrf.mxu1  ;;  %7464 = vmatprep.mubr.bf16.mxu0 %v7786_v50  ;;  %v11933_v50 = vld [vmem:[#allocation114_spill] sm:$0xff] }
 0x5c1   : > { %v3887_v43 = vpop.f32.mrf.mxu0  ;;  %v4103_v13 = vadd.f32 %v11933_v50, %v3877_v7  ;;  %v7796_v25 = vld [vmem:[#allocation9 + $0xf8] ss:$12 sps:$4 sm:$0xff]   ;;  %v7801_v50 = vld [vmem:[#allocation9 + $0x128] ss:$12 sps:$4 sm:$0xff]  }
 0x5c2   : > { %v4463_v12 = vpop.f32.mrf.mxu1  ;;  %5296 = vmatmul.mubr.bf16.gmra.mxu1 %v7783_v39  ;;  %v7800_v7 = vld [vmem:[#allocation9 + $0x16c] ss:$12 sps:$4 sm:$0xff]  }
 0x5c3   : > { %v3888_v15 = vpop.f32.mrf.mxu0  ;;  %v10989_v6 = vadd.f32 %v4463_v12, %v4095_v41  ;;  %5303 = vmatprep.mubr.bf16.mxu1 %v7790_v3  ;;  %v7792_v3 = vld [vmem:[#allocation9 + $0xe0] ss:$12 sps:$4 sm:$0xff]   ;;  %v4106_v41 = vadd.f32 %v11934_v11, %v3880_v10 }
 0x5c4   : > { %v4465_v62 = vpop.f32.mrf.mxu1 }
 0x5c5   : > { %v3890_v38 = vpop.f32.mrf.mxu0 }
 0x5c6   : > { %v4466_v16 = vpop.f32.mrf.mxu1 }
 0x5c7   : > { %v3893_v33 = vpop.f32.mrf.mxu0  ;;  %v10992_v9 = vadd.f32 %v4466_v16, %v4098_v49  ;;  %7465 = vmatmul.mubr.bf16.gmra.mxu0 %v7787_v31  ;;  %v7793_v31 = vld [vmem:[#allocation9 + $0x150] ss:$12 sps:$4 sm:$0xff]   ;;  %v4111_v49 = vadd.f32 %v10839_v0, %v3885_v59 }
 0x5c8   : > { %v4468_v51 = vpop.f32.mrf.mxu1  ;;  %7468 = vmatprep.mubr.bf16.mxu0 %v7791_v40  ;;  %v7805_v0 = vld [vmem:[#allocation9 + $0x184] ss:$12 sps:$4 sm:$0xff]  }
 0x5c9   : > { %v3895_v34 = vpop.f32.mrf.mxu0  ;;  %v7797_v51 = vld [vmem:[#allocation9 + $0x110] ss:$12 sps:$4 sm:$0xff]  }
 0x5ca   : > { %v4471_v44 = vpop.f32.mrf.mxu1  ;;  %5304 = vmatmul.mubr.bf16.gmra.mxu1 %v7788_v36 }
 0x5cb   : > { %v3896_v63 = vpop.f32.mrf.mxu0  ;;  %v10995_v39 = vadd.f32 %v4471_v44, %v4103_v13  ;;  %5311 = vmatprep.mubr.bf16.mxu1 %v7795_v14  ;;  %v11935_v13 = vld [vmem:[#allocation122_spill] sm:$0xff] }
 0x5cc   : > { %v4473_v53 = vpop.f32.mrf.mxu1  ;;  %v4114_v34 = vadd.f32 %v11935_v13, %v3888_v15 }
 0x5cd   : > { %v3898_v43 = vpop.f32.mrf.mxu0 }
 0x5ce   : > { %v4474_v12 = vpop.f32.mrf.mxu1 }
 0x5cf   : > { %v3901_v62 = vpop.f32.mrf.mxu0  ;;  %v10998_v4 = vadd.f32 %v4474_v12, %v4106_v41  ;;  %7469 = vmatmul.mubr.bf16.gmra.mxu0 %v7792_v3  ;;  %v7798_v3 = vld [vmem:[#allocation9 + $0x168] ss:$12 sps:$4 sm:$0xff]  }
 0x5d0   : > { %v4476_v40 = vpop.f32.mrf.mxu1  ;;  %7472 = vmatprep.mubr.bf16.mxu0 %v7796_v25  ;;  %v11936_v25 = vld [vmem:[#allocation70_spill] sm:$0xff] }
 0x5d1   : > { %v3903_v38 = vpop.f32.mrf.mxu0  ;;  %v4119_v43 = vadd.f32 %v11936_v25, %v3893_v33  ;;  %v7810_v33 = vld [vmem:[#allocation9 + $0x19c] ss:$12 sps:$4 sm:$0xff]  }
 0x5d2   : > { %v4479_v16 = vpop.f32.mrf.mxu1  ;;  %5312 = vmatmul.mubr.bf16.gmra.mxu1 %v7793_v31  ;;  %v7806_v38 = vld [vmem:[#allocation9 + $0x158] ss:$12 sps:$4 sm:$0xff]  }
 0x5d3   : > { %v3904_v36 = vpop.f32.mrf.mxu0  ;;  %v11001_v14 = vadd.f32 %v4479_v16, %v4111_v49  ;;  %5319 = vmatprep.mubr.bf16.mxu1 %v7800_v7  ;;  %v7802_v49 = vld [vmem:[#allocation9 + $0x140] ss:$12 sps:$4 sm:$0xff]  }
 0x5d4   : > { %v4481_v10 = vpop.f32.mrf.mxu1  ;;  %v11937_v16 = vld [vmem:[#allocation119_spill] sm:$0xff] }
 0x5d5   : > { %v3906_v44 = vpop.f32.mrf.mxu0  ;;  %v4122_v10 = vadd.f32 %v11937_v16, %v3896_v63 }
 0x5d6   : > { %v4482_v53 = vpop.f32.mrf.mxu1 }
 0x5d7   : > { %v3909_v11 = vpop.f32.mrf.mxu0  ;;  %v11004_v41 = vadd.f32 %v4482_v53, %v4114_v34  ;;  %7473 = vmatmul.mubr.bf16.gmra.mxu0 %v7797_v51  ;;  %v7803_v51 = vld [vmem:[#allocation9 + $0x180] ss:$12 sps:$4 sm:$0xff]  }
 0x5d8   : > { %v4484_v59 = vpop.f32.mrf.mxu1  ;;  %7476 = vmatprep.mubr.bf16.mxu0 %v7801_v50 }
 0x5d9   : > { %v3911_v12 = vpop.f32.mrf.mxu0 }
 0x5da   : > { %v4487_v31 = vpop.f32.mrf.mxu1  ;;  %5320 = vmatmul.mubr.bf16.gmra.mxu1 %v7798_v3  ;;  %v4127_v3 = vadd.f32 %v10847_v2, %v3901_v62  ;;  %v7807_v12 = vld [vmem:[#allocation9 + $0x170] ss:$12 sps:$4 sm:$0xff]   ;;  %v7815_v2 = vld [vmem:[#allocation9 + $0x1b4] ss:$12 sps:$4 sm:$0xff]  }
 0x5db   : > { %v3912_v7 = vpop.f32.mrf.mxu0  ;;  %v11007_v40 = vadd.f32 %v4487_v31, %v4119_v43  ;;  %5327 = vmatprep.mubr.bf16.mxu1 %v7805_v0  ;;  %v7811_v31 = vld [vmem:[#allocation9 + $0x188] ss:$12 sps:$4 sm:$0xff]  }
 0x5dc   : > { %v4489_v15 = vpop.f32.mrf.mxu1 }
 0x5dd   : > { %v3914_v13 = vpop.f32.mrf.mxu0  ;;  %v4130_v15 = vadd.f32 %v10851_v5, %v3904_v36  ;;  %v7816_v36 = vld [vmem:[#allocation9 + $0x1b8] ss:$12 sps:$4 sm:$0xff]  }
 0x5de   : > { %v4490_v34 = vpop.f32.mrf.mxu1 }
 0x5df   : > { %v3917_v44 = vpop.f32.mrf.mxu0  ;;  %v11010_v53 = vadd.f32 %v4490_v34, %v4122_v10  ;;  %7477 = vmatmul.mubr.bf16.gmra.mxu0 %v7802_v49  ;;  %v7808_v49 = vld [vmem:[#allocation9 + $0x198] ss:$12 sps:$4 sm:$0xff]  }
 0x5e0   : > { %v4492_v50 = vpop.f32.mrf.mxu1  ;;  %7480 = vmatprep.mubr.bf16.mxu0 %v7806_v38  ;;  %v4135_v38 = vadd.f32 %v10845_v26, %v3909_v11  ;;  %v7820_v26 = vld [vmem:[#allocation9 + $0x1cc] ss:$12 sps:$4 sm:$0xff]  }
 0x5e1   : > { %v3919_v59 = vpop.f32.mrf.mxu0 }
 0x5e2   : > { %v4495_v25 = vpop.f32.mrf.mxu1  ;;  %5328 = vmatmul.mubr.bf16.gmra.mxu1 %v7803_v51  ;;  %v7812_v59 = vld [vmem:[#allocation9 + $0x1a0] ss:$12 sps:$4 sm:$0xff]  }
 0x5e3   : > { %v3920_v0 = vpop.f32.mrf.mxu0  ;;  %v11013_v43 = vadd.f32 %v4495_v25, %v4127_v3  ;;  %5335 = vmatprep.mubr.bf16.mxu1 %v7810_v33  ;;  %v11938_v25 = vld [vmem:[#allocation78_spill] sm:$0xff] }
 0x5e4   : > { %v4497_v63 = vpop.f32.mrf.mxu1 }
 0x5e5   : > { %v3922_v16 = vpop.f32.mrf.mxu0  ;;  %v4138_v63 = vadd.f32 %v11938_v25, %v3912_v7  ;;  %v4146_v25 = vadd.f32 %v10862_v28, %v3920_v0  ;;  %v7829_v0 = vld [vmem:[#allocation9 + $0x218] ss:$12 sps:$4 sm:$0xff]  }
 0x5e6   : > { %v4498_v10 = vpop.f32.mrf.mxu1 }
 0x5e7   : > { %v3925_v13 = vpop.f32.mrf.mxu0  ;;  %v11016_v34 = vadd.f32 %v4498_v10, %v4130_v15  ;;  %7481 = vmatmul.mubr.bf16.gmra.mxu0 %v7807_v12  ;;  %v7813_v12 = vld [vmem:[#allocation9 + $0x1b0] ss:$12 sps:$4 sm:$0xff]  }
 0x5e8   : > { %v4500_v62 = vpop.f32.mrf.mxu1  ;;  %7484 = vmatprep.mubr.bf16.mxu0 %v7811_v31  ;;  %v4143_v31 = vadd.f32 %v10856_v27, %v3917_v44  ;;  %v7825_v27 = vld [vmem:[#allocation9 + $0x1e4] ss:$12 sps:$4 sm:$0xff]  }
 0x5e9   : > { %v3927_v51 = vpop.f32.mrf.mxu0 }
 0x5ea   : > { %v4503_v50 = vpop.f32.mrf.mxu1  ;;  %5336 = vmatmul.mubr.bf16.gmra.mxu1 %v7808_v49 }
 0x5eb   : > { %v3928_v33 = vpop.f32.mrf.mxu0  ;;  %v11019_v3 = vadd.f32 %v4503_v50, %v4135_v38  ;;  %5343 = vmatprep.mubr.bf16.mxu1 %v7815_v2  ;;  %v7817_v50 = vld [vmem:[#allocation9 + $0x1d0] ss:$12 sps:$4 sm:$0xff]  }
 0x5ec   : > { %v4505_v5 = vpop.f32.mrf.mxu1 }
 0x5ed   : > { %v3930_v15 = vpop.f32.mrf.mxu0  ;;  %v7821_v5 = vld [vmem:[#allocation9 + $0x1e8] ss:$12 sps:$4 sm:$0xff]  }
 0x5ee   : > { %v4506_v16 = vpop.f32.mrf.mxu1 }
 0x5ef   : > { %v3933_v10 = vpop.f32.mrf.mxu0  ;;  %v11022_v62 = vadd.f32 %v4506_v16, %v4138_v63  ;;  %7485 = vmatmul.mubr.bf16.gmra.mxu0 %v7812_v59  ;;  %v7818_v59 = vld [vmem:[#allocation9 + $0x1c8] ss:$12 sps:$4 sm:$0xff]  }
 0x5f0   : > { %v4508_v11 = vpop.f32.mrf.mxu1  ;;  %7488 = vmatprep.mubr.bf16.mxu0 %v7816_v36  ;;  %v4151_v36 = vadd.f32 %v10854_v8, %v3925_v13  ;;  %v7828_v8 = vld [vmem:[#allocation9 + $0x1fc] ss:$12 sps:$4 sm:$0xff]  }
 0x5f1   : > { %v3935_v49 = vpop.f32.mrf.mxu0 }
 0x5f2   : > { %v4511_v38 = vpop.f32.mrf.mxu1  ;;  %5344 = vmatmul.mubr.bf16.gmra.mxu1 %v7813_v12 }
 0x5f3   : > { %v3936_v2 = vpop.f32.mrf.mxu0  ;;  %v11025_v51 = vadd.f32 %v4511_v38, %v4143_v31  ;;  %5351 = vmatprep.mubr.bf16.mxu1 %v7820_v26  ;;  %v7822_v38 = vld [vmem:[#allocation9 + $0x200] ss:$12 sps:$4 sm:$0xff]  }
 0x5f4   : > { %v4513_v7 = vpop.f32.mrf.mxu1 }
 0x5f5   : > { %v3938_v63 = vpop.f32.mrf.mxu0  ;;  %v11940_v7 = vld [vmem:[#allocation124_spill] sm:$0xff] }
 0x5f6   : > { %v4514_v15 = vpop.f32.mrf.mxu1  ;;  %v4154_v63 = vadd.f32 %v11940_v7, %v3928_v33  ;;  %v7830_v33 = vld [vmem:[#allocation9 + $0x230] ss:$12 sps:$4 sm:$0xff]  }
 0x5f7   : > { %v3941_v16 = vpop.f32.mrf.mxu0  ;;  %v11028_v11 = vadd.f32 %v4514_v15, %v4146_v25  ;;  %7489 = vmatmul.mubr.bf16.gmra.mxu0 %v7817_v50  ;;  %v7823_v50 = vld [vmem:[#allocation9 + $0x1e0] ss:$12 sps:$4 sm:$0xff]  }
 0x5f8   : > { %v4516_v44 = vpop.f32.mrf.mxu1  ;;  %7492 = vmatprep.mubr.bf16.mxu0 %v7821_v5  ;;  %v4159_v5 = vadd.f32 %v10869_v35, %v3933_v10  ;;  %v11942_v10 = vld [vmem:[#allocation79_spill] sm:$0xff] }
 0x5f9   : > { %11939 = vst [vmem:[#allocation132_spill] sm:$0xff] %v11028_v11  ;;  %v3943_v12 = vpop.f32.mrf.mxu0 }
 0x5fa   : > { %v4519_v31 = vpop.f32.mrf.mxu1  ;;  %5352 = vmatmul.mubr.bf16.gmra.mxu1 %v7818_v59 }
 0x5fb   : > { %v3944_v26 = vpop.f32.mrf.mxu0  ;;  %v11031_v49 = vadd.f32 %v4519_v31, %v4151_v36  ;;  %5359 = vmatprep.mubr.bf16.mxu1 %v7825_v27 }
 0x5fc   : > { %v4521_v28 = vpop.f32.mrf.mxu1 }
 0x5fd   : > { %v3946_v25 = vpop.f32.mrf.mxu0  ;;  %v4162_v28 = vadd.f32 %v10876_v20, %v3936_v2  ;;  %v11943_v20 = vld [vmem:[#allocation127_spill] sm:$0xff] }
 0x5fe   : > { %v4522_v15 = vpop.f32.mrf.mxu1  ;;  %v7826_v25 = vld [vmem:[#allocation9 + $0x1f8] ss:$12 sps:$4 sm:$0xff]   ;;  %v4170_v2 = vadd.f32 %v11943_v20, %v3944_v26 }
 0x5ff   : > { %v3949_v11 = vpop.f32.mrf.mxu0  ;;  %v11034_v44 = vadd.f32 %v4522_v15, %v4154_v63  ;;  %7493 = vmatmul.mubr.bf16.gmra.mxu0 %v7822_v38  ;;  %v11944_v20 = vld [vmem:[#allocation133_spill] sm:$0xff] }
 0x600   : > { %v4524_v13 = vpop.f32.mrf.mxu1  ;;  %7496 = vmatprep.mubr.bf16.mxu0 %v7829_v0  ;;  %v7833_v0 = vld [vmem:[#allocation9 + $0x214] ss:$12 sps:$4 sm:$0xff]  }
 0x601   : > { %v3951_v59 = vpop.f32.mrf.mxu0  ;;  %v4167_v13 = vadd.f32 %v11942_v10, %v3941_v16 }
 0x602   : > { %v4527_v36 = vpop.f32.mrf.mxu1  ;;  %5360 = vmatmul.mubr.bf16.gmra.mxu1 %v7823_v50 }
 0x603   : > { %v3952_v27 = vpop.f32.mrf.mxu0  ;;  %v11037_v12 = vadd.f32 %v4527_v36, %v4159_v5  ;;  %5367 = vmatprep.mubr.bf16.mxu1 %v7828_v8 }
 0x604   : > { %v4529_v31 = vpop.f32.mrf.mxu1 }
 0x605   : > { %11941 = vst [vmem:[#allocation149_spill] sm:$0xff] %v11037_v12  ;;  %v3954_v7 = vpop.f32.mrf.mxu0  ;;  %v7831_v12 = vld [vmem:[#allocation9 + $0x210] ss:$12 sps:$4 sm:$0xff]  }
 0x606   : > { %v4530_v63 = vpop.f32.mrf.mxu1 }
 0x607   : > { %v3957_v38 = vpop.f32.mrf.mxu0  ;;  %v11040_v15 = vadd.f32 %v4530_v63, %v4162_v28  ;;  %7497 = vmatmul.mubr.bf16.gmra.mxu0 %v7830_v33  ;;  %v7836_v63 = vld [vmem:[#allocation9 + $0x22c] ss:$12 sps:$4 sm:$0xff]  }
 0x608   : > { %v4532_v35 = vpop.f32.mrf.mxu1 }
 0x609   : > { %v3959_v50 = vpop.f32.mrf.mxu0 }
 0x60a   : > { %v4535_v59 = vpop.f32.mrf.mxu1  ;;  %5368 = vmatmul.mubr.bf16.gmra.mxu1 %v7826_v25  ;;  %v4175_v25 = vadd.f32 %v10883_v23, %v3949_v11  ;;  %v7834_v11 = vld [vmem:[#allocation9 + $0x228] ss:$12 sps:$4 sm:$0xff]  }
 0x60b   : > { %v3960_v5 = vpop.f32.mrf.mxu0  ;;  %v11043_v8 = vadd.f32 %v4535_v59, %v4167_v13  ;;  %5375 = vmatprep.mubr.bf16.mxu1 %v7833_v0 }
 0x60c   : > { %v4537_v36 = vpop.f32.mrf.mxu1 }
 0x60d   : > { %v3962_v31 = vpop.f32.mrf.mxu0 }
 0x60e   : > { %v4538_v7 = vpop.f32.mrf.mxu1 }
 0x60f   : > { %v11046_v28 = vadd.f32 %v4538_v7, %v4170_v2  ;;  %v7390_v33 = vpop.f32.mrf.mxu0 }
 0x610   : > { %v11049_v35 = vadd.f32 %v7390_v33, %v10907_v56  ;;  %v4540_v16 = vpop.f32.mrf.mxu1  ;;  %v4178_v56 = vadd.f32 %v11944_v20, %v3952_v27 }
 0x611   : > { %v4592_v10 = vpop.f32.mrf.mxu0 }
 0x612   : > { %v11053_v13 = vadd.f32 %v4592_v10, %v10895_v32  ;;  %v4543_v0 = vpop.f32.mrf.mxu1  ;;  %5376 = vmatmul.mubr.bf16.gmra.mxu1 %v7831_v12 }
 0x613   : > { %v11055_v26 = vadd.f32 %v4543_v0, %v4175_v25  ;;  %v7391_v50 = vpop.f32.mrf.mxu0  ;;  %5383 = vmatprep.mubr.bf16.mxu1 %v7836_v63  ;;  %v11945_v63 = vld [vmem:[#allocation129_spill] sm:$0xff] }
 0x614   : > { %v11058_v59 = vadd.f32 %v7391_v50, %v10911_v48  ;;  %v4545_v36 = vpop.f32.mrf.mxu1  ;;  %v4183_v16 = vadd.f32 %v11945_v63, %v3957_v38 }
 0x615   : > { %v4595_v2 = vpop.f32.mrf.mxu0  ;;  %v11946_v36 = vld [vmem:[#allocation147_spill] sm:$0xff] }
 0x616   : > { %v11062_v31 = vadd.f32 %v4595_v2, %v10900_v46  ;;  %v4546_v23 = vpop.f32.mrf.mxu1  ;;  %v4186_v20 = vadd.f32 %v11946_v36, %v3960_v5 }
 0x617   : > { %v11064_v32 = vadd.f32 %v4546_v23, %v4178_v56  ;;  %v7394_v7 = vpop.f32.mrf.mxu0 }
 0x618   : > { %v11067_v12 = vadd.f32 %v7394_v7, %v10924_v57  ;;  %v4548_v33 = vpop.f32.mrf.mxu1 }
 0x619   : > { %v4608_v48 = vpop.f32.mrf.mxu0 }
 0x61a   : > { %v11071_v25 = vadd.f32 %v4608_v48, %v10916_v60  ;;  %v4551_v27 = vpop.f32.mrf.mxu1  ;;  %5384 = vmatmul.mubr.bf16.gmra.mxu1 %v7834_v11 }
 0x61b   : > { %v11073_v10 = vadd.f32 %v4551_v27, %v4183_v16  ;;  %v7395_v46 = vpop.f32.mrf.mxu0 }
 0x61c   : > { %v11076_v0 = vadd.f32 %v7395_v46, %v10927_v29  ;;  %v4553_v50 = vpop.f32.mrf.mxu1 }
 0x61d   : > { %v4611_v57 = vpop.f32.mrf.mxu0 }
 0x61e   : > { %v11080_v56 = vadd.f32 %v4611_v57, %v10919_v18  ;;  %v4554_v38 = vpop.f32.mrf.mxu1 }
 0x61f   : > { %v11082_v2 = vadd.f32 %v4554_v38, %v4186_v20  ;;  %v7398_v60 = vpop.f32.mrf.mxu0 }
 0x620   : > { %v11085_v23 = vadd.f32 %v7398_v60, %v10940_v47  ;;  %v4556_v11 = vpop.f32.mrf.mxu1 }
 0x621   : > { %v4624_v7 = vpop.f32.mrf.mxu0 }
 0x622   : > { %v11088_v33 = vadd.f32 %v4624_v7, %v10932_v30  ;;  %v11090_v29 = vpop.f32.mrf.mxu1 }
 0x623   : > { %v7399_v63 = vpop.f32.mrf.mxu0 }
 0x624   : > { %v11093_v5 = vadd.f32 %v7399_v63, %v10943_v55  ;;  %v5203_v18 = vpop.f32.mrf.mxu1 }
 0x625   : > { %v4627_v16 = vpop.f32.mrf.mxu0 }
 0x626   : > { %v11096_v48 = vadd.f32 %v4627_v16, %v10935_v52  ;;  %v11098_v27 = vpop.f32.mrf.mxu1 }
 0x627   : > { %v7402_v47 = vpop.f32.mrf.mxu0 }
 0x628   : > { %v11101_v46 = vadd.f32 %v7402_v47, %v10956_v1  ;;  %v5206_v50 = vpop.f32.mrf.mxu1 }
 0x629   : > { %v4640_v30 = vpop.f32.mrf.mxu0 }
 0x62a   : > { %v11104_v36 = vadd.f32 %v4640_v30, %v10948_v19  ;;  %v11106_v20 = vpop.f32.mrf.mxu1 }
 0x62b   : > { %v7403_v55 = vpop.f32.mrf.mxu0 }
 0x62c   : > { %v11109_v57 = vadd.f32 %v7403_v55, %v10959_v37  ;;  %v5211_v38 = vpop.f32.mrf.mxu1 }
 0x62d   : > { %v4643_v52 = vpop.f32.mrf.mxu0 }
 0x62e   : > { %v11112_v60 = vadd.f32 %v4643_v52, %v10951_v61  ;;  %v11114_v11 = vpop.f32.mrf.mxu1 }
 0x62f   : > { %v7406_v1 = vpop.f32.mrf.mxu0 }
 0x630   : > { %v11117_v7 = vadd.f32 %v7406_v1, %v10971_v22  ;;  %v5214_v63 = vpop.f32.mrf.mxu1 }
 0x631   : > { %v4656_v19 = vpop.f32.mrf.mxu0 }
 0x632   : > { %v11120_v18 = vadd.f32 %v4656_v19, %v10964_v54  ;;  %v11122_v16 = vpop.f32.mrf.mxu1 }
 0x633   : > { %v7407_v37 = vpop.f32.mrf.mxu0 }
 0x634   : > { %v11125_v47 = vadd.f32 %v7407_v37, %v10974_v21  ;;  %v5219_v50 = vpop.f32.mrf.mxu1 }
 0x635   : > { %v4659_v61 = vpop.f32.mrf.mxu0 }
 0x636   : > { %v11128_v30 = vadd.f32 %v4659_v61, %v10967_v24  ;;  %v11130_v55 = vpop.f32.mrf.mxu1 }
 0x637   : > { %v7410_v22 = vpop.f32.mrf.mxu0 }
 0x638   : > { %v11133_v38 = vadd.f32 %v7410_v22, %v10983_v45  ;;  %v5222_v52 = vpop.f32.mrf.mxu1 }
 0x639   : > { %v4672_v54 = vpop.f32.mrf.mxu0 }
 0x63a   : > { %11947 = vst [vmem:[#allocation68_spill] sm:$0xff] %v11133_v38  ;;  %v11136_v1 = vadd.f32 %v4672_v54, %v10977_v58  ;;  %v11138_v63 = vpop.f32.mrf.mxu1 }
 0x63b   : > { %v7411_v21 = vpop.f32.mrf.mxu0 }
 0x63c   : > { %11948 = vst [vmem:[#allocation72_spill] sm:$0xff] %v11136_v1  ;;  %v11141_v19 = vadd.f32 %v7411_v21, %v10986_v17  ;;  %v5227_v37 = vpop.f32.mrf.mxu1  ;;  %v7014_v1 = vld [vmem:[#allocation2 + $0x10] sm:$0xff]  }
 0x63d   : > { %v4675_v24 = vpop.f32.mrf.mxu0 }
 0x63e   : > { %11949 = vst [vmem:[#allocation81_spill] sm:$0xff] %v11141_v19  ;;  %v11144_v50 = vadd.f32 %v4675_v24, %v10980_v42  ;;  %v11146_v61 = vpop.f32.mrf.mxu1 }
 0x63f   : > { %v7414_v45 = vpop.f32.mrf.mxu0 }
 0x640   : > { %11950 = vst [vmem:[#allocation76_spill] sm:$0xff] %v11144_v50  ;;  %v11149_v22 = vadd.f32 %v7414_v45, %v10995_v39  ;;  %v5230_v52 = vpop.f32.mrf.mxu1 }
 0x641   : > { %v4688_v58 = vpop.f32.mrf.mxu0 }
 0x642   : > { %11951 = vst [vmem:[#allocation77_spill] sm:$0xff] %v11149_v22  ;;  %v11152_v54 = vadd.f32 %v4688_v58, %v10989_v6  ;;  %v11154_v38 = vpop.f32.mrf.mxu1 }
 0x643   : > { %v7415_v17 = vpop.f32.mrf.mxu0 }
 0x644   : > { %11952 = vst [vmem:[#allocation85_spill] sm:$0xff] %v11152_v54  ;;  %v11157_v21 = vadd.f32 %v7415_v17, %v10998_v4  ;;  %v5235_v37 = vpop.f32.mrf.mxu1 }
 0x645   : > { %v4691_v42 = vpop.f32.mrf.mxu0 }
 0x646   : > { %11953 = vst [vmem:[#allocation134_spill] sm:$0xff] %v11157_v21  ;;  %v11160_v24 = vadd.f32 %v4691_v42, %v10992_v9  ;;  %v11162_v19 = vpop.f32.mrf.mxu1 }
 0x647   : > { %v7418_v39 = vpop.f32.mrf.mxu0 }
 0x648   : > { %11954 = vst [vmem:[#allocation151_spill] sm:$0xff] %v11160_v24  ;;  %v11165_v45 = vadd.f32 %v7418_v39, %v11007_v40  ;;  %v5238_v52 = vpop.f32.mrf.mxu1 }
 0x649   : > { %v4704_v6 = vpop.f32.mrf.mxu0 }
 0x64a   : > { %11955 = vst [vmem:[#allocation80_spill] sm:$0xff] %v11165_v45  ;;  %v11168_v58 = vadd.f32 %v4704_v6, %v11001_v14  ;;  %v11170_v22 = vpop.f32.mrf.mxu1 }
 0x64b   : > { %v7419_v4 = vpop.f32.mrf.mxu0 }
 0x64c   : > { %11956 = vst [vmem:[#allocation82_spill] sm:$0xff] %v11168_v58  ;;  %v11173_v17 = vadd.f32 %v7419_v4, %v11010_v53  ;;  %v5243_v37 = vpop.f32.mrf.mxu1  ;;  %v7037_v58 = vld [vmem:[#allocation3 + $0x10] sm:$0xff]  }
 0x64d   : > { %v4707_v9 = vpop.f32.mrf.mxu0 }
 0x64e   : > { %11957 = vst [vmem:[#allocation83_spill] sm:$0xff] %v11173_v17  ;;  %v11176_v42 = vadd.f32 %v4707_v9, %v11004_v41  ;;  %v11178_v21 = vpop.f32.mrf.mxu1 }
 0x64f   : > { %v7422_v40 = vpop.f32.mrf.mxu0 }
 0x650   : > { %11958 = vst [vmem:[#allocation88_spill] sm:$0xff] %v11176_v42  ;;  %v11181_v39 = vadd.f32 %v7422_v40, %v11019_v3  ;;  %v5246_v52 = vpop.f32.mrf.mxu1 }
 0x651   : > { %v4720_v14 = vpop.f32.mrf.mxu0 }
 0x652   : > { %11959 = vst [vmem:[#allocation92_spill] sm:$0xff] %v11181_v39  ;;  %v11184_v6 = vadd.f32 %v4720_v14, %v11013_v43  ;;  %v11186_v45 = vpop.f32.mrf.mxu1 }
 0x653   : > { %v7423_v53 = vpop.f32.mrf.mxu0 }
 0x654   : > { %11960 = vst [vmem:[#allocation84_spill] sm:$0xff] %v11184_v6  ;;  %v11189_v4 = vadd.f32 %v7423_v53, %v11022_v62  ;;  %v5251_v37 = vpop.f32.mrf.mxu1 }
 0x655   : > { %v4723_v41 = vpop.f32.mrf.mxu0 }
 0x656   : > { %11961 = vst [vmem:[#allocation86_spill] sm:$0xff] %v11189_v4  ;;  %v11192_v9 = vadd.f32 %v4723_v41, %v11016_v34  ;;  %v11194_v17 = vpop.f32.mrf.mxu1  ;;  %v11966_v41 = vld [vmem:[#allocation132_spill] sm:$0xff] }
 0x657   : > { %v7426_v3 = vpop.f32.mrf.mxu0 }
 0x658   : > { %11962 = vst [vmem:[#allocation87_spill] sm:$0xff] %v11192_v9  ;;  %v11197_v40 = vadd.f32 %v7426_v3, %v11031_v49  ;;  %v5254_v52 = vpop.f32.mrf.mxu1 }
 0x659   : > { %v4736_v43 = vpop.f32.mrf.mxu0 }
 0x65a   : > { %11963 = vst [vmem:[#allocation96_spill] sm:$0xff] %v11197_v40  ;;  %v11200_v14 = vadd.f32 %v4736_v43, %v11025_v51  ;;  %v11202_v39 = vpop.f32.mrf.mxu1  ;;  %v11969_v43 = vld [vmem:[#allocation149_spill] sm:$0xff] }
 0x65b   : > { %v7427_v62 = vpop.f32.mrf.mxu0 }
 0x65c   : > { %11964 = vst [vmem:[#allocation90_spill] sm:$0xff] %v11200_v14  ;;  %v11205_v53 = vadd.f32 %v7427_v62, %v11034_v44  ;;  %v5259_v37 = vpop.f32.mrf.mxu1 }
 0x65d   : > { %v4739_v34 = vpop.f32.mrf.mxu0 }
 0x65e   : > { %11965 = vst [vmem:[#allocation137_spill] sm:$0xff] %v11205_v53  ;;  %v11208_v4 = vadd.f32 %v4739_v34, %v11966_v41  ;;  %v11210_v9 = vpop.f32.mrf.mxu1 }
 0x65f   : > { %v7430_v49 = vpop.f32.mrf.mxu0 }
 0x660   : > { %11967 = vst [vmem:[#allocation94_spill] sm:$0xff] %v11208_v4  ;;  %v11213_v3 = vadd.f32 %v7430_v49, %v11043_v8  ;;  %v5262_v52 = vpop.f32.mrf.mxu1 }
 0x661   : > { %v4752_v51 = vpop.f32.mrf.mxu0 }
 0x662   : > { %11968 = vst [vmem:[#allocation95_spill] sm:$0xff] %v11213_v3  ;;  %v11216_v40 = vadd.f32 %v4752_v51, %v11969_v43  ;;  %v11218_v14 = vpop.f32.mrf.mxu1 }
 0x663   : > { %v7431_v44 = vpop.f32.mrf.mxu0 }
 0x664   : > { %11970 = vst [vmem:[#allocation102_spill] sm:$0xff] %v11216_v40  ;;  %v11221_v62 = vadd.f32 %v7431_v44, %v11046_v28  ;;  %v5267_v37 = vpop.f32.mrf.mxu1 }
 0x665   : > { %v4755_v34 = vpop.f32.mrf.mxu0 }
 0x666   : > { %11971 = vst [vmem:[#allocation139_spill] sm:$0xff] %v11221_v62  ;;  %v11224_v41 = vadd.f32 %v4755_v34, %v11040_v15  ;;  %v11226_v53 = vpop.f32.mrf.mxu1 }
 0x667   : > { %v7434_v8 = vpop.f32.mrf.mxu0 }
 0x668   : > { %11972 = vst [vmem:[#allocation105_spill] sm:$0xff] %v11224_v41  ;;  %v11229_v49 = vadd.f32 %v7434_v8, %v11073_v10  ;;  %v5270_v52 = vpop.f32.mrf.mxu1  ;;  %v7036_v41 = vld [vmem:[#allocation3 + $0x8] sm:$0xff]  }
 0x669   : > { %v4768_v51 = vpop.f32.mrf.mxu0  ;;  %v6872_v52 = vld [vmem:[#allocation3] sm:$0xff]   ;;  %v6878_v50 = vunpack.c.h.bf16 %v7036_v41 }
 0x66a   : > { %11973 = vst [vmem:[#allocation98_spill] sm:$0xff] %v11229_v49  ;;  %v11232_v43 = vadd.f32 %v4768_v51, %v11055_v26  ;;  %v11234_v3 = vpop.f32.mrf.mxu1  ;;  %v6776_v51 = vld [vmem:[#allocation2] sm:$0xff]   ;;  %v6873_v40 = vunpack.c.l.bf16 %v6872_v52 }
 0x66b   : > { %v7435_v28 = vpop.f32.mrf.mxu0  ;;  %v6777_v4 = vunpack.c.l.bf16 %v6776_v51 }
 0x66c   : > { %11974 = vst [vmem:[#allocation110_spill] sm:$0xff] %v11232_v43  ;;  %v11237_v44 = vadd.f32 %v7435_v28, %v11082_v2  ;;  %v5275_v37 = vpop.f32.mrf.mxu1 }
 0x66d   : > { %v4771_v15 = vpop.f32.mrf.mxu0  ;;  %v7013_v37 = vld [vmem:[#allocation2 + $0x8] sm:$0xff]   ;;  %v5864_v54 = vadd.f32 %v6873_v40, %v6777_v4  ;;  %v7038_v40 = vld [vmem:[#allocation3 + $0x18] sm:$0xff]  }
 0x66e   : > { %11975 = vst [vmem:[#allocation100_spill] sm:$0xff] %v11237_v44  ;;  %v11240_v34 = vadd.f32 %v4771_v15, %v11064_v32  ;;  %v11242_v62 = vpop.f32.mrf.mxu1  ;;  %v6874_v32 = vunpack.c.h.bf16 %v6872_v52  ;;  %v6877_v15 = vunpack.c.l.bf16 %v7036_v41  ;;  %v6781_v24 = vunpack.c.l.bf16 %v7013_v37 }
 0x66f   : > { %v7454_v10 = vpop.f32.mrf.mxu0 }
 0x670   : > { %11976 = vst [vmem:[#allocation115_spill] sm:$0xff] %v11240_v34  ;;  %v5278_v8 = vpop.f32.mrf.mxu1  ;;  %v5435_v28 = vadd.f32 %v7454_v10, %v11106_v20 }
 0x671   : > { %v5426_v49 = vpop.f32.mrf.mxu0 }
 0x672   : > { %v5427_v26 = vadd.f32 %v5426_v49, %v11090_v29  ;;  %v11245_v43 = vpop.f32.mrf.mxu1  ;;  %v6778_v29 = vunpack.c.h.bf16 %v6776_v51 }
 0x673   : > { %11977 = vst [vmem:[#allocation73_spill] sm:$0xff] %v11245_v43  ;;  %v7455_v2 = vpop.f32.mrf.mxu0 }
 0x674   : > { %v5283_v44 = vpop.f32.mrf.mxu1  ;;  %v5617_v34 = vadd.f32 %v5427_v26, %v11053_v13  ;;  %v5438_v6 = vadd.f32 %v7455_v2, %v11114_v11  ;;  %v5865_v52 = vadd.f32 %v6874_v32, %v6778_v29  ;;  %v5866_v11 = vadd.f32 %v6877_v15, %v6781_v24 }
 0x675   : > { %v5429_v8 = vpop.f32.mrf.mxu0  ;;  %v5619_v44 = vadd.f32 %v5435_v28, %v11049_v35  ;;  %v6882_v28 = vunpack.c.h.bf16 %v7037_v58  ;;  %v6786_v29 = vunpack.c.h.bf16 %v7014_v1 }
 0x676   : > { %v5430_v42 = vadd.f32 %v5429_v8, %v11098_v27  ;;  %v11251_v49 = vpop.f32.mrf.mxu1  ;;  %v5913_v2 = vmul.f32 %v5864_v54, %v5617_v34  ;;  %v6782_v27 = vunpack.c.h.bf16 %v7013_v37  ;;  %v6881_v8 = vunpack.c.l.bf16 %v7037_v58  ;;  %v7015_v54 = vld [vmem:[#allocation2 + $0x18] sm:$0xff]   ;;  %v7039_v58 = vld [vmem:[#allocation3 + $0x20] sm:$0xff]  }
 0x677   : > { %11978 = vst [vmem:[#allocation104_spill] sm:$0xff] %v11251_v49  ;;  %v7458_v20 = vpop.f32.mrf.mxu0  ;;  %v5620_v49 = vadd.f32 %v5438_v6, %v11058_v59  ;;  %v5915_v32 = vmul.f32 %v5866_v11, %v5619_v44  ;;  %v6885_v6 = vunpack.c.l.bf16 %v7038_v40  ;;  %v6886_v44 = vunpack.c.h.bf16 %v7038_v40 }
 0x678   : > { %v5618_v10 = vadd.f32 %v5430_v42, %v11062_v31  ;;  %v5451_v13 = vadd.f32 %v7458_v20, %v11138_v63  ;;  %v5286_v26 = vpop.f32.mrf.mxu1  ;;  %v5867_v31 = vadd.f32 %v6878_v50, %v6782_v27  ;;  %v6785_v42 = vunpack.c.l.bf16 %v7014_v1 }
 0x679   : > { %v5442_v51 = vpop.f32.mrf.mxu0 }
 0x67a   : > { %v5914_v43 = vmul.f32 %v5865_v52, %v5618_v10  ;;  %v5623_v4 = vadd.f32 %v5451_v13, %v11067_v12  ;;  %v5443_v35 = vadd.f32 %v5442_v51, %v11122_v16  ;;  %v11259_v41 = vpop.f32.mrf.mxu1  ;;  %v5868_v15 = vadd.f32 %v6881_v8, %v6785_v42  ;;  %v7040_v42 = vld [vmem:[#allocation3 + $0x28] sm:$0xff]  }
 0x67b   : > { %v7459_v63 = vpop.f32.mrf.mxu0  ;;  %v5916_v20 = vmul.f32 %v5867_v31, %v5620_v49  ;;  %v5869_v13 = vadd.f32 %v6882_v28, %v6786_v29  ;;  %v7016_v49 = vld [vmem:[#allocation2 + $0x20] sm:$0xff]   ;;  %v6790_v51 = vunpack.c.h.bf16 %v7015_v54  ;;  %v6889_v8 = vunpack.c.l.bf16 %v7039_v58 }
 0x67c   : > { %v5961_v24 = vadd.f32 %v5914_v43, %v5913_v2  ;;  %v5621_v34 = vadd.f32 %v5443_v35, %v11071_v25  ;;  %v5454_v37 = vadd.f32 %v7459_v63, %v11146_v61  ;;  %v5291_v59 = vpop.f32.mrf.mxu1  ;;  %v6789_v43 = vunpack.c.l.bf16 %v7015_v54 }
 0x67d   : > { %v5445_v12 = vpop.f32.mrf.mxu0  ;;  %v5871_v28 = vadd.f32 %v6886_v44, %v6790_v51  ;;  %v6794_v29 = vunpack.c.h.bf16 %v7016_v49  ;;  %v6894_v44 = vunpack.c.h.bf16 %v7040_v42 }
 0x67e   : > { %v5962_v16 = vadd.f32 %v5961_v24, %v5915_v32  ;;  %v5624_v10 = vadd.f32 %v5454_v37, %v11076_v0  ;;  %v5446_v50 = vadd.f32 %v5445_v12, %v11130_v55  ;;  %v11265_v52 = vpop.f32.mrf.mxu1  ;;  %v5917_v26 = vmul.f32 %v5868_v15, %v5621_v34  ;;  %v7017_v37 = vld [vmem:[#allocation2 + $0x28] sm:$0xff]  }
 0x67f   : > { %v7462_v25 = vpop.f32.mrf.mxu0  ;;  %v5870_v27 = vadd.f32 %v6885_v6, %v6789_v43  ;;  %v6793_v32 = vunpack.c.l.bf16 %v7016_v49  ;;  %v6890_v24 = vunpack.c.h.bf16 %v7039_v58  ;;  %v6893_v15 = vunpack.c.l.bf16 %v7040_v42 }
 0x680   : > { %v5963_v61 = vadd.f32 %v5962_v16, %v5916_v20  ;;  %v5622_v11 = vadd.f32 %v5446_v50, %v11080_v56  ;;  %v5467_v2 = vadd.f32 %v7462_v25, %v11170_v22  ;;  %v5294_v1 = vpop.f32.mrf.mxu1  ;;  %v5920_v20 = vmul.f32 %v5871_v28, %v5624_v10  ;;  %v7018_v10 = vld [vmem:[#allocation2 + $0x30] sm:$0xff]  }
 0x681   : > { %v5458_v0 = vpop.f32.mrf.mxu0  ;;  %v5919_v22 = vmul.f32 %v5870_v27, %v5623_v4  ;;  %v5872_v12 = vadd.f32 %v6889_v8, %v6793_v32  ;;  %v7041_v4 = vld [vmem:[#allocation3 + $0x30] sm:$0xff]   ;;  %v6797_v58 = vunpack.c.l.bf16 %v7017_v37  ;;  %v6798_v1 = vunpack.c.h.bf16 %v7017_v37  ;;  %v7019_v32 = vld [vmem:[#allocation2 + $0x38] sm:$0xff]  }
 0x682   : > { %v5964_v55 = vadd.f32 %v5963_v61, %v5917_v26  ;;  %v5918_v35 = vmul.f32 %v5869_v13, %v5622_v11  ;;  %v5627_v31 = vadd.f32 %v5467_v2, %v11085_v23  ;;  %v5459_v40 = vadd.f32 %v5458_v0, %v11154_v38  ;;  %v11271_v63 = vpop.f32.mrf.mxu1  ;;  %v7042_v0 = vld [vmem:[#allocation3 + $0x38] sm:$0xff]  }
 0x683   : > { %v7463_v56 = vpop.f32.mrf.mxu0  ;;  %v5873_v13 = vadd.f32 %v6890_v24, %v6794_v29  ;;  %v5874_v2 = vadd.f32 %v6893_v15, %v6797_v58  ;;  %v6897_v49 = vunpack.c.l.bf16 %v7041_v4  ;;  %v6801_v42 = vunpack.c.l.bf16 %v7018_v10  ;;  %v7020_v58 = vld [vmem:[#allocation2 + $0x40] sm:$0xff]  }
 0x684   : > { %v5965_v34 = vadd.f32 %v5964_v55, %v5918_v35  ;;  %v5625_v54 = vadd.f32 %v5459_v40, %v11088_v33  ;;  %v5470_v59 = vadd.f32 %v7463_v56, %v11178_v21  ;;  %v5299_v6 = vpop.f32.mrf.mxu1  ;;  %v5875_v35 = vadd.f32 %v6894_v44, %v6798_v1 }
 0x685   : > { %v5461_v23 = vpop.f32.mrf.mxu0  ;;  %v6898_v40 = vunpack.c.h.bf16 %v7041_v4  ;;  %v5876_v37 = vadd.f32 %v6897_v49, %v6801_v42  ;;  %v6902_v29 = vunpack.c.h.bf16 %v7042_v0  ;;  %v6806_v44 = vunpack.c.h.bf16 %v7019_v32  ;;  %v7021_v49 = vld [vmem:[#allocation2 + $0x48] sm:$0xff]  }
 0x686   : > { %v5966_v38 = vadd.f32 %v5965_v34, %v5919_v22  ;;  %v5628_v16 = vadd.f32 %v5470_v59, %v11093_v5  ;;  %v5462_v50 = vadd.f32 %v5461_v23, %v11162_v19  ;;  %v11277_v43 = vpop.f32.mrf.mxu1  ;;  %v5921_v25 = vmul.f32 %v5872_v12, %v5625_v54 }
 0x687   : > { %v7466_v33 = vpop.f32.mrf.mxu0  ;;  %v6901_v34 = vunpack.c.l.bf16 %v7042_v0  ;;  %v6802_v54 = vunpack.c.h.bf16 %v7018_v10  ;;  %v6805_v23 = vunpack.c.l.bf16 %v7019_v32  ;;  %v6810_v42 = vunpack.c.h.bf16 %v7020_v58 }
 0x688   : > { %v5967_v21 = vadd.f32 %v5966_v38, %v5920_v20  ;;  %v5626_v26 = vadd.f32 %v5462_v50, %v11096_v48  ;;  %v5483_v61 = vadd.f32 %v7466_v33, %v11202_v39  ;;  %v5302_v11 = vpop.f32.mrf.mxu1  ;;  %v5923_v39 = vmul.f32 %v5874_v2, %v5627_v31  ;;  %v7043_v31 = vld [vmem:[#allocation3 + $0x40] sm:$0xff]  }
 0x689   : > { %v5474_v5 = vpop.f32.mrf.mxu0  ;;  %v5924_v59 = vmul.f32 %v5875_v35, %v5628_v16  ;;  %v5877_v50 = vadd.f32 %v6898_v40, %v6802_v54  ;;  %v5878_v33 = vadd.f32 %v6901_v34, %v6805_v23  ;;  %v6809_v11 = vunpack.c.l.bf16 %v7020_v58  ;;  %v7022_v54 = vld [vmem:[#allocation2 + $0x50] sm:$0xff]   ;;  %v7046_v23 = vld [vmem:[#allocation3 + $0x58] sm:$0xff]  }
 0x68a   : > { %v5968_v19 = vadd.f32 %v5967_v21, %v5921_v25  ;;  %v5922_v27 = vmul.f32 %v5873_v13, %v5626_v26  ;;  %v5631_v51 = vadd.f32 %v5483_v61, %v11101_v46  ;;  %v5475_v8 = vadd.f32 %v5474_v5, %v11186_v45  ;;  %v11283_v55 = vpop.f32.mrf.mxu1 }
 0x68b   : > { %v7467_v48 = vpop.f32.mrf.mxu0  ;;  %v6905_v13 = vunpack.c.l.bf16 %v7043_v31  ;;  %v5879_v61 = vadd.f32 %v6902_v29, %v6806_v44  ;;  %v6906_v2 = vunpack.c.h.bf16 %v7043_v31  ;;  %v6813_v32 = vunpack.c.l.bf16 %v7021_v49  ;;  %v11979_v29 = vld [vmem:[#allocation73_spill] sm:$0xff] }
 0x68c   : > { %v5969_v28 = vadd.f32 %v5968_v19, %v5922_v27  ;;  %v5629_v56 = vadd.f32 %v5475_v8, %v11104_v36  ;;  %v5486_v24 = vadd.f32 %v7467_v48, %v11210_v9  ;;  %v5307_v22 = vpop.f32.mrf.mxu1  ;;  %v5927_v1 = vmul.f32 %v5878_v33, %v5631_v51  ;;  %v7045_v51 = vld [vmem:[#allocation3 + $0x50] sm:$0xff]   ;;  %v7023_v44 = vld [vmem:[#allocation2 + $0x58] sm:$0xff]  }
 0x68d   : > { %v5477_v46 = vpop.f32.mrf.mxu0  ;;  %v5880_v8 = vadd.f32 %v6905_v13, %v6809_v11 }
 0x68e   : > { %v5970_v45 = vadd.f32 %v5969_v28, %v5923_v39  ;;  %v5632_v6 = vadd.f32 %v5486_v24, %v11109_v57  ;;  %v5478_v15 = vadd.f32 %v5477_v46, %v11194_v17  ;;  %v11289_v12 = vpop.f32.mrf.mxu1  ;;  %v5925_v36 = vmul.f32 %v5876_v37, %v5629_v56  ;;  %v7044_v17 = vld [vmem:[#allocation3 + $0x48] sm:$0xff]  }
 0x68f   : > { %v7470_v20 = vpop.f32.mrf.mxu0  ;;  %v6909_v0 = vunpack.c.l.bf16 %v7044_v17  ;;  %v6910_v56 = vunpack.c.h.bf16 %v7044_v17  ;;  %v6818_v17 = vunpack.c.h.bf16 %v7022_v54 }
 0x690   : > { %v5971_v38 = vadd.f32 %v5970_v45, %v5924_v59  ;;  %v5630_v9 = vadd.f32 %v5478_v15, %v11112_v60  ;;  %v5310_v4 = vpop.f32.mrf.mxu1  ;;  %v5499_v5 = vadd.f32 %v7470_v20, %v11234_v3  ;;  %v5928_v48 = vmul.f32 %v5879_v61, %v5632_v6 }
 0x691   : > { %v5490_v16 = vpop.f32.mrf.mxu0  ;;  %v5881_v3 = vadd.f32 %v6906_v2, %v6810_v42  ;;  %v5882_v59 = vadd.f32 %v6909_v0, %v6813_v32  ;;  %v6814_v45 = vunpack.c.h.bf16 %v7021_v49  ;;  %v6913_v6 = vunpack.c.l.bf16 %v7045_v51  ;;  %v11983_v42 = vld [vmem:[#allocation76_spill] sm:$0xff] }
 0x692   : > { %v5972_v57 = vadd.f32 %v5971_v38, %v5925_v36  ;;  %v5926_v25 = vmul.f32 %v5877_v50, %v5630_v9  ;;  %v5491_v21 = vadd.f32 %v5490_v16, %v11218_v14  ;;  %v11293_v26 = vpop.f32.mrf.mxu1  ;;  %v6817_v38 = vunpack.c.l.bf16 %v7022_v54  ;;  %v11980_v16 = vld [vmem:[#allocation72_spill] sm:$0xff] }
 0x693   : > { %v7471_v10 = vpop.f32.mrf.mxu0  ;;  %v6914_v50 = vunpack.c.h.bf16 %v7045_v51  ;;  %v6918_v49 = vunpack.c.h.bf16 %v7046_v23  ;;  %v6822_v51 = vunpack.c.h.bf16 %v7023_v44 }
 0x694   : > { %v5973_v60 = vadd.f32 %v5972_v57, %v5926_v25  ;;  %v5633_v19 = vadd.f32 %v5491_v21, %v11120_v18  ;;  %v5315_v27 = vpop.f32.mrf.mxu1  ;;  %v5502_v40 = vadd.f32 %v7471_v10, %v11242_v62  ;;  %v5635_v18 = vadd.f32 %v5499_v5, %v11117_v7  ;;  %v11981_v10 = vld [vmem:[#allocation104_spill] sm:$0xff] }
 0x695   : > { %v5493_v35 = vpop.f32.mrf.mxu0  ;;  %v5883_v7 = vadd.f32 %v6910_v56, %v6814_v45  ;;  %v6917_v57 = vunpack.c.l.bf16 %v7046_v23  ;;  %v6821_v5 = vunpack.c.l.bf16 %v7023_v44  ;;  %v11982_v27 = vld [vmem:[#allocation68_spill] sm:$0xff] }
 0x696   : > { %v5974_v14 = vadd.f32 %v5973_v60, %v5927_v1  ;;  %v5494_v39 = vadd.f32 %v5493_v35, %v11226_v53  ;;  %v11299_v28 = vpop.f32.mrf.mxu1  ;;  %v5929_v22 = vmul.f32 %v5880_v8, %v5633_v19  ;;  %v5636_v15 = vadd.f32 %v5502_v40, %v11125_v47  ;;  %v7047_v60 = vld [vmem:[#allocation3 + $0x60] sm:$0xff]   ;;  %v7049_v44 = vld [vmem:[#allocation3 + $0x70] sm:$0xff]  }
 0x697   : > { %v7474_v24 = vpop.f32.mrf.mxu0  ;;  %v5884_v47 = vadd.f32 %v6913_v6, %v6817_v38  ;;  %v7024_v40 = vld [vmem:[#allocation2 + $0x60] sm:$0xff]   ;;  %v6921_v32 = vunpack.c.l.bf16 %v7047_v60  ;;  %v6922_v45 = vunpack.c.h.bf16 %v7047_v60 }
 0x698   : > { %v5975_v34 = vadd.f32 %v5974_v14, %v5928_v48  ;;  %v5634_v37 = vadd.f32 %v5494_v39, %v11128_v30  ;;  %v5318_v46 = vpop.f32.mrf.mxu1  ;;  %v5931_v30 = vmul.f32 %v5882_v59, %v5635_v18  ;;  %v5515_v58 = vadd.f32 %v7474_v24, %v11259_v41 }
 0x699   : > { %v5506_v62 = vpop.f32.mrf.mxu0  ;;  %v5932_v21 = vmul.f32 %v5883_v7, %v5636_v15  ;;  %v5885_v41 = vadd.f32 %v6914_v50, %v6818_v17  ;;  %v5886_v39 = vadd.f32 %v6917_v57, %v6821_v5  ;;  %v5887_v46 = vadd.f32 %v6918_v49, %v6822_v51  ;;  %v7025_v15 = vld [vmem:[#allocation2 + $0x68] sm:$0xff]   ;;  %v11986_v57 = vld [vmem:[#allocation77_spill] sm:$0xff]  ;;  %v11988_v49 = vld [vmem:[#allocation134_spill] sm:$0xff] }
 0x69a   : > { %v5976_v53 = vadd.f32 %v5975_v34, %v5929_v22  ;;  %v5930_v31 = vmul.f32 %v5881_v3, %v5634_v37  ;;  %v5507_v20 = vadd.f32 %v5506_v62, %v11979_v29  ;;  %v11305_v36 = vpop.f32.mrf.mxu1  ;;  %v5639_v0 = vadd.f32 %v5515_v58, %v11982_v27  ;;  %v11984_v3 = vld [vmem:[#allocation81_spill] sm:$0xff]  ;;  %v7048_v22 = vld [vmem:[#allocation3 + $0x68] sm:$0xff]  }
 0x69b   : > { %v7475_v9 = vpop.f32.mrf.mxu0  ;;  %v6825_v54 = vunpack.c.l.bf16 %v7024_v40  ;;  %v6830_v60 = vunpack.c.h.bf16 %v7025_v15  ;;  %v6929_v5 = vunpack.c.l.bf16 %v7049_v44  ;;  %v7050_v27 = vld [vmem:[#allocation3 + $0x78] sm:$0xff]  }
 0x69c   : > { %v5977_v4 = vadd.f32 %v5976_v53, %v5930_v31  ;;  %v5637_v13 = vadd.f32 %v5507_v20, %v11980_v16  ;;  %v5323_v33 = vpop.f32.mrf.mxu1  ;;  %v5518_v11 = vadd.f32 %v7475_v9, %v11265_v52  ;;  %v5935_v62 = vmul.f32 %v5886_v39, %v5639_v0  ;;  %v11985_v31 = vld [vmem:[#allocation85_spill] sm:$0xff] }
 0x69d   : > { %v5509_v25 = vpop.f32.mrf.mxu0  ;;  %v6925_v20 = vunpack.c.l.bf16 %v7048_v22  ;;  %v5888_v7 = vadd.f32 %v6921_v32, %v6825_v54  ;;  %v6826_v9 = vunpack.c.h.bf16 %v7024_v40  ;;  %v6829_v16 = vunpack.c.l.bf16 %v7025_v15  ;;  %v11989_v32 = vld [vmem:[#allocation82_spill] sm:$0xff] }
 0x69e   : > { %v5978_v61 = vadd.f32 %v5977_v4, %v5931_v30  ;;  %v5510_v2 = vadd.f32 %v5509_v25, %v11981_v10  ;;  %v11311_v1 = vpop.f32.mrf.mxu1  ;;  %v5933_v8 = vmul.f32 %v5884_v47, %v5637_v13  ;;  %v5640_v24 = vadd.f32 %v5518_v11, %v11984_v3  ;;  %v7026_v10 = vld [vmem:[#allocation2 + $0x70] sm:$0xff]  }
 0x69f   : > { %v7478_v19 = vpop.f32.mrf.mxu0  ;;  %v6926_v13 = vunpack.c.h.bf16 %v7048_v22 }
 0x6a0   : > { %v5979_v35 = vadd.f32 %v5978_v61, %v5932_v21  ;;  %v5638_v48 = vadd.f32 %v5510_v2, %v11983_v42  ;;  %v5326_v14 = vpop.f32.mrf.mxu1  ;;  %v5531_v53 = vadd.f32 %v7478_v19, %v11283_v55  ;;  %v5936_v50 = vmul.f32 %v5887_v46, %v5640_v24  ;;  %v11987_v21 = vld [vmem:[#allocation151_spill] sm:$0xff] }
 0x6a1   : > { %v5522_v52 = vpop.f32.mrf.mxu0  ;;  %v5889_v55 = vadd.f32 %v6922_v45, %v6826_v9  ;;  %v5890_v2 = vadd.f32 %v6925_v20, %v6829_v16  ;;  %v6833_v42 = vunpack.c.l.bf16 %v7026_v10  ;;  %v6930_v14 = vunpack.c.h.bf16 %v7049_v44 }
 0x6a2   : > { %v5980_v56 = vadd.f32 %v5979_v35, %v5933_v8  ;;  %v5934_v18 = vmul.f32 %v5885_v41, %v5638_v48  ;;  %v5523_v34 = vadd.f32 %v5522_v52, %v11271_v63  ;;  %v11317_v37 = vpop.f32.mrf.mxu1  ;;  %v5643_v47 = vadd.f32 %v5531_v53, %v11986_v57  ;;  %v7027_v52 = vld [vmem:[#allocation2 + $0x78] sm:$0xff]  }
 0x6a3   : > { %v7479_v59 = vpop.f32.mrf.mxu0  ;;  %v5891_v35 = vadd.f32 %v6926_v13, %v6830_v60  ;;  %v6933_v24 = vunpack.c.l.bf16 %v7050_v27  ;;  %v6934_v53 = vunpack.c.h.bf16 %v7050_v27  ;;  %v11993_v60 = vld [vmem:[#allocation84_spill] sm:$0xff] }
 0x6a4   : > { %v5981_v6 = vadd.f32 %v5980_v56, %v5934_v18  ;;  %v5641_v23 = vadd.f32 %v5523_v34, %v11985_v31  ;;  %v5331_v29 = vpop.f32.mrf.mxu1  ;;  %v5534_v30 = vadd.f32 %v7479_v59, %v11289_v12  ;;  %v5939_v40 = vmul.f32 %v5890_v2, %v5643_v47  ;;  %v11990_v31 = vld [vmem:[#allocation80_spill] sm:$0xff] }
 0x6a5   : > { %v5525_v38 = vpop.f32.mrf.mxu0  ;;  %v5892_v18 = vadd.f32 %v6929_v5, %v6833_v42  ;;  %v6834_v34 = vunpack.c.h.bf16 %v7026_v10  ;;  %v7029_v2 = vld [vmem:[#allocation2 + $0x88] sm:$0xff]  }
 0x6a6   : > { %v5982_v63 = vadd.f32 %v5981_v6, %v5935_v62  ;;  %v5526_v4 = vadd.f32 %v5525_v38, %v11277_v43  ;;  %v11323_v58 = vpop.f32.mrf.mxu1  ;;  %v5937_v25 = vmul.f32 %v5888_v7, %v5641_v23  ;;  %v5644_v41 = vadd.f32 %v5534_v30, %v11988_v49  ;;  %v7051_v62 = vld [vmem:[#allocation3 + $0x80] sm:$0xff]   ;;  %v11991_v7 = vld [vmem:[#allocation88_spill] sm:$0xff] }
 0x6a7   : > { %v7482_v33 = vpop.f32.mrf.mxu0  ;;  %v6837_v6 = vunpack.c.l.bf16 %v7027_v52  ;;  %v5893_v15 = vadd.f32 %v6930_v14, %v6834_v34  ;;  %v6838_v30 = vunpack.c.h.bf16 %v7027_v52  ;;  %v6845_v14 = vunpack.c.l.bf16 %v7029_v2 }
 0x6a8   : > { %v5983_v17 = vadd.f32 %v5982_v63, %v5936_v50  ;;  %v5642_v61 = vadd.f32 %v5526_v4, %v11987_v21  ;;  %v5334_v11 = vpop.f32.mrf.mxu1  ;;  %v5547_v51 = vadd.f32 %v7482_v33, %v11305_v36  ;;  %v5940_v46 = vmul.f32 %v5891_v35, %v5644_v41  ;;  %v7028_v50 = vld [vmem:[#allocation2 + $0x80] sm:$0xff]  }
 0x6a9   : > { %v5538_v12 = vpop.f32.mrf.mxu0  ;;  %v5894_v63 = vadd.f32 %v6933_v24, %v6837_v6  ;;  %v5895_v47 = vadd.f32 %v6934_v53, %v6838_v30  ;;  %v6938_v21 = vunpack.c.h.bf16 %v7051_v62 }
 0x6aa   : > { %v5984_v43 = vadd.f32 %v5983_v17, %v5937_v25  ;;  %v5938_v19 = vmul.f32 %v5889_v55, %v5642_v61  ;;  %v5539_v0 = vadd.f32 %v5538_v12, %v11293_v26  ;;  %v5337_v8 = vpop.f32.mrf.mxu1  ;;  %v5647_v23 = vadd.f32 %v5547_v51, %v11990_v31  ;;  %v7052_v55 = vld [vmem:[#allocation3 + $0x88] sm:$0xff]  }
 0x6ab   : > { %v7483_v48 = vpop.f32.mrf.mxu0  ;;  %v6841_v25 = vunpack.c.l.bf16 %v7028_v50 }
 0x6ac   : > { %v5985_v39 = vadd.f32 %v5984_v43, %v5938_v19  ;;  %v5645_v56 = vadd.f32 %v5539_v0, %v11989_v32  ;;  %v5339_v3 = vpop.f32.mrf.mxu1  ;;  %v5550_v26 = vadd.f32 %v7483_v48, %v11311_v1  ;;  %v6937_v1 = vunpack.c.l.bf16 %v7051_v62  ;;  %v7053_v48 = vld [vmem:[#allocation3 + $0x90] sm:$0xff]  }
 0x6ad   : > { %v5541_v22 = vpop.f32.mrf.mxu0  ;;  %v5943_v61 = vmul.f32 %v5894_v63, %v5647_v23  ;;  %v6941_v43 = vunpack.c.l.bf16 %v7052_v55  ;;  %v6842_v19 = vunpack.c.h.bf16 %v7028_v50  ;;  %v11995_v3 = vld [vmem:[#allocation87_spill] sm:$0xff]  ;;  %v7031_v63 = vld [vmem:[#allocation2 + $0x98] sm:$0xff]  }
 0x6ae   : > { %v5986_v54 = vadd.f32 %v5985_v39, %v5939_v40  ;;  %v5542_v59 = vadd.f32 %v5541_v22, %v11299_v28  ;;  %v5340_v45 = vpop.f32.mrf.mxu1  ;;  %v5941_v29 = vmul.f32 %v5892_v18, %v5645_v56  ;;  %v11992_v28 = vld [vmem:[#allocation83_spill] sm:$0xff]  ;;  %v5896_v49 = vadd.f32 %v6937_v1, %v6841_v25  ;;  %v7030_v22 = vld [vmem:[#allocation2 + $0x90] sm:$0xff]  }
 0x6af   : > { %v7486_v36 = vpop.f32.mrf.mxu0  ;;  %v5648_v16 = vadd.f32 %v5550_v26, %v11992_v28  ;;  %v6942_v40 = vunpack.c.h.bf16 %v7052_v55  ;;  %v5897_v39 = vadd.f32 %v6938_v21, %v6842_v19  ;;  %v5898_v34 = vadd.f32 %v6941_v43, %v6845_v14 }
 0x6b0   : > { %v5987_v20 = vadd.f32 %v5986_v54, %v5940_v46  ;;  %v5646_v38 = vadd.f32 %v5542_v59, %v11991_v7  ;;  %v5342_v9 = vpop.f32.mrf.mxu1  ;;  %v5563_v10 = vadd.f32 %v7486_v36, %v5337_v8  ;;  %v11994_v8 = vld [vmem:[#allocation92_spill] sm:$0xff]  ;;  %v6846_v46 = vunpack.c.h.bf16 %v7029_v2 }
 0x6b1   : > { %v5554_v4 = vpop.f32.mrf.mxu0  ;;  %v5944_v27 = vmul.f32 %v5895_v47, %v5648_v16  ;;  %v6945_v26 = vunpack.c.l.bf16 %v7053_v48  ;;  %v6849_v31 = vunpack.c.l.bf16 %v7030_v22  ;;  %v6853_v47 = vunpack.c.l.bf16 %v7031_v63  ;;  %v11998_v2 = vld [vmem:[#allocation96_spill] sm:$0xff] }
 0x6b2   : > { %v5988_v44 = vadd.f32 %v5987_v20, %v5941_v29  ;;  %v5942_v13 = vmul.f32 %v5893_v15, %v5646_v38  ;;  %v5555_v33 = vadd.f32 %v5554_v4, %v11317_v37  ;;  %v5345_v57 = vpop.f32.mrf.mxu1  ;;  %v5651_v52 = vadd.f32 %v5563_v10, %v11994_v8  ;;  %v7054_v15 = vld [vmem:[#allocation3 + $0x98] sm:$0xff]  }
 0x6b3   : > { %v7487_v17 = vpop.f32.mrf.mxu0  ;;  %v5899_v36 = vadd.f32 %v6942_v40, %v6846_v46  ;;  %v6946_v29 = vunpack.c.h.bf16 %v7053_v48  ;;  %v11997_v38 = vld [vmem:[#allocation90_spill] sm:$0xff]  ;;  %v6949_v4 = vunpack.c.l.bf16 %v7054_v15  ;;  %v6950_v21 = vunpack.c.h.bf16 %v7054_v15  ;;  %v7033_v15 = vld [vmem:[#allocation2 + $0xa8] sm:$0xff]  }
 0x6b4   : > { %v5989_v11 = vadd.f32 %v5988_v44, %v5942_v13  ;;  %v5649_v12 = vadd.f32 %v5555_v33, %v11993_v60  ;;  %v5347_v5 = vpop.f32.mrf.mxu1  ;;  %v5566_v35 = vadd.f32 %v7487_v17, %v5340_v45  ;;  %v5947_v20 = vmul.f32 %v5898_v34, %v5651_v52 }
 0x6b5   : > { %v5557_v41 = vpop.f32.mrf.mxu0  ;;  %v6850_v44 = vunpack.c.h.bf16 %v7030_v22  ;;  %v5900_v13 = vadd.f32 %v6945_v26, %v6849_v31 }
 0x6b6   : > { %v5990_v0 = vadd.f32 %v5989_v11, %v5943_v61  ;;  %v5558_v37 = vadd.f32 %v5557_v41, %v11323_v58  ;;  %v5348_v42 = vpop.f32.mrf.mxu1  ;;  %v5945_v32 = vmul.f32 %v5896_v49, %v5649_v12  ;;  %v11996_v58 = vld [vmem:[#allocation86_spill] sm:$0xff]  ;;  %v6854_v41 = vunpack.c.h.bf16 %v7031_v63 }
 0x6b7   : > { %v7490_v51 = vpop.f32.mrf.mxu0  ;;  %v5652_v45 = vadd.f32 %v5566_v35, %v11996_v58  ;;  %v5901_v25 = vadd.f32 %v6946_v29, %v6850_v44  ;;  %v11999_v12 = vld [vmem:[#allocation94_spill] sm:$0xff]  ;;  %v5902_v35 = vadd.f32 %v6949_v4, %v6853_v47  ;;  %v6861_v63 = vunpack.c.l.bf16 %v7033_v15 }
 0x6b8   : > { %v5991_v56 = vadd.f32 %v5990_v0, %v5944_v27  ;;  %v5650_v24 = vadd.f32 %v5558_v37, %v11995_v3  ;;  %v5350_v18 = vpop.f32.mrf.mxu1  ;;  %v7032_v49 = vld [vmem:[#allocation2 + $0xa0] sm:$0xff]  }
 0x6b9   : > { %v5570_v54 = vpop.f32.mrf.mxu0  ;;  %v5948_v28 = vmul.f32 %v5899_v36, %v5652_v45  ;;  %v12001_v3 = vld [vmem:[#allocation102_spill] sm:$0xff]  ;;  %v12002_v36 = vld [vmem:[#allocation105_spill] sm:$0xff] }
 0x6ba   : > { %v5992_v59 = vadd.f32 %v5991_v56, %v5945_v32  ;;  %v5946_v62 = vmul.f32 %v5897_v39, %v5650_v24  ;;  %v5571_v6 = vadd.f32 %v5570_v54, %v5345_v57  ;;  %v5353_v53 = vpop.f32.mrf.mxu1  ;;  %v7055_v57 = vld [vmem:[#allocation3 + $0xa0] sm:$0xff]   ;;  %v6857_v39 = vunpack.c.l.bf16 %v7032_v49 }
 0x6bb   : > { %v7491_v23 = vpop.f32.mrf.mxu0  ;;  %v5579_v50 = vadd.f32 %v7490_v51, %v5353_v53  ;;  %v6953_v27 = vunpack.c.l.bf16 %v7055_v57  ;;  %v5903_v32 = vadd.f32 %v6950_v21, %v6854_v41  ;;  %v6954_v34 = vunpack.c.h.bf16 %v7055_v57  ;;  %v7034_v21 = vld [vmem:[#allocation2 + $0xb0] sm:$0xff]  }
 0x6bc   : > { %v5993_v7 = vadd.f32 %v5992_v59, %v5946_v62  ;;  %v5653_v9 = vadd.f32 %v5571_v6, %v11997_v38  ;;  %v5355_v30 = vpop.f32.mrf.mxu1  ;;  %v7056_v59 = vld [vmem:[#allocation3 + $0xa8] sm:$0xff]   ;;  %v6858_v62 = vunpack.c.h.bf16 %v7032_v49  ;;  %v6865_v41 = vunpack.c.l.bf16 %v7034_v21 }
 0x6bd   : > { %v5573_v1 = vpop.f32.mrf.mxu0  ;;  %v5655_v60 = vadd.f32 %v5579_v50, %v11998_v2  ;;  %v5904_v18 = vadd.f32 %v6953_v27, %v6857_v39  ;;  %v6957_v29 = vunpack.c.l.bf16 %v7056_v59 }
 0x6be   : > { %v5994_v16 = vadd.f32 %v5993_v7, %v5947_v20  ;;  %v5574_v55 = vadd.f32 %v5573_v1, %v5348_v42  ;;  %v5356_v33 = vpop.f32.mrf.mxu1  ;;  %v5949_v11 = vmul.f32 %v5900_v13, %v5653_v9  ;;  %v12000_v42 = vld [vmem:[#allocation137_spill] sm:$0xff]  ;;  %v12003_v1 = vld [vmem:[#allocation95_spill] sm:$0xff] }
 0x6bf   : > { %v5582_v17 = vadd.f32 %v7491_v23, %v5356_v33  ;;  %v7494_v61 = vpop.f32.mrf.mxu0  ;;  %v5951_v8 = vmul.f32 %v5902_v35, %v5655_v60  ;;  %v5905_v23 = vadd.f32 %v6954_v34, %v6858_v62  ;;  %v7057_v33 = vld [vmem:[#allocation3 + $0xb0] sm:$0xff]  }
 0x6c0   : > { %v5995_v10 = vadd.f32 %v5994_v16, %v5948_v28  ;;  %v5654_v5 = vadd.f32 %v5574_v55, %v11999_v12  ;;  %v5358_v43 = vpop.f32.mrf.mxu1  ;;  %v5906_v28 = vadd.f32 %v6957_v29, %v6861_v63  ;;  %v6958_v16 = vunpack.c.h.bf16 %v7056_v59 }
 0x6c1   : > { %v5586_v19 = vpop.f32.mrf.mxu0  ;;  %v5656_v48 = vadd.f32 %v5582_v17, %v12000_v42  ;;  %v6962_v42 = vunpack.c.h.bf16 %v7057_v33 }
 0x6c2   : > { %v5996_v0 = vadd.f32 %v5995_v10, %v5949_v11  ;;  %v5950_v37 = vmul.f32 %v5901_v25, %v5654_v5  ;;  %v5361_v14 = vpop.f32.mrf.mxu1  ;;  %v6862_v25 = vunpack.c.h.bf16 %v7033_v15  ;;  %v12004_v10 = vld [vmem:[#allocation139_spill] sm:$0xff] }
 0x6c3   : > { %v5587_v40 = vadd.f32 %v5586_v19, %v5361_v14  ;;  %v7495_v51 = vpop.f32.mrf.mxu0  ;;  %v5952_v46 = vmul.f32 %v5903_v32, %v5656_v48  ;;  %v7035_v32 = vld [vmem:[#allocation2 + $0xb8] sm:$0xff]  }
 0x6c4   : > { %v5997_v52 = vadd.f32 %v5996_v0, %v5950_v37  ;;  %v5363_v56 = vpop.f32.mrf.mxu1  ;;  %v5907_v60 = vadd.f32 %v6958_v16, %v6862_v25  ;;  %v12005_v0 = vld [vmem:[#allocation110_spill] sm:$0xff] }
 0x6c5   : > { %v5657_v24 = vadd.f32 %v5587_v40, %v12001_v3  ;;  %v5589_v22 = vpop.f32.mrf.mxu0  ;;  %v7058_v40 = vld [vmem:[#allocation3 + $0xb8] sm:$0xff]   ;;  %v12006_v3 = vld [vmem:[#allocation115_spill] sm:$0xff]  ;;  %v5912_v16 = vld [vmem:[#allocation5] sm:$0x1] }
 0x6c6   : > { %v5998_v54 = vadd.f32 %v5997_v52, %v5951_v8  ;;  %v5364_v26 = vpop.f32.mrf.mxu1  ;;  %v6866_v8 = vunpack.c.h.bf16 %v7034_v21 }
 0x6c7   : > { %v5953_v58 = vmul.f32 %v5904_v18, %v5657_v24  ;;  %v5590_v45 = vadd.f32 %v5589_v22, %v5364_v26  ;;  %v7498_v38 = vpop.f32.mrf.mxu0  ;;  %v6965_v22 = vunpack.c.l.bf16 %v7058_v40  ;;  %v6869_v26 = vunpack.c.l.bf16 %v7035_v32 }
 0x6c8   : > { %v5999_v6 = vadd.f32 %v5998_v54, %v5952_v46  ;;  %v5366_v53 = vpop.f32.mrf.mxu1  ;;  %v5909_v18 = vadd.f32 %v6962_v42, %v6866_v8 }
 0x6c9   : > { %v5658_v31 = vadd.f32 %v5590_v45, %v12002_v36  ;;  %v5602_v55 = vpop.f32.mrf.mxu0  ;;  %v12007_v45 = vld [vmem:[#allocation98_spill] sm:$0xff]  ;;  %v6966_v53 = vunpack.c.h.bf16 %v7058_v40 }
 0x6ca   : > { %v6000_v20 = vadd.f32 %v5999_v6, %v5953_v58  ;;  %v5369_v7 = vpop.f32.mrf.mxu1  ;;  %v5910_v6 = vadd.f32 %v6965_v22, %v6869_v26 }
 0x6cb   : > { %v5954_v9 = vmul.f32 %v5905_v23, %v5658_v31  ;;  %v5595_v50 = vadd.f32 %v7494_v61, %v5369_v7  ;;  %v6961_v61 = vunpack.c.l.bf16 %v7057_v33  ;;  %v7499_v5 = vpop.f32.mrf.mxu0  ;;  %v6870_v23 = vunpack.c.h.bf16 %v7035_v32  ;;  %v12008_v7 = vld [vmem:[#allocation100_spill] sm:$0xff] }
 0x6cc   : > { %v5371_v30 = vpop.f32.mrf.mxu1 }
 0x6cd   : > { %v6001_v4 = vadd.f32 %v6000_v20, %v5954_v9  ;;  %v5659_v44 = vadd.f32 %v5595_v50, %v12003_v1  ;;  %v5908_v37 = vadd.f32 %v6961_v61, %v6865_v41  ;;  %v5605_v48 = vpop.f32.mrf.mxu0  ;;  %v5911_v50 = vadd.f32 %v6966_v53, %v6870_v23 }
 0x6ce   : > { %v5372_v13 = vpop.f32.mrf.mxu1 }
 0x6cf   : > { %v5955_v57 = vmul.f32 %v5906_v28, %v5659_v44  ;;  %v5598_v47 = vadd.f32 %v7495_v51, %v5372_v13 }
 0x6d0   : > { %v5374_v17 = vpop.f32.mrf.mxu1 }
 0x6d1   : > { %v6002_v11 = vadd.f32 %v6001_v4, %v5955_v57  ;;  %v5660_v2 = vadd.f32 %v5598_v47, %v12004_v10  ;;  %v6022_v10 = vld [vmem:[#allocation4] sm:$0x1] }
 0x6d2   : > { %v5377_v12 = vpop.f32.mrf.mxu1 }
 0x6d3   : > { %v5956_v43 = vmul.f32 %v5907_v60, %v5660_v2  ;;  %v5603_v49 = vadd.f32 %v5602_v55, %v5377_v12 }
 0x6d4   : > { %v5379_v19 = vpop.f32.mrf.mxu1 }
 0x6d5   : > { %v6003_v27 = vadd.f32 %v6002_v11, %v5956_v43  ;;  %v5661_v35 = vadd.f32 %v5603_v49, %v12005_v0 }
 0x6d6   : > { %v5380_v14 = vpop.f32.mrf.mxu1 }
 0x6d7   : > { %v5957_v39 = vmul.f32 %v5908_v37, %v5661_v35  ;;  %v5606_v51 = vadd.f32 %v5605_v48, %v5380_v14 }
 0x6d8   : > { %v5382_v52 = vpop.f32.mrf.mxu1 }
 0x6d9   : > { %v6004_v56 = vadd.f32 %v6003_v27, %v5957_v39  ;;  %v5662_v24 = vadd.f32 %v5606_v51, %v12006_v3 }
 0x6da   : > { %v5385_v34 = vpop.f32.mrf.mxu1 }
 0x6db   : > { %v5958_v46 = vmul.f32 %v5909_v18, %v5662_v24  ;;  %v5611_v54 = vadd.f32 %v7498_v38, %v5385_v34 }
 0x6dc   : > { %v5387_v59 = vpop.f32.mrf.mxu1 }
 0x6dd   : > { %v6005_v58 = vadd.f32 %v6004_v56, %v5958_v46  ;;  %v5663_v62 = vadd.f32 %v5611_v54, %v12007_v45 }
 0x6de   : > { %v5388_v15 = vpop.f32.mrf.mxu1 }
 0x6df   : > { %v5959_v36 = vmul.f32 %v5910_v6, %v5663_v62  ;;  %v5614_v31 = vadd.f32 %v7499_v5, %v5388_v15 }
 0x6e0   : > { %v5390_v29 = vpop.f32.mrf.mxu1 }
 0x6e1   : > { %v6006_v20 = vadd.f32 %v6005_v58, %v5959_v36  ;;  %v5664_v9 = vadd.f32 %v5614_v31, %v12008_v7 }
 0x6e3   : > { %v5960_v63 = vmul.f32 %v5911_v50, %v5664_v9 }
 0x6e5   : > { %v6007_v30 = vadd.f32 %v6006_v20, %v5960_v63 }
 0x6e7   : > { %v6008_v38 = vrot.slane %v6007_v30, 4 }
 0x6e9   : > { %v6009_v4 = vadd.f32 %v6008_v38, %v6007_v30 }
 0x6eb   : > { %v6010_v1 = vrot.slane %v6009_v4, 2 }
 0x6ed   : > { %v6011_v44 = vadd.f32 %v6010_v1, %v6009_v4 }
 0x6ef   : > { %v6012_v28 = vrot.slane %v6011_v44, 1 }
 0x6f1   : > { %v6013_v13 = vadd.f32 %v6012_v28, %v6011_v44 }
 0x6f3   : > { %v6014_v55 = vadd.f32 %v6013_v13, %v5912_v16 }
 0x6f5   : > { %6015 = vst [vmem:[#allocation5] sm:$0x1] %v6014_v55 }
 0x6fc   : > { %v6019_v33 = vld [vmem:[#allocation5] sm:$0x1] }
 0x6fd   : > { %v6020_v57 = vsub.f32 1.1, %v6019_v33 }
 0x6ff   : > { %v6021_v47 = vmax.f32 %v6020_v57, 1e-12 }
 0x701   : > { %7933 = vrsqrt.f32 %v6021_v47  ;;  %vm6025_vm3 = vcmp.eq.f32.partialorder %v6021_v47, inf  ;;  %v6028_v21 = vand.u32 2147483648, %v6021_v47  ;;  %vm6027_vm4 = vcmp.eq.f32.partialorder %v6021_v47, 0.0 }
 0x70e   : > { %v7934_v25 = vpop.eup %7933 }
 0x70f   : > { %v6024_v17 = vmul.f32 %v7934_v25, %v6021_v47 }
 0x711   : > { %v6026_v11 = vsel %vm6025_vm3, %v6021_v47, %v6024_v17 }
 0x712   : > { %v6029_v2 = vsel %vm6027_vm4, %v6028_v21, %v6026_v11 }
 0x713   : > { %v6030_v60 = vsub.f32 %v6022_v10, %v6029_v2 }
 0x715   : > { %6031 = vst [vmem:[%s274_s24] sm:$0x1] %v6030_v60 }
 0x716   : > { %8049 = shalt.err (!%p8046_p9)
}
 0x717   : > { %s8050_s13 = scalar_lea.hbm %s6043_s9, 16  ;;  %s8054_s15 = scalar_lea.hbm %s11398_s5, 32 }
 0x718   : > { %p8051_p12 = scmp.ne.s32.totalorder %s6043_s9, %s8050_s13  ;;  %p8055_p5 = scmp.lt.s32.totalorder %s6043_s9, %s11398_s5 }
 0x719   : > { %p8056_p3 = scmp.lt.s32.totalorder %s8054_s15, %s8050_s13 }
 0x71a   : > { %p8052_p1 = pnand %p8051_p12, %p12009_p10 }
 0x71b   : > { %p8057_p4 = por %p8056_p3, %p8055_p5 }
 0x71c   : > { %p8053_p2 = pneg %p8052_p1 }
 0x71e   : > { %p8058_p8 = pnand %p8057_p4, %p8053_p2 }
 0x720   : > { %8061 = shalt.err (!%p8058_p8)
}
 0x721   : > { %7508 = dma.vmem_to_hbm [thread:$0]  (%p12009_p10), %s6046_s25, 16, %s6043_s9, %s6033_s7  }
 0x722 PF: > { %p7525_p11 = scmp.ge.s32.totalorder %s8120_s23, 2  ;;  %s6057_s24 = sand.u32 1, %s8100_s18  }
 0x723   : > { %p12010_p13 = scmp.ne.s32.totalorder %s11419_s30, 0  ;;  %s6058_s27 = scalar_lea.sflag [#allocation8], %s6057_s24 }
 0x725   : > { %p7518_p0 = pnand %p7525_p11, %p12010_p13 }
 0x727   : > { %p7519_p6 = pneg %p7518_p0 }
 0x729   : > { %8095 = dma.done.wait (%p7519_p6), %s6058_s27, 16  }
 0x72a   : > { %8097 = vsyncadd (%p7519_p6), %s6058_s27, 4294967280  ;;  %s20_s23 = sadd.s32 1, %s8120_s23   ;;  %s12011_s18 = smov %s8104_s19 }
 0x72b   : > { %p17_p7 = scmp.ge.s32.totalorder %s20_s23, 4   ;;  %s12012_s19 = smov %s8108_s20 }
 0x72c   : > { %s12013_s20 = smov %s8216_s6  ;;  %s12014_s21 = smov %s8116_s22 }
 0x72d   : > { %s12015_s22 = smov %s12017_s26  ;;  %19 = sbr.rel (!%p17_p7) target bundleno = 6 (0x6), region = 96 }
 0x732   :  { %6062 = vsyncpa [#allocation7], 1 }
 0x733   :  { %6064 = vsyncpa [#allocation7 + $0x1], 1 }
 0x734   :  { %6065 = vsyncpa [#allocation10], 1 }
 0x735   :  { %6066 = vsyncpa [#allocation8], 1 }
 0x736   :  { %6068 = vsyncpa [#allocation8 + $0x1], 1 }

</bundles_post_ra>
